<compile_context>
chip_gen: v7x
topology: tpu7x:2x2x1
jax: 0.10.0
libtpu: 0.0.40
codegen_flags: <defaults>
</compile_context>

<pallas_src>
import math

import jax
import jax.numpy as jnp
from jax.experimental import pallas as pl
from jax.experimental.pallas import tpu as pltpu


# -----------------------------------------------------------------------------
# Fused kernel: conv3x3 + BN + ReLU  ->  conv3x3 + BN + residual + ReLU
# -----------------------------------------------------------------------------
def _basic_block_kernel(x_ref, w1_ref, w2_ref, s1_ref, b1_ref, s2_ref, b2_ref,
                        out_ref, xpad_ref, mid_ref):
    """One image per grid step.

    x_ref:   (1, H, W, Cp)   f32 input block (also the residual)
    w*_ref:  (9, Cp, Cp)     bf16 conv weights, tap-major (dy*3 + dx)
    s*/b*:   (1, Cp)         f32 folded BN scale / bias
    out_ref: (1, H, W, Cp)   f32 output block
    xpad_ref, mid_ref: (H+2, W+2, Cp) f32 VMEM scratch (zero-padded operands)
    """
    _, H, W, Cp = x_ref.shape

    def conv3x3(src_ref, w_ref):
        # 3x3 conv as 9 shifted (H*W, Cp) @ (Cp, Cp) MXU matmuls, f32 accumulate.
        acc = jnp.zeros((H * W, Cp), jnp.float32)
        for dy in range(3):
            for dx in range(3):
                patch = src_ref[dy:dy + H, dx:dx + W, :]          # ref-level slice
                patch = patch.reshape(H * W, Cp).astype(jnp.bfloat16)
                acc += jnp.dot(patch, w_ref[dy * 3 + dx],
                               preferred_element_type=jnp.float32)
        return acc

    # --- pad the input (conv padding=1) inside VMEM --------------------------
    xpad_ref[...] = jnp.zeros_like(xpad_ref)
    xpad_ref[1:H + 1, 1:W + 1, :] = x_ref[0]

    # --- conv1 + bn1 + relu ---------------------------------------------------
    y1 = conv3x3(xpad_ref, w1_ref)
    y1 = jnp.maximum(y1 * s1_ref[...] + b1_ref[...], 0.0)

    # keep the intermediate in VMEM (zero-padded for conv2)
    mid_ref[...] = jnp.zeros_like(mid_ref)
    mid_ref[1:H + 1, 1:W + 1, :] = y1.reshape(H, W, Cp)

    # --- conv2 + bn2 + residual + relu ---------------------------------------
    y2 = conv3x3(mid_ref, w2_ref)
    y2 = y2 * s2_ref[...] + b2_ref[...]
    y2 = y2 + x_ref[0].reshape(H * W, Cp)                 # residual (f32)
    out_ref[0] = jnp.maximum(y2, 0.0).reshape(H, W, Cp)


# -----------------------------------------------------------------------------
# pallas_call wrapper
# -----------------------------------------------------------------------------
def _basic_block_pallas(x_nhwc, w1_taps, w2_taps, s1, b1, s2, b2):
    N, H, W, Cp = x_nhwc.shape
    blk_x = (1, H, W, Cp)
    blk_w = w1_taps.shape          # (9, Cp, Cp)
    blk_sb = s1.shape              # (1, Cp)

    # Advisory cost estimate (two 3x3 convs).
    flops = 2 * 2 * 9 * N * H * W * Cp * Cp
    bytes_accessed = (2 * N * H * W * Cp * 4          # x in + out
                      + 2 * 9 * Cp * Cp * 2           # bf16 weights
                      + 4 * Cp * 4)                   # scale/bias
    cost = pl.CostEstimate(flops=flops, transcendentals=0,
                           bytes_accessed=int(bytes_accessed))

    grid_spec = pltpu.PrefetchScalarGridSpec(
        num_scalar_prefetch=0,
        grid=(N,),
        in_specs=[
            pl.BlockSpec(blk_x, lambda n: (n, 0, 0, 0)),
            pl.BlockSpec(blk_w, lambda n: (0, 0, 0)),     # constant -> fetched once
            pl.BlockSpec(blk_w, lambda n: (0, 0, 0)),
            pl.BlockSpec(blk_sb, lambda n: (0, 0)),
            pl.BlockSpec(blk_sb, lambda n: (0, 0)),
            pl.BlockSpec(blk_sb, lambda n: (0, 0)),
            pl.BlockSpec(blk_sb, lambda n: (0, 0)),
        ],
        out_specs=pl.BlockSpec(blk_x, lambda n: (n, 0, 0, 0)),
        scratch_shapes=[
            pltpu.VMEM((H + 2, W + 2, Cp), jnp.float32),   # padded input
            pltpu.VMEM((H + 2, W + 2, Cp), jnp.float32),   # padded intermediate
        ],
    )

    return pl.pallas_call(
        _basic_block_kernel,
        out_shape=jax.ShapeDtypeStruct((N, H, W, Cp), jnp.float32),
        grid_spec=grid_spec,
        compiler_params=pltpu.CompilerParams(
            dimension_semantics=("parallel",),      # shard batch across TCs (v7x)
            vmem_limit_bytes=32 * 1024 * 1024,      # fits v7x's 64 MiB physical
        ),
        cost_estimate=cost,
    )(x_nhwc, w1_taps, w2_taps, s1, b1, s2, b2)


# -----------------------------------------------------------------------------
# BasicBlock params + forward (hot path in Pallas)
# -----------------------------------------------------------------------------
def _round_up(x, m):
    return -(-x // m) * m


def init_basic_block_params(key, inplanes, planes):
    k1, k2, k3, k4, k5, k6 = jax.random.split(key, 6)
    return {
        # PyTorch conv weight layout: (Cout, Cin, 3, 3), bias=False
        "conv1_w": 0.1 * jax.random.normal(k1, (planes, inplanes, 3, 3), jnp.float32),
        "conv2_w": 0.1 * jax.random.normal(k2, (planes, planes, 3, 3), jnp.float32),
        "bn1_gamma": 1.0 + 0.1 * jax.random.normal(k3, (planes,), jnp.float32),
        "bn1_beta": 0.1 * jax.random.normal(k4, (planes,), jnp.float32),
        "bn1_mean": jnp.zeros((planes,), jnp.float32),
        "bn1_var": jnp.ones((planes,), jnp.float32),
        "bn2_gamma": 1.0 + 0.1 * jax.random.normal(k5, (planes,), jnp.float32),
        "bn2_beta": 0.1 * jax.random.normal(k6, (planes,), jnp.float32),
        "bn2_mean": jnp.zeros((planes,), jnp.float32),
        "bn2_var": jnp.ones((planes,), jnp.float32),
        "eps": 1e-5,
    }


def _fold_bn(gamma, beta, mean, var, eps, cp):
    scale = gamma / jnp.sqrt(var + eps)
    bias = beta - mean * scale
    pad = cp - scale.shape[0]
    scale = jnp.pad(scale, (0, pad)).reshape(1, cp)
    bias = jnp.pad(bias, (0, pad)).reshape(1, cp)
    return scale.astype(jnp.float32), bias.astype(jnp.float32)


def _w_to_taps(w_oihw, cp):
    # (Cout, Cin, 3, 3) -> tap-major (9, Cin_p, Cout_p), bf16, zero-padded channels
    cout, cin = w_oihw.shape[0], w_oihw.shape[1]
    w = jnp.transpose(w_oihw, (2, 3, 1, 0)).reshape(9, cin, cout)
    w = jnp.pad(w, ((0, 0), (0, cp - cin), (0, cp - cout)))
    return w.astype(jnp.bfloat16)


def basic_block_forward(params, x_nchw):
    """Matches BasicBlock.forward with stride=1, downsample=None.  Input NCHW."""
    N, C, H, W = x_nchw.shape
    planes = params["conv1_w"].shape[0]
    assert planes == C, "stride=1 / downsample=None requires inplanes == planes"
    Cp = _round_up(C, 128)   # lane-dense channel dim

    # NCHW -> NHWC (channels on the lane axis), pad channels to a lane multiple.
    x_nhwc = jnp.transpose(x_nchw, (0, 2, 3, 1)).astype(jnp.float32)
    x_nhwc = jnp.pad(x_nhwc, ((0, 0), (0, 0), (0, 0), (0, Cp - C)))

    w1 = _w_to_taps(params["conv1_w"], Cp)
    w2 = _w_to_taps(params["conv2_w"], Cp)
    s1, b1 = _fold_bn(params["bn1_gamma"], params["bn1_beta"],
                      params["bn1_mean"], params["bn1_var"], params["eps"], Cp)
    s2, b2 = _fold_bn(params["bn2_gamma"], params["bn2_beta"],
                      params["bn2_mean"], params["bn2_var"], params["eps"], Cp)

    out = _basic_block_pallas(x_nhwc, w1, w2, s1, b1, s2, b2)
    out = out[..., :C]
    return jnp.transpose(out, (0, 3, 1, 2))   # back to NCHW


# -----------------------------------------------------------------------------
# Reference (pure JAX/XLA) with the same mixed precision (bf16 MXU, f32 acc)
# -----------------------------------------------------------------------------
def _reference_forward(params, x_nchw):
    def conv(x, w):
        return jax.lax.conv_general_dilated(
            x.astype(jnp.bfloat16), w.astype(jnp.bfloat16),
            window_strides=(1, 1), padding=((1, 1), (1, 1)),
            dimension_numbers=("NCHW", "OIHW", "NCHW"),
            preferred_element_type=jnp.float32)

    def bn(x, g, b, m, v, eps):
        return (x - m[None, :, None, None]) / jnp.sqrt(v[None, :, None, None] + eps) \
               * g[None, :, None, None] + b[None, :, None, None]

    out = conv(x_nchw, params["conv1_w"])
    out = bn(out, params["bn1_gamma"], params["bn1_beta"],
             params["bn1_mean"], params["bn1_var"], params["eps"])
    out = jnp.maximum(out, 0.0)
    out = conv(out, params["conv2_w"])
    out = bn(out, params["bn2_gamma"], params["bn2_beta"],
             params["bn2_mean"], params["bn2_var"], params["eps"])
    out = out + x_nchw
    return jnp.maximum(out, 0.0)


if __name__ == "__main__":
    key = jax.random.PRNGKey(0)
    kx, kp = jax.random.split(key)

    N, C, H, W = 2, 4, 16, 16          # inplanes = planes = 4, stride = 1
    x = jax.random.normal(kx, (N, C, H, W), jnp.float32)
    params = init_basic_block_params(kp, inplanes=C, planes=C)

    out = basic_block_forward(params, x)
    out = jax.block_until_ready(out)
    assert out.shape == (N, C, H, W)

    ref = _reference_forward(params, x)
    max_err = float(jnp.max(jnp.abs(out - ref)))
    assert jnp.allclose(out, ref, atol=2e-3, rtol=2e-3), \
        f"mismatch vs JAX reference (max abs err {max_err})"

    print("KERNEL_OK")
</pallas_src>

<mosaic_0001>
module attributes {stable_mosaic.version = 11 : i64} {
  func.func @_basic_block_kernel(%arg0: i32, %arg1: memref<1x16x16x128xf32, #tpu.memory_space<vmem>>, %arg2: memref<9x128x128xbf16, #tpu.memory_space<vmem>>, %arg3: memref<9x128x128xbf16, #tpu.memory_space<vmem>>, %arg4: memref<1x128xf32, #tpu.memory_space<vmem>>, %arg5: memref<1x128xf32, #tpu.memory_space<vmem>>, %arg6: memref<1x128xf32, #tpu.memory_space<vmem>>, %arg7: memref<1x128xf32, #tpu.memory_space<vmem>>, %arg8: memref<1x16x16x128xf32, #tpu.memory_space<vmem>>, %arg9: memref<18x18x128xf32, #tpu.memory_space<vmem>>, %arg10: memref<18x18x128xf32, #tpu.memory_space<vmem>>) attributes {dimension_semantics = [#tpu.dimension_semantics<parallel>], iteration_bounds = array<i64: 2>, scalar_prefetch = 0 : i64, scratch_operands = 2 : i64, tpu.core_type = #tpu.core_type<tc>, window_params = [{transform_indices = @transform_0, window_bounds = array<i64: 1, 16, 16, 128>}, {pipeline_mode = #tpu.pipeline_mode<synchronous>, transform_indices = @transform_1, window_bounds = array<i64: 9, 128, 128>}, {pipeline_mode = #tpu.pipeline_mode<synchronous>, transform_indices = @transform_2, window_bounds = array<i64: 9, 128, 128>}, {pipeline_mode = #tpu.pipeline_mode<synchronous>, transform_indices = @transform_3, window_bounds = array<i64: 1, 128>}, {pipeline_mode = #tpu.pipeline_mode<synchronous>, transform_indices = @transform_4, window_bounds = array<i64: 1, 128>}, {pipeline_mode = #tpu.pipeline_mode<synchronous>, transform_indices = @transform_5, window_bounds = array<i64: 1, 128>}, {pipeline_mode = #tpu.pipeline_mode<synchronous>, transform_indices = @transform_6, window_bounds = array<i64: 1, 128>}, {transform_indices = @transform_7, window_bounds = array<i64: 1, 16, 16, 128>}]} {
    %cst = arith.constant 0.000000e+00 : f32
    %0 = vector.broadcast %cst : f32 to vector<18x18x128xf32>
    %c0 = arith.constant 0 : index
    %c0_0 = arith.constant 0 : index
    %c0_1 = arith.constant 0 : index
    %1 = vector.load %arg9[%c0, %c0_0, %c0_1] : memref<18x18x128xf32, #tpu.memory_space<vmem>>, vector<18x18x128xf32>
    tpu.vector_store %arg9[%c0, %c0_0, %c0_1], %0 {strides = array<i32>} : memref<18x18x128xf32, #tpu.memory_space<vmem>>, vector<18x18x128xf32>,
    %c0_2 = arith.constant 0 : index
    %c0_3 = arith.constant 0 : index
    %c0_4 = arith.constant 0 : index
    %c0_5 = arith.constant 0 : index
    %2 = vector.load %arg1[%c0_2, %c0_3, %c0_4, %c0_5] : memref<1x16x16x128xf32, #tpu.memory_space<vmem>>, vector<1x16x16x128xf32>
    %3 = vector.shape_cast %2 : vector<1x16x16x128xf32> to vector<16x16x128xf32>
    %c1 = arith.constant 1 : index
    %c1_6 = arith.constant 1 : index
    %c0_7 = arith.constant 0 : index
    %4 = vector.load %arg9[%c1, %c1_6, %c0_7] : memref<18x18x128xf32, #tpu.memory_space<vmem>>, vector<16x16x128xf32>
    tpu.vector_store %arg9[%c1, %c1_6, %c0_7], %3 {strides = array<i32>} : memref<18x18x128xf32, #tpu.memory_space<vmem>>, vector<16x16x128xf32>,
    %cst_8 = arith.constant 0.000000e+00 : f32
    %5 = vector.broadcast %cst_8 : f32 to vector<256x128xf32>
    %c0_9 = arith.constant 0 : index
    %c0_10 = arith.constant 0 : index
    %c0_11 = arith.constant 0 : index
    %6 = vector.load %arg9[%c0_9, %c0_10, %c0_11] : memref<18x18x128xf32, #tpu.memory_space<vmem>>, vector<16x16x128xf32>
    %7 = vector.shape_cast %6 : vector<16x16x128xf32> to vector<256x128xf32>
    %8 = arith.truncf %7 : vector<256x128xf32> to vector<256x128xbf16>
    %c0_12 = arith.constant 0 : index
    %c0_13 = arith.constant 0 : index
    %c0_14 = arith.constant 0 : index
    %9 = vector.load %arg2[%c0_12, %c0_13, %c0_14] : memref<9x128x128xbf16, #tpu.memory_space<vmem>>, vector<1x128x128xbf16>
    %10 = vector.shape_cast %9 : vector<1x128x128xbf16> to vector<128x128xbf16>
    %cst_15 = arith.constant dense<0.000000e+00> : vector<256x128xf32>
    %11 = tpu.matmul %8, %10, %cst_15 {dimension_numbers = #tpu.dot_dimension_numbers<[1], [0], [0], [1], [0, 0, 1, 1], [], []>} : vector<256x128xbf16>, vector<128x128xbf16>, vector<256x128xf32> -> vector<256x128xf32>
    %12 = arith.addf %5, %11 : vector<256x128xf32>
    %c0_16 = arith.constant 0 : index
    %c1_17 = arith.constant 1 : index
    %c0_18 = arith.constant 0 : index
    %13 = vector.load %arg9[%c0_16, %c1_17, %c0_18] : memref<18x18x128xf32, #tpu.memory_space<vmem>>, vector<16x16x128xf32>
    %14 = vector.shape_cast %13 : vector<16x16x128xf32> to vector<256x128xf32>
    %15 = arith.truncf %14 : vector<256x128xf32> to vector<256x128xbf16>
    %c1_19 = arith.constant 1 : index
    %c0_20 = arith.constant 0 : index
    %c0_21 = arith.constant 0 : index
    %16 = vector.load %arg2[%c1_19, %c0_20, %c0_21] : memref<9x128x128xbf16, #tpu.memory_space<vmem>>, vector<1x128x128xbf16>
    %17 = vector.shape_cast %16 : vector<1x128x128xbf16> to vector<128x128xbf16>
    %cst_22 = arith.constant dense<0.000000e+00> : vector<256x128xf32>
    %18 = tpu.matmul %15, %17, %cst_22 {dimension_numbers = #tpu.dot_dimension_numbers<[1], [0], [0], [1], [0, 0, 1, 1], [], []>} : vector<256x128xbf16>, vector<128x128xbf16>, vector<256x128xf32> -> vector<256x128xf32>
    %19 = arith.addf %12, %18 : vector<256x128xf32>
    %c0_23 = arith.constant 0 : index
    %c2 = arith.constant 2 : index
    %c0_24 = arith.constant 0 : index
    %20 = vector.load %arg9[%c0_23, %c2, %c0_24] : memref<18x18x128xf32, #tpu.memory_space<vmem>>, vector<16x16x128xf32>
    %21 = vector.shape_cast %20 : vector<16x16x128xf32> to vector<256x128xf32>
    %22 = arith.truncf %21 : vector<256x128xf32> to vector<256x128xbf16>
    %c2_25 = arith.constant 2 : index
    %c0_26 = arith.constant 0 : index
    %c0_27 = arith.constant 0 : index
    %23 = vector.load %arg2[%c2_25, %c0_26, %c0_27] : memref<9x128x128xbf16, #tpu.memory_space<vmem>>, vector<1x128x128xbf16>
    %24 = vector.shape_cast %23 : vector<1x128x128xbf16> to vector<128x128xbf16>
    %cst_28 = arith.constant dense<0.000000e+00> : vector<256x128xf32>
    %25 = tpu.matmul %22, %24, %cst_28 {dimension_numbers = #tpu.dot_dimension_numbers<[1], [0], [0], [1], [0, 0, 1, 1], [], []>} : vector<256x128xbf16>, vector<128x128xbf16>, vector<256x128xf32> -> vector<256x128xf32>
    %26 = arith.addf %19, %25 : vector<256x128xf32>
    %c1_29 = arith.constant 1 : index
    %c0_30 = arith.constant 0 : index
    %c0_31 = arith.constant 0 : index
    %27 = vector.load %arg9[%c1_29, %c0_30, %c0_31] : memref<18x18x128xf32, #tpu.memory_space<vmem>>, vector<16x16x128xf32>
    %28 = vector.shape_cast %27 : vector<16x16x128xf32> to vector<256x128xf32>
    %29 = arith.truncf %28 : vector<256x128xf32> to vector<256x128xbf16>
    %c3 = arith.constant 3 : index
    %c0_32 = arith.constant 0 : index
    %c0_33 = arith.constant 0 : index
    %30 = vector.load %arg2[%c3, %c0_32, %c0_33] : memref<9x128x128xbf16, #tpu.memory_space<vmem>>, vector<1x128x128xbf16>
    %31 = vector.shape_cast %30 : vector<1x128x128xbf16> to vector<128x128xbf16>
    %cst_34 = arith.constant dense<0.000000e+00> : vector<256x128xf32>
    %32 = tpu.matmul %29, %31, %cst_34 {dimension_numbers = #tpu.dot_dimension_numbers<[1], [0], [0], [1], [0, 0, 1, 1], [], []>} : vector<256x128xbf16>, vector<128x128xbf16>, vector<256x128xf32> -> vector<256x128xf32>
    %33 = arith.addf %26, %32 : vector<256x128xf32>
    %c1_35 = arith.constant 1 : index
    %c1_36 = arith.constant 1 : index
    %c0_37 = arith.constant 0 : index
    %34 = vector.load %arg9[%c1_35, %c1_36, %c0_37] : memref<18x18x128xf32, #tpu.memory_space<vmem>>, vector<16x16x128xf32>
    %35 = vector.shape_cast %34 : vector<16x16x128xf32> to vector<256x128xf32>
    %36 = arith.truncf %35 : vector<256x128xf32> to vector<256x128xbf16>
    %c4 = arith.constant 4 : index
    %c0_38 = arith.constant 0 : index
    %c0_39 = arith.constant 0 : index
    %37 = vector.load %arg2[%c4, %c0_38, %c0_39] : memref<9x128x128xbf16, #tpu.memory_space<vmem>>, vector<1x128x128xbf16>
    %38 = vector.shape_cast %37 : vector<1x128x128xbf16> to vector<128x128xbf16>
    %cst_40 = arith.constant dense<0.000000e+00> : vector<256x128xf32>
    %39 = tpu.matmul %36, %38, %cst_40 {dimension_numbers = #tpu.dot_dimension_numbers<[1], [0], [0], [1], [0, 0, 1, 1], [], []>} : vector<256x128xbf16>, vector<128x128xbf16>, vector<256x128xf32> -> vector<256x128xf32>
    %40 = arith.addf %33, %39 : vector<256x128xf32>
    %c1_41 = arith.constant 1 : index
    %c2_42 = arith.constant 2 : index
    %c0_43 = arith.constant 0 : index
    %41 = vector.load %arg9[%c1_41, %c2_42, %c0_43] : memref<18x18x128xf32, #tpu.memory_space<vmem>>, vector<16x16x128xf32>
    %42 = vector.shape_cast %41 : vector<16x16x128xf32> to vector<256x128xf32>
    %43 = arith.truncf %42 : vector<256x128xf32> to vector<256x128xbf16>
    %c5 = arith.constant 5 : index
    %c0_44 = arith.constant 0 : index
    %c0_45 = arith.constant 0 : index
    %44 = vector.load %arg2[%c5, %c0_44, %c0_45] : memref<9x128x128xbf16, #tpu.memory_space<vmem>>, vector<1x128x128xbf16>
    %45 = vector.shape_cast %44 : vector<1x128x128xbf16> to vector<128x128xbf16>
    %cst_46 = arith.constant dense<0.000000e+00> : vector<256x128xf32>
    %46 = tpu.matmul %43, %45, %cst_46 {dimension_numbers = #tpu.dot_dimension_numbers<[1], [0], [0], [1], [0, 0, 1, 1], [], []>} : vector<256x128xbf16>, vector<128x128xbf16>, vector<256x128xf32> -> vector<256x128xf32>
    %47 = arith.addf %40, %46 : vector<256x128xf32>
    %c2_47 = arith.constant 2 : index
    %c0_48 = arith.constant 0 : index
    %c0_49 = arith.constant 0 : index
    %48 = vector.load %arg9[%c2_47, %c0_48, %c0_49] : memref<18x18x128xf32, #tpu.memory_space<vmem>>, vector<16x16x128xf32>
    %49 = vector.shape_cast %48 : vector<16x16x128xf32> to vector<256x128xf32>
    %50 = arith.truncf %49 : vector<256x128xf32> to vector<256x128xbf16>
    %c6 = arith.constant 6 : index
    %c0_50 = arith.constant 0 : index
    %c0_51 = arith.constant 0 : index
    %51 = vector.load %arg2[%c6, %c0_50, %c0_51] : memref<9x128x128xbf16, #tpu.memory_space<vmem>>, vector<1x128x128xbf16>
    %52 = vector.shape_cast %51 : vector<1x128x128xbf16> to vector<128x128xbf16>
    %cst_52 = arith.constant dense<0.000000e+00> : vector<256x128xf32>
    %53 = tpu.matmul %50, %52, %cst_52 {dimension_numbers = #tpu.dot_dimension_numbers<[1], [0], [0], [1], [0, 0, 1, 1], [], []>} : vector<256x128xbf16>, vector<128x128xbf16>, vector<256x128xf32> -> vector<256x128xf32>
    %54 = arith.addf %47, %53 : vector<256x128xf32>
    %c2_53 = arith.constant 2 : index
    %c1_54 = arith.constant 1 : index
    %c0_55 = arith.constant 0 : index
    %55 = vector.load %arg9[%c2_53, %c1_54, %c0_55] : memref<18x18x128xf32, #tpu.memory_space<vmem>>, vector<16x16x128xf32>
    %56 = vector.shape_cast %55 : vector<16x16x128xf32> to vector<256x128xf32>
    %57 = arith.truncf %56 : vector<256x128xf32> to vector<256x128xbf16>
    %c7 = arith.constant 7 : index
    %c0_56 = arith.constant 0 : index
    %c0_57 = arith.constant 0 : index
    %58 = vector.load %arg2[%c7, %c0_56, %c0_57] : memref<9x128x128xbf16, #tpu.memory_space<vmem>>, vector<1x128x128xbf16>
    %59 = vector.shape_cast %58 : vector<1x128x128xbf16> to vector<128x128xbf16>
    %cst_58 = arith.constant dense<0.000000e+00> : vector<256x128xf32>
    %60 = tpu.matmul %57, %59, %cst_58 {dimension_numbers = #tpu.dot_dimension_numbers<[1], [0], [0], [1], [0, 0, 1, 1], [], []>} : vector<256x128xbf16>, vector<128x128xbf16>, vector<256x128xf32> -> vector<256x128xf32>
    %61 = arith.addf %54, %60 : vector<256x128xf32>
    %c2_59 = arith.constant 2 : index
    %c2_60 = arith.constant 2 : index
    %c0_61 = arith.constant 0 : index
    %62 = vector.load %arg9[%c2_59, %c2_60, %c0_61] : memref<18x18x128xf32, #tpu.memory_space<vmem>>, vector<16x16x128xf32>
    %63 = vector.shape_cast %62 : vector<16x16x128xf32> to vector<256x128xf32>
    %64 = arith.truncf %63 : vector<256x128xf32> to vector<256x128xbf16>
    %c8 = arith.constant 8 : index
    %c0_62 = arith.constant 0 : index
    %c0_63 = arith.constant 0 : index
    %65 = vector.load %arg2[%c8, %c0_62, %c0_63] : memref<9x128x128xbf16, #tpu.memory_space<vmem>>, vector<1x128x128xbf16>
    %66 = vector.shape_cast %65 : vector<1x128x128xbf16> to vector<128x128xbf16>
    %cst_64 = arith.constant dense<0.000000e+00> : vector<256x128xf32>
    %67 = tpu.matmul %64, %66, %cst_64 {dimension_numbers = #tpu.dot_dimension_numbers<[1], [0], [0], [1], [0, 0, 1, 1], [], []>} : vector<256x128xbf16>, vector<128x128xbf16>, vector<256x128xf32> -> vector<256x128xf32>
    %68 = arith.addf %61, %67 : vector<256x128xf32>
    %c0_65 = arith.constant 0 : index
    %c0_66 = arith.constant 0 : index
    %69 = vector.load %arg4[%c0_65, %c0_66] : memref<1x128xf32, #tpu.memory_space<vmem>>, vector<1x128xf32>
    %70 = vector.broadcast %69 : vector<1x128xf32> to vector<256x128xf32>
    %71 = arith.mulf %68, %70 : vector<256x128xf32>
    %c0_67 = arith.constant 0 : index
    %c0_68 = arith.constant 0 : index
    %72 = vector.load %arg5[%c0_67, %c0_68] : memref<1x128xf32, #tpu.memory_space<vmem>>, vector<1x128xf32>
    %73 = vector.broadcast %72 : vector<1x128xf32> to vector<256x128xf32>
    %74 = arith.addf %71, %73 : vector<256x128xf32>
    %cst_69 = arith.constant 0.000000e+00 : f32
    %75 = vector.broadcast %cst_69 : f32 to vector<256x128xf32>
    %76 = arith.maximumf %74, %75 : vector<256x128xf32>
    %cst_70 = arith.constant 0.000000e+00 : f32
    %77 = vector.broadcast %cst_70 : f32 to vector<18x18x128xf32>
    %c0_71 = arith.constant 0 : index
    %c0_72 = arith.constant 0 : index
    %c0_73 = arith.constant 0 : index
    %78 = vector.load %arg10[%c0_71, %c0_72, %c0_73] : memref<18x18x128xf32, #tpu.memory_space<vmem>>, vector<18x18x128xf32>
    tpu.vector_store %arg10[%c0_71, %c0_72, %c0_73], %77 {strides = array<i32>} : memref<18x18x128xf32, #tpu.memory_space<vmem>>, vector<18x18x128xf32>,
    %79 = vector.shape_cast %76 : vector<256x128xf32> to vector<16x16x128xf32>
    %c1_74 = arith.constant 1 : index
    %c1_75 = arith.constant 1 : index
    %c0_76 = arith.constant 0 : index
    %80 = vector.load %arg10[%c1_74, %c1_75, %c0_76] : memref<18x18x128xf32, #tpu.memory_space<vmem>>, vector<16x16x128xf32>
    tpu.vector_store %arg10[%c1_74, %c1_75, %c0_76], %79 {strides = array<i32>} : memref<18x18x128xf32, #tpu.memory_space<vmem>>, vector<16x16x128xf32>,
    %cst_77 = arith.constant 0.000000e+00 : f32
    %81 = vector.broadcast %cst_77 : f32 to vector<256x128xf32>
    %c0_78 = arith.constant 0 : index
    %c0_79 = arith.constant 0 : index
    %c0_80 = arith.constant 0 : index
    %82 = vector.load %arg10[%c0_78, %c0_79, %c0_80] : memref<18x18x128xf32, #tpu.memory_space<vmem>>, vector<16x16x128xf32>
    %83 = vector.shape_cast %82 : vector<16x16x128xf32> to vector<256x128xf32>
    %84 = arith.truncf %83 : vector<256x128xf32> to vector<256x128xbf16>
    %c0_81 = arith.constant 0 : index
    %c0_82 = arith.constant 0 : index
    %c0_83 = arith.constant 0 : index
    %85 = vector.load %arg3[%c0_81, %c0_82, %c0_83] : memref<9x128x128xbf16, #tpu.memory_space<vmem>>, vector<1x128x128xbf16>
    %86 = vector.shape_cast %85 : vector<1x128x128xbf16> to vector<128x128xbf16>
    %cst_84 = arith.constant dense<0.000000e+00> : vector<256x128xf32>
    %87 = tpu.matmul %84, %86, %cst_84 {dimension_numbers = #tpu.dot_dimension_numbers<[1], [0], [0], [1], [0, 0, 1, 1], [], []>} : vector<256x128xbf16>, vector<128x128xbf16>, vector<256x128xf32> -> vector<256x128xf32>
    %88 = arith.addf %81, %87 : vector<256x128xf32>
    %c0_85 = arith.constant 0 : index
    %c1_86 = arith.constant 1 : index
    %c0_87 = arith.constant 0 : index
    %89 = vector.load %arg10[%c0_85, %c1_86, %c0_87] : memref<18x18x128xf32, #tpu.memory_space<vmem>>, vector<16x16x128xf32>
    %90 = vector.shape_cast %89 : vector<16x16x128xf32> to vector<256x128xf32>
    %91 = arith.truncf %90 : vector<256x128xf32> to vector<256x128xbf16>
    %c1_88 = arith.constant 1 : index
    %c0_89 = arith.constant 0 : index
    %c0_90 = arith.constant 0 : index
    %92 = vector.load %arg3[%c1_88, %c0_89, %c0_90] : memref<9x128x128xbf16, #tpu.memory_space<vmem>>, vector<1x128x128xbf16>
    %93 = vector.shape_cast %92 : vector<1x128x128xbf16> to vector<128x128xbf16>
    %cst_91 = arith.constant dense<0.000000e+00> : vector<256x128xf32>
    %94 = tpu.matmul %91, %93, %cst_91 {dimension_numbers = #tpu.dot_dimension_numbers<[1], [0], [0], [1], [0, 0, 1, 1], [], []>} : vector<256x128xbf16>, vector<128x128xbf16>, vector<256x128xf32> -> vector<256x128xf32>
    %95 = arith.addf %88, %94 : vector<256x128xf32>
    %c0_92 = arith.constant 0 : index
    %c2_93 = arith.constant 2 : index
    %c0_94 = arith.constant 0 : index
    %96 = vector.load %arg10[%c0_92, %c2_93, %c0_94] : memref<18x18x128xf32, #tpu.memory_space<vmem>>, vector<16x16x128xf32>
    %97 = vector.shape_cast %96 : vector<16x16x128xf32> to vector<256x128xf32>
    %98 = arith.truncf %97 : vector<256x128xf32> to vector<256x128xbf16>
    %c2_95 = arith.constant 2 : index
    %c0_96 = arith.constant 0 : index
    %c0_97 = arith.constant 0 : index
    %99 = vector.load %arg3[%c2_95, %c0_96, %c0_97] : memref<9x128x128xbf16, #tpu.memory_space<vmem>>, vector<1x128x128xbf16>
    %100 = vector.shape_cast %99 : vector<1x128x128xbf16> to vector<128x128xbf16>
    %cst_98 = arith.constant dense<0.000000e+00> : vector<256x128xf32>
    %101 = tpu.matmul %98, %100, %cst_98 {dimension_numbers = #tpu.dot_dimension_numbers<[1], [0], [0], [1], [0, 0, 1, 1], [], []>} : vector<256x128xbf16>, vector<128x128xbf16>, vector<256x128xf32> -> vector<256x128xf32>
    %102 = arith.addf %95, %101 : vector<256x128xf32>
    %c1_99 = arith.constant 1 : index
    %c0_100 = arith.constant 0 : index
    %c0_101 = arith.constant 0 : index
    %103 = vector.load %arg10[%c1_99, %c0_100, %c0_101] : memref<18x18x128xf32, #tpu.memory_space<vmem>>, vector<16x16x128xf32>
    %104 = vector.shape_cast %103 : vector<16x16x128xf32> to vector<256x128xf32>
    %105 = arith.truncf %104 : vector<256x128xf32> to vector<256x128xbf16>
    %c3_102 = arith.constant 3 : index
    %c0_103 = arith.constant 0 : index
    %c0_104 = arith.constant 0 : index
    %106 = vector.load %arg3[%c3_102, %c0_103, %c0_104] : memref<9x128x128xbf16, #tpu.memory_space<vmem>>, vector<1x128x128xbf16>
    %107 = vector.shape_cast %106 : vector<1x128x128xbf16> to vector<128x128xbf16>
    %cst_105 = arith.constant dense<0.000000e+00> : vector<256x128xf32>
    %108 = tpu.matmul %105, %107, %cst_105 {dimension_numbers = #tpu.dot_dimension_numbers<[1], [0], [0], [1], [0, 0, 1, 1], [], []>} : vector<256x128xbf16>, vector<128x128xbf16>, vector<256x128xf32> -> vector<256x128xf32>
    %109 = arith.addf %102, %108 : vector<256x128xf32>
    %c1_106 = arith.constant 1 : index
    %c1_107 = arith.constant 1 : index
    %c0_108 = arith.constant 0 : index
    %110 = vector.load %arg10[%c1_106, %c1_107, %c0_108] : memref<18x18x128xf32, #tpu.memory_space<vmem>>, vector<16x16x128xf32>
    %111 = vector.shape_cast %110 : vector<16x16x128xf32> to vector<256x128xf32>
    %112 = arith.truncf %111 : vector<256x128xf32> to vector<256x128xbf16>
    %c4_109 = arith.constant 4 : index
    %c0_110 = arith.constant 0 : index
    %c0_111 = arith.constant 0 : index
    %113 = vector.load %arg3[%c4_109, %c0_110, %c0_111] : memref<9x128x128xbf16, #tpu.memory_space<vmem>>, vector<1x128x128xbf16>
    %114 = vector.shape_cast %113 : vector<1x128x128xbf16> to vector<128x128xbf16>
    %cst_112 = arith.constant dense<0.000000e+00> : vector<256x128xf32>
    %115 = tpu.matmul %112, %114, %cst_112 {dimension_numbers = #tpu.dot_dimension_numbers<[1], [0], [0], [1], [0, 0, 1, 1], [], []>} : vector<256x128xbf16>, vector<128x128xbf16>, vector<256x128xf32> -> vector<256x128xf32>
    %116 = arith.addf %109, %115 : vector<256x128xf32>
    %c1_113 = arith.constant 1 : index
    %c2_114 = arith.constant 2 : index
    %c0_115 = arith.constant 0 : index
    %117 = vector.load %arg10[%c1_113, %c2_114, %c0_115] : memref<18x18x128xf32, #tpu.memory_space<vmem>>, vector<16x16x128xf32>
    %118 = vector.shape_cast %117 : vector<16x16x128xf32> to vector<256x128xf32>
    %119 = arith.truncf %118 : vector<256x128xf32> to vector<256x128xbf16>
    %c5_116 = arith.constant 5 : index
    %c0_117 = arith.constant 0 : index
    %c0_118 = arith.constant 0 : index
    %120 = vector.load %arg3[%c5_116, %c0_117, %c0_118] : memref<9x128x128xbf16, #tpu.memory_space<vmem>>, vector<1x128x128xbf16>
    %121 = vector.shape_cast %120 : vector<1x128x128xbf16> to vector<128x128xbf16>
    %cst_119 = arith.constant dense<0.000000e+00> : vector<256x128xf32>
    %122 = tpu.matmul %119, %121, %cst_119 {dimension_numbers = #tpu.dot_dimension_numbers<[1], [0], [0], [1], [0, 0, 1, 1], [], []>} : vector<256x128xbf16>, vector<128x128xbf16>, vector<256x128xf32> -> vector<256x128xf32>
    %123 = arith.addf %116, %122 : vector<256x128xf32>
    %c2_120 = arith.constant 2 : index
    %c0_121 = arith.constant 0 : index
    %c0_122 = arith.constant 0 : index
    %124 = vector.load %arg10[%c2_120, %c0_121, %c0_122] : memref<18x18x128xf32, #tpu.memory_space<vmem>>, vector<16x16x128xf32>
    %125 = vector.shape_cast %124 : vector<16x16x128xf32> to vector<256x128xf32>
    %126 = arith.truncf %125 : vector<256x128xf32> to vector<256x128xbf16>
    %c6_123 = arith.constant 6 : index
    %c0_124 = arith.constant 0 : index
    %c0_125 = arith.constant 0 : index
    %127 = vector.load %arg3[%c6_123, %c0_124, %c0_125] : memref<9x128x128xbf16, #tpu.memory_space<vmem>>, vector<1x128x128xbf16>
    %128 = vector.shape_cast %127 : vector<1x128x128xbf16> to vector<128x128xbf16>
    %cst_126 = arith.constant dense<0.000000e+00> : vector<256x128xf32>
    %129 = tpu.matmul %126, %128, %cst_126 {dimension_numbers = #tpu.dot_dimension_numbers<[1], [0], [0], [1], [0, 0, 1, 1], [], []>} : vector<256x128xbf16>, vector<128x128xbf16>, vector<256x128xf32> -> vector<256x128xf32>
    %130 = arith.addf %123, %129 : vector<256x128xf32>
    %c2_127 = arith.constant 2 : index
    %c1_128 = arith.constant 1 : index
    %c0_129 = arith.constant 0 : index
    %131 = vector.load %arg10[%c2_127, %c1_128, %c0_129] : memref<18x18x128xf32, #tpu.memory_space<vmem>>, vector<16x16x128xf32>
    %132 = vector.shape_cast %131 : vector<16x16x128xf32> to vector<256x128xf32>
    %133 = arith.truncf %132 : vector<256x128xf32> to vector<256x128xbf16>
    %c7_130 = arith.constant 7 : index
    %c0_131 = arith.constant 0 : index
    %c0_132 = arith.constant 0 : index
    %134 = vector.load %arg3[%c7_130, %c0_131, %c0_132] : memref<9x128x128xbf16, #tpu.memory_space<vmem>>, vector<1x128x128xbf16>
    %135 = vector.shape_cast %134 : vector<1x128x128xbf16> to vector<128x128xbf16>
    %cst_133 = arith.constant dense<0.000000e+00> : vector<256x128xf32>
    %136 = tpu.matmul %133, %135, %cst_133 {dimension_numbers = #tpu.dot_dimension_numbers<[1], [0], [0], [1], [0, 0, 1, 1], [], []>} : vector<256x128xbf16>, vector<128x128xbf16>, vector<256x128xf32> -> vector<256x128xf32>
    %137 = arith.addf %130, %136 : vector<256x128xf32>
    %c2_134 = arith.constant 2 : index
    %c2_135 = arith.constant 2 : index
    %c0_136 = arith.constant 0 : index
    %138 = vector.load %arg10[%c2_134, %c2_135, %c0_136] : memref<18x18x128xf32, #tpu.memory_space<vmem>>, vector<16x16x128xf32>
    %139 = vector.shape_cast %138 : vector<16x16x128xf32> to vector<256x128xf32>
    %140 = arith.truncf %139 : vector<256x128xf32> to vector<256x128xbf16>
    %c8_137 = arith.constant 8 : index
    %c0_138 = arith.constant 0 : index
    %c0_139 = arith.constant 0 : index
    %141 = vector.load %arg3[%c8_137, %c0_138, %c0_139] : memref<9x128x128xbf16, #tpu.memory_space<vmem>>, vector<1x128x128xbf16>
    %142 = vector.shape_cast %141 : vector<1x128x128xbf16> to vector<128x128xbf16>
    %cst_140 = arith.constant dense<0.000000e+00> : vector<256x128xf32>
    %143 = tpu.matmul %140, %142, %cst_140 {dimension_numbers = #tpu.dot_dimension_numbers<[1], [0], [0], [1], [0, 0, 1, 1], [], []>} : vector<256x128xbf16>, vector<128x128xbf16>, vector<256x128xf32> -> vector<256x128xf32>
    %144 = arith.addf %137, %143 : vector<256x128xf32>
    %c0_141 = arith.constant 0 : index
    %c0_142 = arith.constant 0 : index
    %145 = vector.load %arg6[%c0_141, %c0_142] : memref<1x128xf32, #tpu.memory_space<vmem>>, vector<1x128xf32>
    %146 = vector.broadcast %145 : vector<1x128xf32> to vector<256x128xf32>
    %147 = arith.mulf %144, %146 : vector<256x128xf32>
    %c0_143 = arith.constant 0 : index
    %c0_144 = arith.constant 0 : index
    %148 = vector.load %arg7[%c0_143, %c0_144] : memref<1x128xf32, #tpu.memory_space<vmem>>, vector<1x128xf32>
    %149 = vector.broadcast %148 : vector<1x128xf32> to vector<256x128xf32>
    %150 = arith.addf %147, %149 : vector<256x128xf32>
    %c0_145 = arith.constant 0 : index
    %c0_146 = arith.constant 0 : index
    %c0_147 = arith.constant 0 : index
    %c0_148 = arith.constant 0 : index
    %151 = vector.load %arg1[%c0_145, %c0_146, %c0_147, %c0_148] : memref<1x16x16x128xf32, #tpu.memory_space<vmem>>, vector<1x16x16x128xf32>
    %152 = vector.shape_cast %151 : vector<1x16x16x128xf32> to vector<16x16x128xf32>
    %153 = vector.shape_cast %152 : vector<16x16x128xf32> to vector<256x128xf32>
    %154 = arith.addf %150, %153 : vector<256x128xf32>
    %cst_149 = arith.constant 0.000000e+00 : f32
    %155 = vector.broadcast %cst_149 : f32 to vector<256x128xf32>
    %156 = arith.maximumf %154, %155 : vector<256x128xf32>
    %157 = vector.shape_cast %156 : vector<256x128xf32> to vector<16x16x128xf32>
    %c0_150 = arith.constant 0 : index
    %c0_151 = arith.constant 0 : index
    %c0_152 = arith.constant 0 : index
    %c0_153 = arith.constant 0 : index
    %158 = vector.load %arg8[%c0_150, %c0_151, %c0_152, %c0_153] : memref<1x16x16x128xf32, #tpu.memory_space<vmem>>, vector<1x16x16x128xf32>
    %159 = vector.shape_cast %158 : vector<1x16x16x128xf32> to vector<16x16x128xf32>
    %160 = vector.shape_cast %157 : vector<16x16x128xf32> to vector<1x16x16x128xf32>
    tpu.vector_store %arg8[%c0_150, %c0_151, %c0_152, %c0_153], %160 {strides = array<i32>} : memref<1x16x16x128xf32, #tpu.memory_space<vmem>>, vector<1x16x16x128xf32>,
    return
  }
  func.func @transform_0(%arg0: i32) -> (i32, i32, i32, i32) {
    %c0_i32 = arith.constant 0 : i32
    %c0_i32_0 = arith.constant 0 : i32
    %c0_i32_1 = arith.constant 0 : i32
    %c0_i32_2 = arith.constant 0 : i32
    return %arg0, %c0_i32, %c0_i32_0, %c0_i32_1 : i32, i32, i32, i32
  }
  func.func @transform_1(%arg0: i32) -> (i32, i32, i32) {
    %c0_i32 = arith.constant 0 : i32
    %c0_i32_0 = arith.constant 0 : i32
    %c0_i32_1 = arith.constant 0 : i32
    %c0_i32_2 = arith.constant 0 : i32
    return %c0_i32, %c0_i32_0, %c0_i32_1 : i32, i32, i32
  }
  func.func @transform_2(%arg0: i32) -> (i32, i32, i32) {
    %c0_i32 = arith.constant 0 : i32
    %c0_i32_0 = arith.constant 0 : i32
    %c0_i32_1 = arith.constant 0 : i32
    %c0_i32_2 = arith.constant 0 : i32
    return %c0_i32, %c0_i32_0, %c0_i32_1 : i32, i32, i32
  }
  func.func @transform_3(%arg0: i32) -> (i32, i32) {
    %c0_i32 = arith.constant 0 : i32
    %c0_i32_0 = arith.constant 0 : i32
    %c0_i32_1 = arith.constant 0 : i32
    return %c0_i32, %c0_i32_0 : i32, i32
  }
  func.func @transform_4(%arg0: i32) -> (i32, i32) {
    %c0_i32 = arith.constant 0 : i32
    %c0_i32_0 = arith.constant 0 : i32
    %c0_i32_1 = arith.constant 0 : i32
    return %c0_i32, %c0_i32_0 : i32, i32
  }
  func.func @transform_5(%arg0: i32) -> (i32, i32) {
    %c0_i32 = arith.constant 0 : i32
    %c0_i32_0 = arith.constant 0 : i32
    %c0_i32_1 = arith.constant 0 : i32
    return %c0_i32, %c0_i32_0 : i32, i32
  }
  func.func @transform_6(%arg0: i32) -> (i32, i32) {
    %c0_i32 = arith.constant 0 : i32
    %c0_i32_0 = arith.constant 0 : i32
    %c0_i32_1 = arith.constant 0 : i32
    return %c0_i32, %c0_i32_0 : i32, i32
  }
  func.func @transform_7(%arg0: i32) -> (i32, i32, i32, i32) {
    %c0_i32 = arith.constant 0 : i32
    %c0_i32_0 = arith.constant 0 : i32
    %c0_i32_1 = arith.constant 0 : i32
    %c0_i32_2 = arith.constant 0 : i32
    return %arg0, %c0_i32, %c0_i32_0, %c0_i32_1 : i32, i32, i32, i32
  }
}

</mosaic_0001>

<bundles_post_ra>
// kernel: tpu_custom_call.1
= control target key start
LH: loop header
LB: loop body
LE: loop exit
PB: predicated region body
PF: predicated region fallthrough
CT: control target
= control target key end

     0   :  { %12 = vsyncpa [#allocation5], 0  ;;  %s9868_s0 = inlined_call_operand.hbm [shape: f32[2,16,16,128], index: 0, kind: input, shape index: {}]   ;;  %s9869_s1 = inlined_call_operand.hbm [shape: bf16[9,128,128], index: 1, kind: input, shape index: {}]   ;;  %s9870_s2 = inlined_call_operand.hbm [shape: bf16[9,128,128], index: 2, kind: input, shape index: {}]   ;;  %s9871_s3 = inlined_call_operand.vmem [shape: f32[1,128], index: 3, kind: input, shape index: {}]   ;;  %s9872_s4 = inlined_call_operand.vmem [shape: f32[1,128], index: 4, kind: input, shape index: {}]   ;;  %s9873_s5 = inlined_call_operand.vmem [shape: f32[1,128], index: 5, kind: input, shape index: {}]   ;;  %s9874_s6 = inlined_call_operand.vmem [shape: f32[1,128], index: 6, kind: input, shape index: {}]   ;;  %s9875_s7 = inlined_call_operand.hbm [shape: f32[2,16,16,128], index: 7, kind: output, shape index: {}]  }
   0x1   :  { %14 = vsyncpa [#allocation5 + $0x1], 0 }
   0x2   :  { %15 = vsyncpa [#allocation8], 0 }
   0x3   :  { %16 = vsyncpa [#allocation6], 0 }
   0x4   :  { %18 = vsyncpa [#allocation6 + $0x1], 0  ;;  %s8741_s24 = smov 0   ;;  %s8743_s25 = smov 0  }
   0x5   :  { %s8745_s26 = smov 0   ;;  %s8747_s27 = smov 0  }
   0x6 LB: > { %s8762_s28 = sadd.s32 4294967295, %s8687_s27   ;;  %s6335_s29 = sadd.s32 4294967294, %s8687_s27   ;;  %s8687_s27 = sphi %s8747_s27, %s9895_s27   ;;  %s8683_s26 = sphi %s8745_s26, %s9894_s26   ;;  %s8679_s25 = sphi %s8743_s25, %s9893_s25   ;;  %s8675_s24 = sphi %s8741_s24, %s9892_s24  }
   0x7   : > { %p44_p0 = scmp.ne.s32.totalorder %s8679_s25, %s8675_s24  ;;  %p9876_p1 = scmp.eq.s32.totalorder %s8762_s28, 0 }
   0x8   : > { %p200_p3 = scmp.eq.s32.totalorder %s6335_s29, 1  ;;  %p6336_p5 = scmp.ge.s32.totalorder %s8687_s27, 1 }
   0x9   : > { %p8771_p4 = por %p9876_p1, %p44_p0  ;;  %p207_p7 = scmp.lt.s32.totalorder %s8687_s27, 3 }
   0xa   : > { %p8776_p6 = por %p200_p3, %p44_p0  ;;  %s8689_s10 = smov [#allocation7]  }
   0xb   : > { %s9879_s30 = scalar_select %p8771_p4, 1, 0 }
   0xc   : > { %s9880_s8 = scalar_select %p8776_p6, 1, 0 }
   0xd   : > { %p8781_p8 = pnand %p6336_p5, %p207_p7  ;;  %s219_s11 = sshll.u32 %s8689_s10, 4  ;;  %s8785_s11 = int_to_ptr.vmem [resolvable:$true] %s219_s11 }
   0xe   : > { %s8690_s13 = smov [#allocation9]   ;;  %s8531_s17 = scalar_lea.hbm %s9869_s1, 9216 }
   0xf   : > { %p8323_p9 = pneg %p8781_p8  ;;  %s232_s14 = sshll.u32 %s8690_s13, 4  ;;  %s8796_s14 = int_to_ptr.vmem [resolvable:$true] %s232_s14 }
  0x10   : > { %p8532_p12 = scmp.ne.s32.totalorder %s9869_s1, %s8531_s17  ;;  %p8538_p5 = scmp.lt.u32.totalorder %s8531_s17, %s9869_s1 }
  0x11   : > { %p8792_p11 = pnand %p8323_p9, %p9876_p1 }
  0x13   : > { %p8533_p13 = pneg %p8792_p11 }
  0x15   : > { %p8534_p0 = pnand %p8533_p13, %p8532_p12 }
  0x17   : > { %p8535_p3 = pneg %p8534_p0 }
  0x19   : > { %p8540_p7 = pnand %p8538_p5, %p8535_p3 }
  0x1b   : > { %8543 = shalt.err (!%p8540_p7)
}
  0x1c   : > { %s8544_s22 = scalar_lea.vmem %s8785_s11, 9216  ;;  %p8552_p2 = scmp.lt.s32.totalorder %s8785_s11, %s8785_s11 }
  0x1d   : > { %p8545_p9 = scmp.ne.s32.totalorder %s8785_s11, %s8544_s22  ;;  %p8553_p12 = scmp.lt.s32.totalorder %s8544_s22, %s8544_s22 }
  0x1f   : > { %p8547_p10 = pnand %p8545_p9, %p8533_p13  ;;  %p8554_p0 = por %p8553_p12, %p8552_p2 }
  0x21   : > { %p8548_p1 = pneg %p8547_p10 }
  0x23   : > { %p8555_p6 = pnand %p8554_p0, %p8548_p1 }
  0x25   : > { %8558 = shalt.err (!%p8555_p6)
}
  0x26   : > { %s8691_s23 = smov 64   ;;  %s8692_s29 = smov 4  }
  0x27   : > { %8326 = dma.hbm_to_vmem [thread:$0]  (!%p8792_p11), %s9869_s1, 9216, %s8785_s11, [#allocation8], %s8691_s23, %s8691_s23, %s8692_s29  }
  0x28   : > { %s8559_s17 = scalar_lea.hbm %s9870_s2, 9216 }
  0x29   : > { %p8560_p2 = scmp.ne.s32.totalorder %s9870_s2, %s8559_s17  ;;  %p8566_p10 = scmp.lt.u32.totalorder %s8559_s17, %s9870_s2 }
  0x2b   : > { %p8562_p1 = pnand %p8560_p2, %p8533_p13 }
  0x2d   : > { %p8563_p6 = pneg %p8562_p1 }
  0x2f   : > { %p8568_p3 = pnand %p8566_p10, %p8563_p6 }
  0x31   : > { %8571 = shalt.err (!%p8568_p3)
}
  0x32   : > { %s8572_s11 = scalar_lea.vmem %s8796_s14, 9216  ;;  %p8580_p12 = scmp.lt.s32.totalorder %s8796_s14, %s8796_s14 }
  0x33   : > { %p8573_p5 = scmp.ne.s32.totalorder %s8796_s14, %s8572_s11  ;;  %p8581_p0 = scmp.lt.s32.totalorder %s8572_s11, %s8572_s11 }
  0x35   : > { %p8575_p7 = pnand %p8573_p5, %p8533_p13  ;;  %p8582_p2 = por %p8581_p0, %p8580_p12 }
  0x37   : > { %p8576_p9 = pneg %p8575_p7 }
  0x39   : > { %p8583_p1 = pnand %p8582_p2, %p8576_p9 }
  0x3b   : > { %8586 = shalt.err (!%p8583_p1)
}
  0x3c   : > { %8329 = dma.hbm_to_vmem [thread:$0]  (!%p8792_p11), %s9870_s2, 9216, %s8796_s14, [#allocation8], %s8691_s23, %s8691_s23, %s8692_s29  }
  0x3d   : > { %s8851_s13 = sadd.s32 1, %s8687_s27   ;;  %s31_s12 = sadd.s32 1, %s8683_s26 }
  0x3e   : > { %s28_s15 = ssub.s32 %s8687_s27, %s8851_s13  ;;  %p38_p13 = scmp.ne.s32.totalorder %s8683_s26, %s8679_s25 }
  0x3f   : > { %p29_p6 = scmp.eq.s32.totalorder %s28_s15, 0  ;;  %p39_p10 = scmp.eq.s32.totalorder %s8687_s27, 0 }
  0x40   : > { %p9883_p3 = scmp.eq.s32.totalorder %s8762_s28, 1  ;;  %p8340_p7 = scmp.lt.s32.totalorder %s8687_s27, 2 }
  0x41   : > { %s8867_s17 = scalar_select %p29_p6, %s8683_s26, %s31_s12  }
  0x42   : > { %p8861_p5 = por %p9883_p3, %p38_p13  ;;  %p40_p9 = por %p39_p10, %p38_p13 }
  0x43   : > { %s258_s18 = sand.u32 1, %s8683_s26   ;;  %s6501_s14 = sshll.u32 %s8687_s27, 12 }
  0x44   : > { %s9884_s16 = scalar_select %p8861_p5, 1, 0 }
  0x45   : > { %s6340_s19 = sshll.u32 %s258_s18, 8  ;;  %s8874_s20 = scalar_lea.hbm %s9868_s0, %s6501_s14 }
  0x46   : > { %s262_s21 = scalar_lea.vmem [#allocation4], %s6340_s19  ;;  %p8878_p11 = pnand %p8340_p7, %p40_p9 }
  0x47   : > { %s269_s11 = sshll.u32 %s262_s21, 4  ;;  %s8882_s10 = scalar_lea.sflag [#allocation5], %s258_s18  ;;  %s8876_s11 = int_to_ptr.vmem [resolvable:$true] %s269_s11 }
  0x48   : > { %s8587_s12 = scalar_lea.hbm %s8874_s20, 4096  ;;  %p8589_p0 = pneg %p8878_p11 }
  0x49   : > { %p8588_p12 = scmp.ne.s32.totalorder %s8874_s20, %s8587_s12  ;;  %s8592_s14 = scalar_lea.hbm %s9868_s0, 8192 }
  0x4a   : > { %p8593_p13 = scmp.lt.u32.totalorder %s8874_s20, %s9868_s0  ;;  %p8594_p6 = scmp.lt.u32.totalorder %s8592_s14, %s8587_s12 }
  0x4b   : > { %p8590_p2 = pnand %p8589_p0, %p8588_p12  ;;  %p8596_p3 = scmp.lt.u32.totalorder %s8587_s12, %s8874_s20 }
  0x4c   : > { %p8595_p10 = por %p8594_p6, %p8593_p13 }
  0x4d   : > { %p8591_p1 = pneg %p8590_p2 }
  0x4e   : > { %p8597_p7 = por %p8596_p3, %p8595_p10 }
  0x50   : > { %p8598_p9 = pnand %p8597_p7, %p8591_p1 }
  0x52   : > { %8601 = shalt.err (!%p8598_p9)
}
  0x53   : > { %s8602_s18 = scalar_lea.vmem %s8876_s11, 4096  ;;  %s8693_s21 = smov [#allocation4]  }
  0x54   : > { %p8603_p12 = scmp.ne.s32.totalorder %s8876_s11, %s8602_s18  ;;  %s8607_s15 = sshll.u32 %s8693_s21, 4  ;;  %s8608_s15 = int_to_ptr.vmem [resolvable:$false] %s8607_s15 }
  0x55   : > { %s8609_s19 = scalar_lea.vmem %s8608_s15, 8192  ;;  %p8610_p4 = scmp.lt.s32.totalorder %s8876_s11, %s8608_s15 }
  0x56   : > { %p8605_p2 = pnand %p8603_p12, %p8589_p0  ;;  %p8611_p13 = scmp.lt.s32.totalorder %s8609_s19, %s8602_s18 }
  0x58   : > { %p8606_p5 = pneg %p8605_p2  ;;  %p8612_p6 = por %p8611_p13, %p8610_p4 }
  0x5a   : > { %p8613_p10 = pnand %p8612_p6, %p8606_p5 }
  0x5c   : > { %8616 = shalt.err (!%p8613_p10)
}
  0x5d   : > { %s8694_s12 = smov 128   ;;  %s8695_s14 = smov 8  }
  0x5e   : > { %8333 = dma.hbm_to_vmem [thread:$0]  (!%p8878_p11), %s8874_s20, 4096, %s8876_s11, %s8882_s10, %s8694_s12, %s8694_s12, %s8695_s14  }
  0x5f   : > { %281 = sbr.rel (%p8781_p8) target bundleno = 1680 (0x690), region = 48  ;;  %s8913_s23 = sand.u32 (!%p8781_p8), 1, %s8679_s25  }
  0x60   : > { %s6344_s29 = sshll.u32 (!%p8781_p8), %s8913_s23, 8  ;;  %s284_s18 = scalar_lea.sflag (!%p8781_p8), [#allocation5], %s8913_s23 }
  0x61   : > { %s8919_s21 = scalar_lea.vmem (!%p8781_p8), [#allocation4], %s6344_s29  ;;  %p9886_p4 = scmp.ne.s32.totalorder (!%p8781_p8), %s9879_s30, 0 }
  0x66   : > { %8662 = dma.done.wait (%p9886_p4), %s284_s18, 4096  }
  0x67   : > { %8664 = vsyncadd (%p9886_p4), %s284_s18, 4294963200  ;;  %p9887_p5 = scmp.eq.s32.totalorder %s8762_s28, 0 }
  0x69   : > { %8666 = dma.done.wait (%p9887_p5), [#allocation8], 18432   ;;  %p9888_p8 = pmov %p9887_p5 }
  0x6a   : > { %v8696_v0 = vmov 0.0   ;;  %v8385_v1 = vld [vmem:[#allocation7 + $0x40] sm:$0xff]   ;;  %v8386_v2 = vld [vmem:[#allocation7 + $0x48] sm:$0xff]   ;;  %v8387_v3 = vld [vmem:[#allocation7 + $0x50] sm:$0xff]   ;;  %s9699_s12 = scalar_lea.vmem [#allocation10], %s6344_s29  ;;  %s6502_s14 = sshll.u32 %s8762_s28, 12 }
  0x6b   : > { %8668 = vsyncadd (%p9888_p8), [#allocation8], 4294948864  ;;  %327 = vst [vmem:[#allocation2] sm:$0xff] %v8696_v0  ;;  %6935 = vmatprep.subr.bf16.mxu0 %v8385_v1  ;;  %v8388_v4 = vld [vmem:[#allocation7 + $0x58] sm:$0xff]   ;;  %v9038_v7 = vld [vmem:[%s8919_s21] sm:$0xff]  ;;  %s6243_s29 = sshll.u32 %s9699_s12, 4  ;;  %s9819_s9 = scalar_lea.hbm %s9875_s7, %s6502_s14  ;;  %s9821_s29 = int_to_ptr.vmem [resolvable:$true] %s6243_s29 }
  0x6c   : > { %328 = vst [vmem:[#allocation2 + $0x8] sm:$0xff] %v8696_v0  ;;  %329 = vst [vmem:[#allocation2 + $0x10] sm:$0x3] %v8696_v0  ;;  %6936 = vmatpush3.bf16.msra.mxu0 %v8385_v1  ;;  %v9041_v9 = vld [vmem:[%s8919_s21 + $0x8] sm:$0xff]  ;;  %v9046_v10 = vld [vmem:[%s8919_s21 + $0x10] sm:$0xff]  ;;  %s6230_s28 = scalar_lea.sflag [#allocation6], %s8913_s23 }
  0x6d   : > { %330 = vst [vmem:[#allocation2 + $0x18] sm:$0xff] %v8696_v0  ;;  %331 = vst [vmem:[#allocation2 + $0x20] sm:$0xff] %v8696_v0  ;;  %6937 = vmatprep.subr.bf16.mxu0 %v8386_v2  ;;  %v9049_v11 = vld [vmem:[%s8919_s21 + $0x18] sm:$0xff]  ;;  %v9054_v12 = vld [vmem:[%s8919_s21 + $0x20] sm:$0xff]  ;;  %v9147_v43 = vpack.c.bf16 %v9041_v9, %v9038_v7  ;;  %p9889_p0 = scmp.ne.s32.totalorder %s9884_s16, 0  ;;  %s8698_s20 = smov [#allocation10]  }
  0x6e   : > { %332 = vst [vmem:[#allocation2 + $0x28] sm:$0x3] %v8696_v0  ;;  %333 = vst [vmem:[#allocation2 + $0x30] sm:$0xff] %v8696_v0  ;;  %v9057_v13 = vld [vmem:[%s8919_s21 + $0x28] sm:$0xff]  ;;  %v8389_v14 = vld [vmem:[#allocation7 + $0x60] sm:$0xff]   ;;  %v9151_v44 = vpack.c.bf16 %v9049_v11, %v9046_v10  ;;  %s8621_s11 = sshll.u32 %s8698_s20, 4  ;;  %s8622_s11 = int_to_ptr.vmem [resolvable:$false] %s8621_s11 }
  0x6f   : > { %334 = vst [vmem:[#allocation2 + $0x38] sm:$0xff] %v8696_v0  ;;  %335 = vst [vmem:[#allocation2 + $0x40] sm:$0x3] %v8696_v0  ;;  %v9062_v15 = vld [vmem:[%s8919_s21 + $0x30] sm:$0xff]  ;;  %v9065_v16 = vld [vmem:[%s8919_s21 + $0x38] sm:$0xff]  ;;  %v9157_v47 = vpack.c.bf16 %v9057_v13, %v9054_v12  ;;  %s8623_s22 = scalar_lea.vmem %s8622_s11, 8192  ;;  %p8624_p7 = scmp.lt.s32.totalorder %s9821_s29, %s8622_s11 }
  0x70   : > { %336 = vst [vmem:[#allocation2 + $0x48] sm:$0xff] %v8696_v0  ;;  %337 = vst [vmem:[#allocation2 + $0x50] sm:$0xff] %v8696_v0  ;;  %6938 = vmatpush3.bf16.msra.mxu0 %v8386_v2  ;;  %v9069_v17 = vld [vmem:[%s8919_s21 + $0x40] sm:$0xff]  ;;  %v9072_v18 = vld [vmem:[%s8919_s21 + $0x48] sm:$0xff]  ;;  %v9161_v48 = vpack.c.bf16 %v9065_v16, %v9062_v15 }
  0x71   : > { %338 = vst [vmem:[#allocation2 + $0x58] sm:$0x3] %v8696_v0  ;;  %339 = vst [vmem:[#allocation2 + $0x60] sm:$0xff] %v8696_v0  ;;  %6939 = vmatprep.subr.bf16.mxu0 %v8387_v3  ;;  %v8390_v19 = vld [vmem:[#allocation7 + $0x68] sm:$0xff]   ;;  %v9078_v20 = vld [vmem:[%s8919_s21 + $0x50] sm:$0xff]  ;;  %v9167_v51 = vpack.c.bf16 %v9072_v18, %v9069_v17 }
  0x72   : > { %340 = vst [vmem:[#allocation2 + $0x68] sm:$0xff] %v8696_v0  ;;  %341 = vst [vmem:[#allocation2 + $0x70] sm:$0x3] %v8696_v0  ;;  %v9081_v21 = vld [vmem:[%s8919_s21 + $0x58] sm:$0xff]  ;;  %v9084_v22 = vld [vmem:[%s8919_s21 + $0x60] sm:$0xff] }
  0x73   : > { %342 = vst [vmem:[#allocation2 + $0x78] sm:$0xff] %v8696_v0  ;;  %343 = vst [vmem:[#allocation2 + $0x80] sm:$0xff] %v8696_v0  ;;  %v510_v5 = vld [vmem:[#allocation2 + $0x1] sm:$0xff]  ;;  %v511_v6 = vld [vmem:[#allocation2 + $0x9] sm:$0xff]  ;;  %v9171_v52 = vpack.c.bf16 %v9081_v21, %v9078_v20 }
  0x74   : > { %344 = vst [vmem:[#allocation2 + $0x88] sm:$0x3] %v8696_v0  ;;  %345 = vst [vmem:[#allocation2 + $0x90] sm:$0xff] %v8696_v0  ;;  %v542_v8 = vpack.c.bf16 %v511_v6, %v510_v5  ;;  %6940 = vmatpush3.bf16.msra.mxu0 %v8387_v3  ;;  %v9089_v23 = vld [vmem:[%s8919_s21 + $0x68] sm:$0xff]  ;;  %v9094_v24 = vld [vmem:[%s8919_s21 + $0x70] sm:$0xff]  ;;  %v8697_v6 = vmov 0.0|0.0  }
  0x75   : > { %346 = vst [vmem:[#allocation2 + $0x98] sm:$0xff] %v8696_v0  ;;  %347 = vst [vmem:[#allocation2 + $0xa0] sm:$0x3] %v8696_v0  ;;  %6941 = vmatprep.subr.bf16.mxu0 %v8388_v4  ;;  %v9097_v25 = vld [vmem:[%s8919_s21 + $0x78] sm:$0xff]  ;;  %v9102_v26 = vld [vmem:[%s8919_s21 + $0x80] sm:$0xff]  ;;  %v9177_v55 = vpack.c.bf16 %v9089_v23, %v9084_v22 }
  0x76   : > { %348 = vst [vmem:[#allocation2 + $0xa8] sm:$0xff] %v8696_v0  ;;  %349 = vst [vmem:[#allocation2 + $0xb0] sm:$0xff] %v8696_v0  ;;  %6951 = vmatprep.mubr.bf16.mxu0 %v542_v8  ;;  %v9105_v27 = vld [vmem:[%s8919_s21 + $0x88] sm:$0xff]  ;;  %v8391_v28 = vld [vmem:[#allocation7 + $0x70] sm:$0xff]   ;;  %v9181_v57 = vpack.c.bf16 %v9097_v25, %v9094_v24 }
  0x77   : > { %350 = vst [vmem:[#allocation2 + $0xb8] sm:$0x3] %v8696_v0  ;;  %351 = vst [vmem:[#allocation2 + $0xc0] sm:$0xff] %v8696_v0  ;;  %v9110_v29 = vld [vmem:[%s8919_s21 + $0x90] sm:$0xff]  ;;  %v9113_v30 = vld [vmem:[%s8919_s21 + $0x98] sm:$0xff]  ;;  %v9187_v59 = vpack.c.bf16 %v9105_v27, %v9102_v26 }
  0x78   : > { %352 = vst [vmem:[#allocation2 + $0xc8] sm:$0xff] %v8696_v0  ;;  %353 = vst [vmem:[#allocation2 + $0xd0] sm:$0x3] %v8696_v0  ;;  %6942 = vmatpush3.bf16.msra.mxu0 %v8388_v4  ;;  %v9117_v31 = vld [vmem:[%s8919_s21 + $0xa0] sm:$0xff]  ;;  %v9120_v32 = vld [vmem:[%s8919_s21 + $0xa8] sm:$0xff]  ;;  %v9191_v60 = vpack.c.bf16 %v9113_v30, %v9110_v29 }
  0x79   : > { %354 = vst [vmem:[#allocation2 + $0xd8] sm:$0xff] %v8696_v0  ;;  %355 = vst [vmem:[#allocation2 + $0xe0] sm:$0xff] %v8696_v0  ;;  %6943 = vmatprep.subr.bf16.mxu0 %v8389_v14  ;;  %v9126_v33 = vld [vmem:[%s8919_s21 + $0xb0] sm:$0xff]  ;;  %v9129_v34 = vld [vmem:[%s8919_s21 + $0xb8] sm:$0xff]  ;;  %v9197_v61 = vpack.c.bf16 %v9120_v32, %v9117_v31 }
  0x7a   : > { %356 = vst [vmem:[#allocation2 + $0xe8] sm:$0x3] %v8696_v0  ;;  %357 = vst [vmem:[#allocation2 + $0xf0] sm:$0xff] %v8696_v0  ;;  %v9132_v35 = vld [vmem:[%s8919_s21 + $0xc0] sm:$0xff]  ;;  %v9137_v36 = vld [vmem:[%s8919_s21 + $0xc8] sm:$0xff]  ;;  %v9201_v62 = vpack.c.bf16 %v9129_v34, %v9126_v33 }
  0x7b   : > { %358 = vst [vmem:[#allocation2 + $0xf8] sm:$0xff] %v8696_v0  ;;  %359 = vst [vmem:[#allocation2 + $0x100] sm:$0x3] %v8696_v0  ;;  %v8392_v37 = vld [vmem:[#allocation7 + $0x78] sm:$0xff]   ;;  %v407_v38 = vld [vmem:[%s8919_s21 + $0xd0] sm:$0xff]  ;;  %v9207_v63 = vpack.c.bf16 %v9137_v36, %v9132_v35 }
  0x7c   : > { %360 = vst [vmem:[#allocation2 + $0x108] sm:$0xff] %v8696_v0  ;;  %361 = vst [vmem:[#allocation2 + $0x110] sm:$0xff] %v8696_v0  ;;  %6944 = vmatpush3.bf16.msra.mxu0 %v8389_v14  ;;  %v408_v39 = vld [vmem:[%s8919_s21 + $0xd8] sm:$0xff]  ;;  %v409_v40 = vld [vmem:[%s8919_s21 + $0xe0] sm:$0xff] }
  0x7d   : > { %362 = vst [vmem:[#allocation2 + $0x118] sm:$0x3] %v8696_v0  ;;  %363 = vst [vmem:[#allocation2 + $0x120] sm:$0xff] %v8696_v0  ;;  %6945 = vmatprep.subr.bf16.mxu0 %v8390_v19  ;;  %v410_v41 = vld [vmem:[%s8919_s21 + $0xe8] sm:$0xff]  ;;  %v8393_v42 = vld [vmem:[#allocation7] sm:$0xff]  }
  0x7e   : > { %364 = vst [vmem:[#allocation2 + $0x128] sm:$0xff] %v8696_v0  ;;  %365 = vst [vmem:[#allocation2 + $0x130] sm:$0x3] %v8696_v0  ;;  %v8394_v45 = vld [vmem:[#allocation7 + $0x8] sm:$0xff]   ;;  %v8395_v46 = vld [vmem:[#allocation7 + $0x10] sm:$0xff]   ;;  %v9213_v1 = vpack.c.bf16 %v410_v41, %v409_v40 }
  0x7f   : > { %366 = vst [vmem:[#allocation2 + $0x138] sm:$0xff] %v8696_v0  ;;  %367 = vst [vmem:[#allocation2 + $0x140] sm:$0xff] %v8696_v0  ;;  %v8396_v49 = vld [vmem:[#allocation7 + $0x18] sm:$0xff]   ;;  %v8397_v50 = vld [vmem:[#allocation7 + $0x20] sm:$0xff]  }
  0x80   : > { %368 = vst [vmem:[#allocation2 + $0x148] sm:$0x3] %v8696_v0  ;;  %369 = vst [vmem:[#allocation2 + $0x150] sm:$0xff] %v8696_v0  ;;  %6946 = vmatpush3.bf16.msra.mxu0 %v8390_v19  ;;  %v8398_v53 = vld [vmem:[#allocation7 + $0x28] sm:$0xff]   ;;  %v8399_v54 = vld [vmem:[#allocation7 + $0x30] sm:$0xff]  }
  0x81   : > { %370 = vst [vmem:[#allocation2 + $0x158] sm:$0xff] %v8696_v0  ;;  %371 = vst [vmem:[#allocation2 + $0x160] sm:$0x3] %v8696_v0  ;;  %6947 = vmatprep.subr.bf16.mxu0 %v8391_v28  ;;  %v8400_v56 = vld [vmem:[#allocation7 + $0x38] sm:$0xff]   ;;  %v8401_v58 = vld [vmem:[#allocation7 + $0x80] sm:$0xff]  }
  0x82   : > { %372 = vst [vmem:[#allocation2 + $0x168] sm:$0xff] %v8696_v0  ;;  %373 = vst [vmem:[#allocation2 + $0x170] sm:$0xff] %v8696_v0  ;;  %v8402_v8 = vld [vmem:[#allocation7 + $0x88] sm:$0xff]   ;;  %v8403_v14 = vld [vmem:[#allocation7 + $0x90] sm:$0xff]  }
  0x83   : > { %374 = vst [vmem:[#allocation2 + $0x178] sm:$0x3] %v8696_v0  ;;  %375 = vst [vmem:[#allocation2 + $0x180] sm:$0xff] %v8696_v0 }
  0x84   : > { %376 = vst [vmem:[#allocation2 + $0x188] sm:$0xff] %v8696_v0  ;;  %377 = vst [vmem:[#allocation2 + $0x190] sm:$0x3] %v8696_v0  ;;  %6948 = vmatpush3.bf16.msra.mxu0 %v8391_v28 }
  0x85   : > { %378 = vst [vmem:[#allocation2 + $0x198] sm:$0xff] %v8696_v0  ;;  %379 = vst [vmem:[#allocation2 + $0x1a0] sm:$0xff] %v8696_v0  ;;  %6949 = vmatprep.subr.bf16.mxu0 %v8392_v37 }
  0x86   : > { %380 = vst [vmem:[#allocation2 + $0x1a8] sm:$0x3] %v8696_v0  ;;  %3246 = vst [vmem:[#allocation3] sm:$0xff] %v8696_v0 }
  0x87   : > { %3247 = vst [vmem:[#allocation3 + $0x8] sm:$0xff] %v8696_v0  ;;  %3248 = vst [vmem:[#allocation3 + $0x10] sm:$0x3] %v8696_v0 }
  0x88   : > { %3249 = vst [vmem:[#allocation3 + $0x18] sm:$0xff] %v8696_v0  ;;  %3250 = vst [vmem:[#allocation3 + $0x20] sm:$0xff] %v8696_v0  ;;  %6950 = vmatpush3.bf16.msra.mxu0 %v8392_v37 }
  0x89   : > { %3251 = vst [vmem:[#allocation3 + $0x28] sm:$0x3] %v8696_v0  ;;  %3252 = vst [vmem:[#allocation3 + $0x30] sm:$0xff] %v8696_v0  ;;  %6983 = vmatprep.subr.bf16.mxu0 %v8393_v42 }
  0x8a   : > { %3253 = vst [vmem:[#allocation3 + $0x38] sm:$0xff] %v8696_v0  ;;  %3254 = vst [vmem:[#allocation3 + $0x40] sm:$0x3] %v8696_v0 }
  0x8b   : > { %3255 = vst [vmem:[#allocation3 + $0x48] sm:$0xff] %v8696_v0  ;;  %3256 = vst [vmem:[#allocation3 + $0x50] sm:$0xff] %v8696_v0  ;;  %6952 = vmatmul.mubr.bf16.vlgmr.msra.gmra.mrb[0].mxu0 %v9147_v43 }
  0x8c   : > { %3257 = vst [vmem:[#allocation3 + $0x58] sm:$0x3] %v8696_v0  ;;  %3258 = vst [vmem:[#allocation3 + $0x60] sm:$0xff] %v8696_v0  ;;  %6984 = vmatpush3.bf16.msra.mxu0 %v8393_v42  ;;  %6955 = vmatprep.mubr.bf16.mxu0 %v9151_v44 }
  0x8d   : > { %3259 = vst [vmem:[#allocation3 + $0x68] sm:$0xff] %v8696_v0  ;;  %3260 = vst [vmem:[#allocation3 + $0x70] sm:$0x3] %v8696_v0  ;;  %6985 = vmatprep.subr.bf16.mxu0 %v8394_v45 }
  0x8e   : > { %3261 = vst [vmem:[#allocation3 + $0x78] sm:$0xff] %v8696_v0  ;;  %3262 = vst [vmem:[#allocation3 + $0x80] sm:$0xff] %v8696_v0 }
  0x8f   : > { %3263 = vst [vmem:[#allocation3 + $0x88] sm:$0x3] %v8696_v0  ;;  %3264 = vst [vmem:[#allocation3 + $0x90] sm:$0xff] %v8696_v0 }
  0x90   : > { %3265 = vst [vmem:[#allocation3 + $0x98] sm:$0xff] %v8696_v0  ;;  %3266 = vst [vmem:[#allocation3 + $0xa0] sm:$0x3] %v8696_v0  ;;  %6986 = vmatpush3.bf16.msra.mxu0 %v8394_v45 }
  0x91   : > { %3267 = vst [vmem:[#allocation3 + $0xa8] sm:$0xff] %v8696_v0  ;;  %3268 = vst [vmem:[#allocation3 + $0xb0] sm:$0xff] %v8696_v0  ;;  %6987 = vmatprep.subr.bf16.mxu0 %v8395_v46 }
  0x92   : > { %3269 = vst [vmem:[#allocation3 + $0xb8] sm:$0x3] %v8696_v0  ;;  %3270 = vst [vmem:[#allocation3 + $0xc0] sm:$0xff] %v8696_v0 }
  0x93   : > { %3271 = vst [vmem:[#allocation3 + $0xc8] sm:$0xff] %v8696_v0  ;;  %3272 = vst [vmem:[#allocation3 + $0xd0] sm:$0x3] %v8696_v0  ;;  %6956 = vmatmul.mubr.bf16.gmra.mrb[4].mxu0 %v9157_v47 }
  0x94   : > { %3273 = vst [vmem:[#allocation3 + $0xd8] sm:$0xff] %v8696_v0  ;;  %3274 = vst [vmem:[#allocation3 + $0xe0] sm:$0xff] %v8696_v0  ;;  %6959 = vmatprep.mubr.bf16.mxu0 %v9161_v48  ;;  %6988 = vmatpush3.bf16.msra.mxu0 %v8395_v46 }
  0x95   : > { %3275 = vst [vmem:[#allocation3 + $0xe8] sm:$0x3] %v8696_v0  ;;  %3276 = vst [vmem:[#allocation3 + $0xf0] sm:$0xff] %v8696_v0  ;;  %6989 = vmatprep.subr.bf16.mxu0 %v8396_v49 }
  0x96   : > { %3277 = vst [vmem:[#allocation3 + $0xf8] sm:$0xff] %v8696_v0  ;;  %3278 = vst [vmem:[#allocation3 + $0x100] sm:$0x3] %v8696_v0 }
  0x97   : > { %3279 = vst [vmem:[#allocation3 + $0x108] sm:$0xff] %v8696_v0  ;;  %3280 = vst [vmem:[#allocation3 + $0x110] sm:$0xff] %v8696_v0 }
  0x98   : > { %3281 = vst [vmem:[#allocation3 + $0x118] sm:$0x3] %v8696_v0  ;;  %3282 = vst [vmem:[#allocation3 + $0x120] sm:$0xff] %v8696_v0  ;;  %6990 = vmatpush3.bf16.msra.mxu0 %v8396_v49 }
  0x99   : > { %3283 = vst [vmem:[#allocation3 + $0x128] sm:$0xff] %v8696_v0  ;;  %3284 = vst [vmem:[#allocation3 + $0x130] sm:$0x3] %v8696_v0  ;;  %6991 = vmatprep.subr.bf16.mxu0 %v8397_v50 }
  0x9a   : > { %3285 = vst [vmem:[#allocation3 + $0x138] sm:$0xff] %v8696_v0  ;;  %3286 = vst [vmem:[#allocation3 + $0x140] sm:$0xff] %v8696_v0 }
  0x9b   : > { %3287 = vst [vmem:[#allocation3 + $0x148] sm:$0x3] %v8696_v0  ;;  %3288 = vst [vmem:[#allocation3 + $0x150] sm:$0xff] %v8696_v0  ;;  %6960 = vmatmul.mubr.bf16.gmra.mrb[8].mxu0 %v9167_v51 }
  0x9c   : > { %3289 = vst [vmem:[#allocation3 + $0x158] sm:$0xff] %v8696_v0  ;;  %3290 = vst [vmem:[#allocation3 + $0x160] sm:$0x3] %v8696_v0  ;;  %6963 = vmatprep.mubr.bf16.mxu0 %v9171_v52  ;;  %6992 = vmatpush3.bf16.msra.mxu0 %v8397_v50 }
  0x9d   : > { %3291 = vst [vmem:[#allocation3 + $0x168] sm:$0xff] %v8696_v0  ;;  %3292 = vst [vmem:[#allocation3 + $0x170] sm:$0xff] %v8696_v0  ;;  %6993 = vmatprep.subr.bf16.mxu0 %v8398_v53 }
  0x9e   : > { %3293 = vst [vmem:[#allocation3 + $0x178] sm:$0x3] %v8696_v0  ;;  %3294 = vst [vmem:[#allocation3 + $0x180] sm:$0xff] %v8696_v0 }
  0x9f   : > { %3295 = vst [vmem:[#allocation3 + $0x188] sm:$0xff] %v8696_v0  ;;  %3296 = vst [vmem:[#allocation3 + $0x190] sm:$0x3] %v8696_v0 }
  0xa0   : > { %3297 = vst [vmem:[#allocation3 + $0x198] sm:$0xff] %v8696_v0  ;;  %3298 = vst [vmem:[#allocation3 + $0x1a0] sm:$0xff] %v8696_v0  ;;  %6994 = vmatpush3.bf16.msra.mxu0 %v8398_v53 }
  0xa1   : > { %3299 = vst [vmem:[#allocation3 + $0x1a8] sm:$0x3] %v8696_v0  ;;  %414 = vst [vmem:[#allocation2 + $0x19] sm:$0xff] %v9038_v7  ;;  %6995 = vmatprep.subr.bf16.mxu0 %v8399_v54  ;;  %v9209_v0 = vpack.c.bf16 %v408_v39, %v407_v38 }
  0xa2   : > { %415 = vst [vmem:[#allocation2 + $0x21] sm:$0xff] %v9041_v9  ;;  %416 = vst [vmem:[#allocation2 + $0x31] sm:$0xff] %v9046_v10 }
  0xa3   : > { %417 = vst [vmem:[#allocation2 + $0x39] sm:$0xff] %v9049_v11  ;;  %418 = vst [vmem:[#allocation2 + $0x49] sm:$0xff] %v9054_v12  ;;  %6964 = vmatmul.mubr.bf16.gmra.mrb[12].mxu0 %v9177_v55 }
  0xa4   : > { %419 = vst [vmem:[#allocation2 + $0x51] sm:$0xff] %v9057_v13  ;;  %420 = vst [vmem:[#allocation2 + $0x61] sm:$0xff] %v9062_v15  ;;  %6967 = vmatprep.mubr.bf16.mxu0 %v9181_v57  ;;  %6996 = vmatpush3.bf16.msra.mxu0 %v8399_v54 }
  0xa5   : > { %421 = vst [vmem:[#allocation2 + $0x69] sm:$0xff] %v9065_v16  ;;  %422 = vst [vmem:[#allocation2 + $0x79] sm:$0xff] %v9069_v17  ;;  %6997 = vmatprep.subr.bf16.mxu0 %v8400_v56  ;;  %v8404_v16 = vld [vmem:[#allocation7 + $0x98] sm:$0xff]  }
  0xa6   : > { %423 = vst [vmem:[#allocation2 + $0x81] sm:$0xff] %v9072_v18  ;;  %424 = vst [vmem:[#allocation2 + $0x91] sm:$0xff] %v9078_v20 }
  0xa7   : > { %425 = vst [vmem:[#allocation2 + $0x99] sm:$0xff] %v9081_v21  ;;  %426 = vst [vmem:[#allocation2 + $0xa9] sm:$0xff] %v9084_v22  ;;  %v8405_v22 = vld [vmem:[#allocation7 + $0xa0] sm:$0xff]  }
  0xa8   : > { %427 = vst [vmem:[#allocation2 + $0xb1] sm:$0xff] %v9089_v23  ;;  %428 = vst [vmem:[#allocation2 + $0xc1] sm:$0xff] %v9094_v24  ;;  %6998 = vmatpush3.bf16.msra.mxu0 %v8400_v56  ;;  %v448_v2 = vld [vmem:[#allocation2 + $0x18] sm:$0xff]  ;;  %v8406_v24 = vld [vmem:[#allocation7 + $0xa8] sm:$0xff]  }
  0xa9   : > { %429 = vst [vmem:[#allocation2 + $0xc9] sm:$0xff] %v9097_v25  ;;  %430 = vst [vmem:[#allocation2 + $0xd9] sm:$0xff] %v9102_v26  ;;  %7031 = vmatprep.subr.bf16.mxu0 %v8401_v58  ;;  %v449_v3 = vld [vmem:[#allocation2 + $0x20] sm:$0xff]  ;;  %v450_v4 = vld [vmem:[#allocation2 + $0x30] sm:$0xff] }
  0xaa   : > { %431 = vst [vmem:[#allocation2 + $0xe1] sm:$0xff] %v9105_v27  ;;  %432 = vst [vmem:[#allocation2 + $0xf1] sm:$0xff] %v9110_v29  ;;  %v451_v5 = vld [vmem:[#allocation2 + $0x38] sm:$0xff]  ;;  %v9216_v7 = vpack.c.bf16 %v449_v3, %v448_v2  ;;  %v452_v10 = vld [vmem:[#allocation2 + $0x48] sm:$0xff] }
  0xab   : > { %433 = vst [vmem:[#allocation2 + $0xf9] sm:$0xff] %v9113_v30  ;;  %434 = vst [vmem:[#allocation2 + $0x109] sm:$0xff] %v9117_v31  ;;  %6968 = vmatmul.mubr.bf16.gmra.mrb[16].mxu0 %v9187_v59  ;;  %v9218_v9 = vpack.c.bf16 %v451_v5, %v450_v4  ;;  %v453_v11 = vld [vmem:[#allocation2 + $0x50] sm:$0xff]  ;;  %v454_v12 = vld [vmem:[#allocation2 + $0x60] sm:$0xff] }
  0xac   : > { %435 = vst [vmem:[#allocation2 + $0x111] sm:$0xff] %v9120_v32  ;;  %436 = vst [vmem:[#allocation2 + $0x121] sm:$0xff] %v9126_v33  ;;  %6971 = vmatprep.mubr.bf16.mxu0 %v9191_v60  ;;  %v455_v13 = vld [vmem:[#allocation2 + $0x68] sm:$0xff]  ;;  %v9222_v15 = vpack.c.bf16 %v453_v11, %v452_v10  ;;  %v456_v18 = vld [vmem:[#allocation2 + $0x78] sm:$0xff] }
  0xad   : > { %437 = vst [vmem:[#allocation2 + $0x129] sm:$0xff] %v9129_v34  ;;  %438 = vst [vmem:[#allocation2 + $0x139] sm:$0xff] %v9132_v35  ;;  %v9224_v17 = vpack.c.bf16 %v455_v13, %v454_v12  ;;  %v457_v19 = vld [vmem:[#allocation2 + $0x80] sm:$0xff]  ;;  %v458_v20 = vld [vmem:[#allocation2 + $0x90] sm:$0xff] }
  0xae   : > { %439 = vst [vmem:[#allocation2 + $0x141] sm:$0xff] %v9137_v36  ;;  %440 = vst [vmem:[#allocation2 + $0x151] sm:$0xff] %v407_v38  ;;  %v459_v21 = vld [vmem:[#allocation2 + $0x98] sm:$0xff]  ;;  %v9228_v23 = vpack.c.bf16 %v457_v19, %v456_v18  ;;  %v460_v26 = vld [vmem:[#allocation2 + $0xa8] sm:$0xff] }
  0xaf   : > { %441 = vst [vmem:[#allocation2 + $0x159] sm:$0xff] %v408_v39  ;;  %442 = vst [vmem:[#allocation2 + $0x169] sm:$0xff] %v409_v40  ;;  %v9230_v25 = vpack.c.bf16 %v459_v21, %v458_v20  ;;  %v461_v27 = vld [vmem:[#allocation2 + $0xb0] sm:$0xff]  ;;  %v462_v28 = vld [vmem:[#allocation2 + $0xc0] sm:$0xff] }
  0xb0   : > { %443 = vst [vmem:[#allocation2 + $0x171] sm:$0xff] %v410_v41  ;;  %v463_v29 = vld [vmem:[#allocation2 + $0xc8] sm:$0xff]  ;;  %v8407_v30 = vld [vmem:[#allocation7 + $0xb0] sm:$0xff]   ;;  %v9234_v31 = vpack.c.bf16 %v461_v27, %v460_v26  ;;  %v8408_v32 = vld [vmem:[#allocation7 + $0xb8] sm:$0xff]  }
  0xb1   : > { %v9236_v33 = vpack.c.bf16 %v463_v29, %v462_v28  ;;  %v464_v34 = vld [vmem:[#allocation2 + $0xd8] sm:$0xff]  ;;  %v465_v35 = vld [vmem:[#allocation2 + $0xe0] sm:$0xff]  ;;  %v466_v36 = vld [vmem:[#allocation2 + $0xf0] sm:$0xff] }
  0xb2   : > { %v467_v37 = vld [vmem:[#allocation2 + $0xf8] sm:$0xff]  ;;  %v8409_v38 = vld [vmem:[#allocation7 + $0xc0] sm:$0xff]   ;;  %v9240_v39 = vpack.c.bf16 %v465_v35, %v464_v34  ;;  %v468_v41 = vld [vmem:[#allocation2 + $0x108] sm:$0xff] }
  0xb3   : > { %6972 = vmatmul.mubr.bf16.gmra.mrb[20].mxu0 %v9197_v61  ;;  %v9242_v40 = vpack.c.bf16 %v467_v37, %v466_v36  ;;  %v469_v42 = vld [vmem:[#allocation2 + $0x110] sm:$0xff]  ;;  %v470_v45 = vld [vmem:[#allocation2 + $0x120] sm:$0xff]  ;;  %v9260_v5 = vld [vmem:[%s8919_s21 + $0xf8] sm:$0xff] }
  0xb4   : > { %6975 = vmatprep.mubr.bf16.mxu0 %v9201_v62  ;;  %v471_v46 = vld [vmem:[#allocation2 + $0x128] sm:$0xff]  ;;  %v9246_v49 = vpack.c.bf16 %v469_v42, %v468_v41  ;;  %v472_v53 = vld [vmem:[#allocation2 + $0x138] sm:$0xff]  ;;  %v9257_v4 = vld [vmem:[%s8919_s21 + $0xf0] sm:$0xff]  ;;  %445 = vst [vmem:[#allocation2 + $0x189] sm:$0xff] %v9260_v5 }
  0xb5   : > { %v9248_v50 = vpack.c.bf16 %v471_v46, %v470_v45  ;;  %v473_v54 = vld [vmem:[#allocation2 + $0x140] sm:$0xff]  ;;  %v474_v56 = vld [vmem:[#allocation2 + $0x150] sm:$0xff]  ;;  %444 = vst [vmem:[#allocation2 + $0x181] sm:$0xff] %v9257_v4  ;;  %v8412_v34 = vld [vmem:[#allocation7 + $0xd8] sm:$0xff]  }
  0xb6   : > { %v9252_v2 = vpack.c.bf16 %v473_v54, %v472_v53  ;;  %v993_v10 = vld [vmem:[#allocation2 + $0x2] sm:$0xff]  ;;  %v994_v11 = vld [vmem:[#allocation2 + $0xa] sm:$0xff]  ;;  %v997_v18 = vld [vmem:[#allocation2 + $0x32] sm:$0xff] }
  0xb7   : > { %v1025_v13 = vpack.c.bf16 %v994_v11, %v993_v10  ;;  %v998_v19 = vld [vmem:[#allocation2 + $0x3a] sm:$0xff]  ;;  %v1000_v26 = vld [vmem:[#allocation2 + $0x52] sm:$0xff]  ;;  %v1001_v27 = vld [vmem:[#allocation2 + $0x62] sm:$0xff] }
  0xb8   : > { %v9271_v21 = vpack.c.bf16 %v998_v19, %v997_v18  ;;  %v1002_v28 = vld [vmem:[#allocation2 + $0x6a] sm:$0xff]  ;;  %v1003_v35 = vld [vmem:[#allocation2 + $0x7a] sm:$0xff]  ;;  %v1004_v36 = vld [vmem:[#allocation2 + $0x82] sm:$0xff] }
  0xb9   : > { %v8411_v29 = vld [vmem:[#allocation7 + $0xd0] sm:$0xff]   ;;  %v8413_v41 = vld [vmem:[#allocation7 + $0xe0] sm:$0xff]   ;;  %v9281_v42 = vpack.c.bf16 %v1004_v36, %v1003_v35  ;;  %v8414_v46 = vld [vmem:[#allocation7 + $0xe8] sm:$0xff]  }
  0xba   : > { %v1005_v37 = vld [vmem:[#allocation2 + $0x92] sm:$0xff]  ;;  %v1007_v53 = vld [vmem:[#allocation2 + $0xaa] sm:$0xff]  ;;  %v1014_v18 = vld [vmem:[#allocation2 + $0xfa] sm:$0xff] }
  0xbb   : > { %6976 = vmatmul.mubr.bf16.gmra.mrb[24].mxu0 %v9207_v63  ;;  %v1008_v54 = vld [vmem:[#allocation2 + $0xb2] sm:$0xff]  ;;  %v8417_v19 = vld [vmem:[#allocation7 + $0x100] sm:$0xff]  }
  0xbc   : > { %6979 = vmatprep.mubr.bf16.mxu0 %v9209_v0  ;;  %v8416_v11 = vld [vmem:[#allocation7 + $0xf8] sm:$0xff]  }
  0xbd   : > { %v1019_v36 = vld [vmem:[#allocation2 + $0x13a] sm:$0xff] }
  0xc3   : > { %6980 = vmatmul.mubr.bf16.gmra.mrb[28].mxu0 %v9213_v1 }
  0xc4   : > { %6999 = vmatprep.mubr.bf16.mxu0 %v8697_v6  ;;  %v476_v6 = vld [vmem:[#allocation2 + $0x168] sm:$0xff] }
  0xcb   : > { %7000 = vmatmul.mubr.bf16.vlgmr.msra.gmra.mrb[0].mxu0 %v9216_v7 }
  0xcc   : > { %7032 = vmatpush3.bf16.msra.mxu0 %v8401_v58  ;;  %7003 = vmatprep.mubr.bf16.mxu0 %v9218_v9  ;;  %v475_v58 = vld [vmem:[#allocation2 + $0x158] sm:$0xff] }
  0xcd   : > { %7033 = vmatprep.subr.bf16.mxu0 %v8402_v8  ;;  %v9254_v3 = vpack.c.bf16 %v475_v58, %v474_v56  ;;  %v1009_v56 = vld [vmem:[#allocation2 + $0xc2] sm:$0xff]  ;;  %v1010_v58 = vld [vmem:[#allocation2 + $0xca] sm:$0xff] }
  0xce   : > { %v9289_v10 = vpack.c.bf16 %v1010_v58, %v1009_v56  ;;  %v1024_v56 = vld [vmem:[#allocation2 + $0x172] sm:$0xff] }
  0xd0   : > { %7034 = vmatpush3.bf16.msra.mxu0 %v8402_v8  ;;  %v477_v8 = vld [vmem:[#allocation2 + $0x170] sm:$0xff] }
  0xd1   : > { %7035 = vmatprep.subr.bf16.mxu0 %v8403_v14  ;;  %v9266_v12 = vpack.c.bf16 %v477_v8, %v476_v6  ;;  %v8415_v6 = vld [vmem:[#allocation7 + $0xf0] sm:$0xff]   ;;  %v9287_v8 = vpack.c.bf16 %v1008_v54, %v1007_v53 }
  0xd2   : > { %v1023_v54 = vld [vmem:[#allocation2 + $0x16a] sm:$0xff] }
  0xd3   : > { %7004 = vmatmul.mubr.bf16.gmra.mrb[4].mxu0 %v9222_v15  ;;  %v9311_v58 = vpack.c.bf16 %v1024_v56, %v1023_v54  ;;  %v8452_v54 = vld [vmem:[#allocation7 + $0x218] sm:$0xff]   ;;  %v2534_v56 = vld [vmem:[#allocation2 + $0xa9] sm:$0xff] }
  0xd4   : > { %7007 = vmatprep.mubr.bf16.mxu0 %v9224_v17  ;;  %7036 = vmatpush3.bf16.msra.mxu0 %v8403_v14  ;;  %v995_v14 = vld [vmem:[#allocation2 + $0x1a] sm:$0xff] }
  0xd5   : > { %7037 = vmatprep.subr.bf16.mxu0 %v8404_v16 }
  0xd8   : > { %7038 = vmatpush3.bf16.msra.mxu0 %v8404_v16  ;;  %v996_v16 = vld [vmem:[#allocation2 + $0x22] sm:$0xff] }
  0xd9   : > { %7039 = vmatprep.subr.bf16.mxu0 %v8405_v22  ;;  %v9269_v20 = vpack.c.bf16 %v996_v16, %v995_v14  ;;  %v1012_v14 = vld [vmem:[#allocation2 + $0xe2] sm:$0xff]  ;;  %v1013_v16 = vld [vmem:[#allocation2 + $0xf2] sm:$0xff] }
  0xdb   : > { %7008 = vmatmul.mubr.bf16.gmra.mrb[8].mxu0 %v9228_v23 }
  0xdc   : > { %7011 = vmatprep.mubr.bf16.mxu0 %v9230_v25  ;;  %7040 = vmatpush3.bf16.msra.mxu0 %v8405_v22  ;;  %v8410_v22 = vld [vmem:[#allocation7 + $0xc8] sm:$0xff]  }
  0xdd   : > { %7041 = vmatprep.subr.bf16.mxu0 %v8406_v24 }
  0xe0   : > { %7042 = vmatpush3.bf16.msra.mxu0 %v8406_v24  ;;  %v999_v24 = vld [vmem:[#allocation2 + $0x4a] sm:$0xff] }
  0xe1   : > { %7043 = vmatprep.subr.bf16.mxu0 %v8407_v30 }
  0xe3   : > { %7012 = vmatmul.mubr.bf16.gmra.mrb[12].mxu0 %v9234_v31 }
  0xe4   : > { %7015 = vmatprep.mubr.bf16.mxu0 %v9236_v33  ;;  %7044 = vmatpush3.bf16.msra.mxu0 %v8407_v30  ;;  %v9275_v30 = vpack.c.bf16 %v1000_v26, %v999_v24  ;;  %v9295_v24 = vpack.c.bf16 %v1014_v18, %v1013_v16  ;;  %v1015_v26 = vld [vmem:[#allocation2 + $0x10a] sm:$0xff]  ;;  %v8424_v18 = vld [vmem:[#allocation7 + $0x138] sm:$0xff]  }
  0xe5   : > { %7045 = vmatprep.subr.bf16.mxu0 %v8408_v32  ;;  %v8423_v16 = vld [vmem:[#allocation7 + $0x130] sm:$0xff]  }
  0xe8   : > { %7046 = vmatpush3.bf16.msra.mxu0 %v8408_v32  ;;  %v9277_v32 = vpack.c.bf16 %v1002_v28, %v1001_v27  ;;  %v1016_v27 = vld [vmem:[#allocation2 + $0x112] sm:$0xff]  ;;  %v1017_v28 = vld [vmem:[#allocation2 + $0x122] sm:$0xff] }
  0xe9   : > { %7079 = vmatprep.subr.bf16.mxu0 %v8409_v38 }
  0xeb   : > { %7016 = vmatmul.mubr.bf16.gmra.mrb[16].mxu0 %v9240_v39 }
  0xec   : > { %7019 = vmatprep.mubr.bf16.mxu0 %v9242_v40 }
  0xf3   : > { %7020 = vmatmul.mubr.bf16.gmra.mrb[20].mxu0 %v9246_v49 }
  0xf4   : > { %7023 = vmatprep.mubr.bf16.mxu0 %v9248_v50 }
  0xfb   : > { %7024 = vmatmul.mubr.bf16.gmra.mrb[24].mxu0 %v9252_v2 }
  0xfc   : > { %7027 = vmatprep.mubr.bf16.mxu0 %v9254_v3 }
 0x103   : > { %7028 = vmatmul.mubr.bf16.gmra.mrb[28].mxu0 %v9266_v12 }
 0x104   : > { %7047 = vmatprep.mubr.bf16.mxu0 %v1025_v13  ;;  %v1011_v13 = vld [vmem:[#allocation2 + $0xda] sm:$0xff] }
 0x10b   : > { %7048 = vmatmul.mubr.bf16.vlgmr.msra.gmra.mrb[0].mxu0 %v9269_v20 }
 0x10c   : > { %7080 = vmatpush3.bf16.msra.mxu0 %v8409_v38  ;;  %7051 = vmatprep.mubr.bf16.mxu0 %v9271_v21  ;;  %v1006_v38 = vld [vmem:[#allocation2 + $0x9a] sm:$0xff] }
 0x10d   : > { %7081 = vmatprep.subr.bf16.mxu0 %v8410_v22  ;;  %v9283_v45 = vpack.c.bf16 %v1006_v38, %v1005_v37  ;;  %v1020_v37 = vld [vmem:[#allocation2 + $0x142] sm:$0xff]  ;;  %v1021_v38 = vld [vmem:[#allocation2 + $0x152] sm:$0xff] }
 0x110   : > { %7082 = vmatpush3.bf16.msra.mxu0 %v8410_v22  ;;  %v9293_v22 = vpack.c.bf16 %v1012_v14, %v1011_v13  ;;  %v8420_v13 = vld [vmem:[#allocation7 + $0x118] sm:$0xff]   ;;  %v8421_v14 = vld [vmem:[#allocation7 + $0x120] sm:$0xff]  }
 0x111   : > { %7083 = vmatprep.subr.bf16.mxu0 %v8411_v29 }
 0x113   : > { %7052 = vmatmul.mubr.bf16.gmra.mrb[4].mxu0 %v9275_v30 }
 0x114   : > { %7055 = vmatprep.mubr.bf16.mxu0 %v9277_v32  ;;  %7084 = vmatpush3.bf16.msra.mxu0 %v8411_v29  ;;  %v1018_v29 = vld [vmem:[#allocation2 + $0x12a] sm:$0xff] }
 0x115   : > { %7085 = vmatprep.subr.bf16.mxu0 %v8412_v34  ;;  %v9301_v35 = vpack.c.bf16 %v1018_v29, %v1017_v28  ;;  %v8426_v29 = vld [vmem:[#allocation7 + $0x148] sm:$0xff]  }
 0x118   : > { %7086 = vmatpush3.bf16.msra.mxu0 %v8412_v34  ;;  %v9299_v34 = vpack.c.bf16 %v1016_v27, %v1015_v26  ;;  %v1329_v26 = vld [vmem:[#allocation2 + $0x180] sm:$0xff]  ;;  %v1330_v27 = vld [vmem:[#allocation2 + $0x188] sm:$0xff] }
 0x119   : > { %7087 = vmatprep.subr.bf16.mxu0 %v8413_v41  ;;  %v9329_v28 = vpack.c.bf16 %v1330_v27, %v1329_v26  ;;  %v2540_v26 = vld [vmem:[#allocation2 + $0xf1] sm:$0xff]  ;;  %v2541_v27 = vld [vmem:[#allocation2 + $0xf9] sm:$0xff] }
 0x11b   : > { %7056 = vmatmul.mubr.bf16.gmra.mrb[8].mxu0 %v9281_v42 }
 0x11c   : > { %7059 = vmatprep.mubr.bf16.mxu0 %v9283_v45  ;;  %7088 = vmatpush3.bf16.msra.mxu0 %v8413_v41  ;;  %v1022_v41 = vld [vmem:[#allocation2 + $0x15a] sm:$0xff] }
 0x11d   : > { %7089 = vmatprep.subr.bf16.mxu0 %v8414_v46  ;;  %v9307_v53 = vpack.c.bf16 %v1022_v41, %v1021_v38  ;;  %v8429_v38 = vld [vmem:[#allocation7 + $0x160] sm:$0xff]   ;;  %v8451_v41 = vld [vmem:[#allocation7 + $0x210] sm:$0xff]  }
 0x120   : > { %7090 = vmatpush3.bf16.msra.mxu0 %v8414_v46  ;;  %v9305_v46 = vpack.c.bf16 %v1020_v37, %v1019_v36  ;;  %v8427_v36 = vld [vmem:[#allocation7 + $0x150] sm:$0xff]   ;;  %v8428_v37 = vld [vmem:[#allocation7 + $0x158] sm:$0xff]  }
 0x121   : > { %7091 = vmatprep.subr.bf16.mxu0 %v8415_v6 }
 0x123   : > { %7060 = vmatmul.mubr.bf16.gmra.mrb[12].mxu0 %v9287_v8 }
 0x124   : > { %7063 = vmatprep.mubr.bf16.mxu0 %v9289_v10  ;;  %7092 = vmatpush3.bf16.msra.mxu0 %v8415_v6  ;;  %v8418_v6 = vld [vmem:[#allocation7 + $0x108] sm:$0xff]  }
 0x125   : > { %7093 = vmatprep.subr.bf16.mxu0 %v8416_v11 }
 0x128   : > { %7094 = vmatpush3.bf16.msra.mxu0 %v8416_v11  ;;  %v8419_v11 = vld [vmem:[#allocation7 + $0x110] sm:$0xff]  }
 0x129   : > { %7127 = vmatprep.subr.bf16.mxu0 %v8417_v19 }
 0x12b   : > { %7064 = vmatmul.mubr.bf16.gmra.mrb[16].mxu0 %v9293_v22 }
 0x12c   : > { %7067 = vmatprep.mubr.bf16.mxu0 %v9295_v24 }
 0x133   : > { %7068 = vmatmul.mubr.bf16.gmra.mrb[20].mxu0 %v9299_v34 }
 0x134   : > { %7071 = vmatprep.mubr.bf16.mxu0 %v9301_v35 }
 0x13b   : > { %7072 = vmatmul.mubr.bf16.gmra.mrb[24].mxu0 %v9305_v46 }
 0x13c   : > { %7075 = vmatprep.mubr.bf16.mxu0 %v9307_v53 }
 0x143   : > { %7076 = vmatmul.mubr.bf16.gmra.mrb[28].mxu0 %v9311_v58 }
 0x144   : > { %7095 = vmatprep.mubr.bf16.mxu0 %v9216_v7  ;;  %v8422_v7 = vld [vmem:[#allocation7 + $0x128] sm:$0xff]  }
 0x14b   : > { %7096 = vmatmul.mubr.bf16.vlgmr.msra.gmra.mrb[0].mxu0 %v9218_v9 }
 0x14c   : > { %7128 = vmatpush3.bf16.msra.mxu0 %v8417_v19  ;;  %7099 = vmatprep.mubr.bf16.mxu0 %v9222_v15  ;;  %v8425_v19 = vld [vmem:[#allocation7 + $0x140] sm:$0xff]  }
 0x14d   : > { %7129 = vmatprep.subr.bf16.mxu0 %v8418_v6 }
 0x150   : > { %7130 = vmatpush3.bf16.msra.mxu0 %v8418_v6  ;;  %v2536_v6 = vld [vmem:[#allocation2 + $0xc1] sm:$0xff] }
 0x151   : > { %7131 = vmatprep.subr.bf16.mxu0 %v8419_v11 }
 0x153   : > { %7100 = vmatmul.mubr.bf16.gmra.mrb[4].mxu0 %v9224_v17 }
 0x154   : > { %7103 = vmatprep.mubr.bf16.mxu0 %v9228_v23  ;;  %7132 = vmatpush3.bf16.msra.mxu0 %v8419_v11  ;;  %v2537_v11 = vld [vmem:[#allocation2 + $0xc9] sm:$0xff] }
 0x155   : > { %7133 = vmatprep.subr.bf16.mxu0 %v8420_v13 }
 0x158   : > { %7134 = vmatpush3.bf16.msra.mxu0 %v8420_v13  ;;  %v8453_v13 = vld [vmem:[#allocation7 + $0x220] sm:$0xff]  }
 0x159   : > { %7135 = vmatprep.subr.bf16.mxu0 %v8421_v14 }
 0x15b   : > { %7104 = vmatmul.mubr.bf16.gmra.mrb[8].mxu0 %v9230_v25 }
 0x15c   : > { %7107 = vmatprep.mubr.bf16.mxu0 %v9234_v31  ;;  %7136 = vmatpush3.bf16.msra.mxu0 %v8421_v14 }
 0x15d   : > { %7137 = vmatprep.subr.bf16.mxu0 %v8422_v7 }
 0x160   : > { %7138 = vmatpush3.bf16.msra.mxu0 %v8422_v7  ;;  %v2562_v7 = vpack.c.bf16 %v2537_v11, %v2536_v6  ;;  %v2851_v6 = vld [vmem:[#allocation2 + $0x12a] sm:$0xff] }
 0x161   : > { %7139 = vmatprep.subr.bf16.mxu0 %v8423_v16 }
 0x163   : > { %7108 = vmatmul.mubr.bf16.gmra.mrb[12].mxu0 %v9236_v33 }
 0x164   : > { %7111 = vmatprep.mubr.bf16.mxu0 %v9240_v39  ;;  %7140 = vmatpush3.bf16.msra.mxu0 %v8423_v16  ;;  %v8454_v16 = vld [vmem:[#allocation7 + $0x228] sm:$0xff]  }
 0x165   : > { %7141 = vmatprep.subr.bf16.mxu0 %v8424_v18 }
 0x168   : > { %7142 = vmatpush3.bf16.msra.mxu0 %v8424_v18  ;;  %v2538_v18 = vld [vmem:[#allocation2 + $0xd9] sm:$0xff] }
 0x169   : > { %7175 = vmatprep.subr.bf16.mxu0 %v8425_v19 }
 0x16b   : > { %7112 = vmatmul.mubr.bf16.gmra.mrb[16].mxu0 %v9242_v40 }
 0x16c   : > { %7115 = vmatprep.mubr.bf16.mxu0 %v9246_v49 }
 0x173   : > { %7116 = vmatmul.mubr.bf16.gmra.mrb[20].mxu0 %v9248_v50 }
 0x174   : > { %7119 = vmatprep.mubr.bf16.mxu0 %v9252_v2 }
 0x17b   : > { %7120 = vmatmul.mubr.bf16.gmra.mrb[24].mxu0 %v9254_v3 }
 0x17c   : > { %7123 = vmatprep.mubr.bf16.mxu0 %v9266_v12 }
 0x183   : > { %7124 = vmatmul.mubr.bf16.gmra.mrb[28].mxu0 %v9329_v28 }
 0x184   : > { %7143 = vmatprep.mubr.bf16.mxu0 %v9147_v43  ;;  %v8430_v43 = vld [vmem:[#allocation7 + $0x168] sm:$0xff]  }
 0x18b   : > { %7144 = vmatmul.mubr.bf16.vlgmr.msra.gmra.mrb[0].mxu0 %v9151_v44  ;;  %v8431_v44 = vld [vmem:[#allocation7 + $0x170] sm:$0xff]  }
 0x18c   : > { %7176 = vmatpush3.bf16.msra.mxu0 %v8425_v19  ;;  %7147 = vmatprep.mubr.bf16.mxu0 %v9157_v47  ;;  %v8432_v47 = vld [vmem:[#allocation7 + $0x178] sm:$0xff]   ;;  %v2539_v19 = vld [vmem:[#allocation2 + $0xe1] sm:$0xff] }
 0x18d   : > { %7177 = vmatprep.subr.bf16.mxu0 %v8426_v29 }
 0x190   : > { %7178 = vmatpush3.bf16.msra.mxu0 %v8426_v29  ;;  %v2563_v29 = vpack.c.bf16 %v2539_v19, %v2538_v18  ;;  %v2855_v18 = vld [vmem:[#allocation2 + $0x15a] sm:$0xff] }
 0x191   : > { %7179 = vmatprep.subr.bf16.mxu0 %v8427_v36 }
 0x193   : > { %7148 = vmatmul.mubr.bf16.gmra.mrb[4].mxu0 %v9161_v48  ;;  %v8433_v48 = vld [vmem:[#allocation7 + $0x180] sm:$0xff]  }
 0x194   : > { %7151 = vmatprep.mubr.bf16.mxu0 %v9167_v51  ;;  %7180 = vmatpush3.bf16.msra.mxu0 %v8427_v36  ;;  %v9349_v51 = vpack.c.bf16 %v9260_v5, %v9257_v4  ;;  %v8442_v5 = vld [vmem:[#allocation7 + $0x1c8] sm:$0xff]   ;;  %v2564_v36 = vpack.c.bf16 %v2541_v27, %v2540_v26 }
 0x195   : > { %7181 = vmatprep.subr.bf16.mxu0 %v8428_v37  ;;  %v2856_v27 = vld [vmem:[#allocation2 + $0x16a] sm:$0xff] }
 0x198   : > { %7182 = vmatpush3.bf16.msra.mxu0 %v8428_v37  ;;  %v8456_v37 = vld [vmem:[#allocation7 + $0x238] sm:$0xff]  }
 0x199   : > { %7183 = vmatprep.subr.bf16.mxu0 %v8429_v38 }
 0x19b   : > { %7152 = vmatmul.mubr.bf16.gmra.mrb[8].mxu0 %v9171_v52  ;;  %v8434_v52 = vld [vmem:[#allocation7 + $0x188] sm:$0xff]  }
 0x19c   : > { %7155 = vmatprep.mubr.bf16.mxu0 %v9177_v55  ;;  %7184 = vmatpush3.bf16.msra.mxu0 %v8429_v38  ;;  %v8435_v55 = vld [vmem:[#allocation7 + $0x190] sm:$0xff]  }
 0x19d   : > { %7185 = vmatprep.subr.bf16.mxu0 %v8430_v43  ;;  %v2542_v38 = vld [vmem:[#allocation2 + $0x109] sm:$0xff] }
 0x1a0   : > { %7186 = vmatpush3.bf16.msra.mxu0 %v8430_v43  ;;  %v2543_v43 = vld [vmem:[#allocation2 + $0x111] sm:$0xff] }
 0x1a1   : > { %7187 = vmatprep.subr.bf16.mxu0 %v8431_v44 }
 0x1a3   : > { %7156 = vmatmul.mubr.bf16.gmra.mrb[12].mxu0 %v9181_v57  ;;  %v8436_v57 = vld [vmem:[#allocation7 + $0x198] sm:$0xff]  }
 0x1a4   : > { %7159 = vmatprep.mubr.bf16.mxu0 %v9187_v59  ;;  %7188 = vmatpush3.bf16.msra.mxu0 %v8431_v44  ;;  %v8437_v59 = vld [vmem:[#allocation7 + $0x1a0] sm:$0xff]  }
 0x1a5   : > { %7189 = vmatprep.subr.bf16.mxu0 %v8432_v47  ;;  %v2544_v44 = vld [vmem:[#allocation2 + $0x121] sm:$0xff] }
 0x1a8   : > { %7190 = vmatpush3.bf16.msra.mxu0 %v8432_v47  ;;  %v2545_v47 = vld [vmem:[#allocation2 + $0x129] sm:$0xff] }
 0x1a9   : > { %7223 = vmatprep.subr.bf16.mxu0 %v8433_v48 }
 0x1ab   : > { %7160 = vmatmul.mubr.bf16.gmra.mrb[16].mxu0 %v9191_v60  ;;  %v8438_v60 = vld [vmem:[#allocation7 + $0x1a8] sm:$0xff]  }
 0x1ac   : > { %7163 = vmatprep.mubr.bf16.mxu0 %v9197_v61  ;;  %v8439_v61 = vld [vmem:[#allocation7 + $0x1b0] sm:$0xff]  }
 0x1b3   : > { %7164 = vmatmul.mubr.bf16.gmra.mrb[20].mxu0 %v9201_v62  ;;  %v8440_v62 = vld [vmem:[#allocation7 + $0x1b8] sm:$0xff]  }
 0x1b4   : > { %7167 = vmatprep.mubr.bf16.mxu0 %v9207_v63  ;;  %v8441_v63 = vld [vmem:[#allocation7 + $0x1c0] sm:$0xff]  }
 0x1bb   : > { %7168 = vmatmul.mubr.bf16.gmra.mrb[24].mxu0 %v9209_v0  ;;  %v1941_v0 = vld [vmem:[#allocation2 + $0x182] sm:$0xff] }
 0x1bc   : > { %7171 = vmatprep.mubr.bf16.mxu0 %v9213_v1  ;;  %v1942_v1 = vld [vmem:[#allocation2 + $0x18a] sm:$0xff] }
 0x1bd   : > { %v9367_v4 = vpack.c.bf16 %v1942_v1, %v1941_v0  ;;  %v2551_v0 = vld [vmem:[#allocation2 + $0x171] sm:$0xff] }
 0x1c3   : > { %7172 = vmatmul.mubr.bf16.gmra.mrb[28].mxu0 %v9349_v51 }
 0x1c4   : > { %7191 = vmatprep.mubr.bf16.mxu0 %v9269_v20  ;;  %v8443_v20 = vld [vmem:[#allocation7 + $0x1d0] sm:$0xff]  }
 0x1cb   : > { %7192 = vmatmul.mubr.bf16.vlgmr.msra.gmra.mrb[0].mxu0 %v9271_v21  ;;  %v8444_v21 = vld [vmem:[#allocation7 + $0x1d8] sm:$0xff]  }
 0x1cc   : > { %7224 = vmatpush3.bf16.msra.mxu0 %v8433_v48  ;;  %7195 = vmatprep.mubr.bf16.mxu0 %v9275_v30  ;;  %v8445_v30 = vld [vmem:[#allocation7 + $0x1e0] sm:$0xff]   ;;  %v2565_v48 = vpack.c.bf16 %v2543_v43, %v2542_v38  ;;  %v8460_v43 = vld [vmem:[#allocation9 + $0x58] sm:$0xff]  }
 0x1cd   : > { %7225 = vmatprep.subr.bf16.mxu0 %v8434_v52 }
 0x1d0   : > { %7226 = vmatpush3.bf16.msra.mxu0 %v8434_v52  ;;  %v2566_v52 = vpack.c.bf16 %v2545_v47, %v2544_v44  ;;  %v8461_v44 = vld [vmem:[#allocation9 + $0x60] sm:$0xff]   ;;  %v8462_v47 = vld [vmem:[#allocation9 + $0x68] sm:$0xff]  }
 0x1d1   : > { %7227 = vmatprep.subr.bf16.mxu0 %v8435_v55 }
 0x1d3   : > { %7196 = vmatmul.mubr.bf16.gmra.mrb[4].mxu0 %v9277_v32  ;;  %v8457_v32 = vld [vmem:[#allocation9 + $0x40] sm:$0xff]  }
 0x1d4   : > { %7199 = vmatprep.mubr.bf16.mxu0 %v9281_v42  ;;  %7228 = vmatpush3.bf16.msra.mxu0 %v8435_v55  ;;  %v2527_v42 = vld [vmem:[#allocation2 + $0x51] sm:$0xff]  ;;  %v2546_v55 = vld [vmem:[#allocation2 + $0x139] sm:$0xff] }
 0x1d5   : > { %7229 = vmatprep.subr.bf16.mxu0 %v8436_v57  ;;  %7367 = vmatprep.subr.bf16.mxu1 %v8457_v32 }
 0x1d6   : > { %7368 = vmatpush3.bf16.msra.mxu1 %v8457_v32  ;;  %v2836_v32 = vld [vmem:[#allocation2 + $0x7a] sm:$0xff] }
 0x1d8   : > { %7230 = vmatpush3.bf16.msra.mxu0 %v8436_v57  ;;  %v2547_v57 = vld [vmem:[#allocation2 + $0x141] sm:$0xff] }
 0x1d9   : > { %7231 = vmatprep.subr.bf16.mxu0 %v8437_v59 }
 0x1db   : > { %7200 = vmatmul.mubr.bf16.gmra.mrb[8].mxu0 %v9283_v45  ;;  %v2529_v45 = vld [vmem:[#allocation2 + $0x69] sm:$0xff] }
 0x1dc   : > { %7203 = vmatprep.mubr.bf16.mxu0 %v9287_v8  ;;  %7232 = vmatpush3.bf16.msra.mxu0 %v8437_v59  ;;  %v2548_v59 = vld [vmem:[#allocation2 + $0x151] sm:$0xff] }
 0x1dd   : > { %7233 = vmatprep.subr.bf16.mxu0 %v8438_v60 }
 0x1e0   : > { %7234 = vmatpush3.bf16.msra.mxu0 %v8438_v60  ;;  %v2549_v60 = vld [vmem:[#allocation2 + $0x159] sm:$0xff] }
 0x1e1   : > { %7235 = vmatprep.subr.bf16.mxu0 %v8439_v61 }
 0x1e3   : > { %7204 = vmatmul.mubr.bf16.gmra.mrb[12].mxu0 %v9289_v10  ;;  %v8450_v10 = vld [vmem:[#allocation7 + $0x208] sm:$0xff]  }
 0x1e4   : > { %7207 = vmatprep.mubr.bf16.mxu0 %v9293_v22  ;;  %7236 = vmatpush3.bf16.msra.mxu0 %v8439_v61  ;;  %v2530_v22 = vld [vmem:[#allocation2 + $0x79] sm:$0xff]  ;;  %v2567_v61 = vpack.c.bf16 %v2547_v57, %v2546_v55  ;;  %v3397_v55 = vld [vmem:[#allocation3 + $0x1] sm:$0xff] }
 0x1e5   : > { %7237 = vmatprep.subr.bf16.mxu0 %v8440_v62 }
 0x1e8   : > { %7238 = vmatpush3.bf16.msra.mxu0 %v8440_v62  ;;  %v2568_v62 = vpack.c.bf16 %v2549_v60, %v2548_v59  ;;  %v8465_v59 = vld [vmem:[#allocation9] sm:$0xff]  }
 0x1e9   : > { %7271 = vmatprep.subr.bf16.mxu0 %v8441_v63  ;;  %v9393_v60 = vld [vmem:[%s9871_s3] ss:$0 sm:$0xff] }
 0x1eb   : > { %7208 = vmatmul.mubr.bf16.gmra.mrb[16].mxu0 %v9295_v24  ;;  %v2531_v24 = vld [vmem:[#allocation2 + $0x81] sm:$0xff] }
 0x1ec   : > { %7211 = vmatprep.mubr.bf16.mxu0 %v9299_v34  ;;  %v2532_v34 = vld [vmem:[#allocation2 + $0x91] sm:$0xff] }
 0x1f3   : > { %7212 = vmatmul.mubr.bf16.gmra.mrb[20].mxu0 %v9301_v35  ;;  %v2533_v35 = vld [vmem:[#allocation2 + $0x99] sm:$0xff] }
 0x1f4   : > { %7215 = vmatprep.mubr.bf16.mxu0 %v9305_v46  ;;  %v2559_v46 = vpack.c.bf16 %v2531_v24, %v2530_v22  ;;  %v2844_v24 = vld [vmem:[#allocation2 + $0xda] sm:$0xff] }
 0x1fb   : > { %7216 = vmatmul.mubr.bf16.gmra.mrb[24].mxu0 %v9307_v53  ;;  %v2560_v53 = vpack.c.bf16 %v2533_v35, %v2532_v34  ;;  %v2845_v34 = vld [vmem:[#allocation2 + $0xe2] sm:$0xff]  ;;  %v2846_v35 = vld [vmem:[#allocation2 + $0xf2] sm:$0xff] }
 0x1fc   : > { %7219 = vmatprep.mubr.bf16.mxu0 %v9311_v58  ;;  %v2535_v58 = vld [vmem:[#allocation2 + $0xb1] sm:$0xff] }
 0x1fd   : > { %v2561_v14 = vpack.c.bf16 %v2535_v58, %v2534_v56  ;;  %v2849_v56 = vld [vmem:[#allocation2 + $0x112] sm:$0xff]  ;;  %v2850_v58 = vld [vmem:[#allocation2 + $0x122] sm:$0xff] }
 0x203   : > { %7220 = vmatmul.mubr.bf16.gmra.mrb[28].mxu0 %v9367_v4 }
 0x204   : > { %7239 = vmatprep.mubr.bf16.mxu0 %v9218_v9  ;;  %v8446_v9 = vld [vmem:[#allocation7 + $0x1e8] sm:$0xff]  }
 0x20b   : > { %7240 = vmatmul.mubr.bf16.vlgmr.msra.gmra.mrb[0].mxu0 %v9222_v15  ;;  %v8447_v15 = vld [vmem:[#allocation7 + $0x1f0] sm:$0xff]  }
 0x20c   : > { %7272 = vmatpush3.bf16.msra.mxu0 %v8441_v63  ;;  %7243 = vmatprep.mubr.bf16.mxu0 %v9224_v17  ;;  %v8448_v17 = vld [vmem:[#allocation7 + $0x1f8] sm:$0xff]   ;;  %v2550_v63 = vld [vmem:[#allocation2 + $0x169] sm:$0xff] }
 0x20d   : > { %7273 = vmatprep.subr.bf16.mxu0 %v8442_v5  ;;  %v2569_v1 = vpack.c.bf16 %v2551_v0, %v2550_v63 }
 0x210   : > { %7274 = vmatpush3.bf16.msra.mxu0 %v8442_v5  ;;  %v2554_v5 = vld [vmem:[#allocation2 + $0x199] sm:$0xff] }
 0x211   : > { %7275 = vmatprep.subr.bf16.mxu0 %v8443_v20 }
 0x213   : > { %7244 = vmatmul.mubr.bf16.gmra.mrb[4].mxu0 %v9228_v23  ;;  %v8449_v23 = vld [vmem:[#allocation7 + $0x200] sm:$0xff]  }
 0x214   : > { %7247 = vmatprep.mubr.bf16.mxu0 %v9230_v25  ;;  %7276 = vmatpush3.bf16.msra.mxu0 %v8443_v20  ;;  %v2524_v25 = vld [vmem:[#allocation2 + $0x31] sm:$0xff]  ;;  %v2555_v20 = vld [vmem:[#allocation2 + $0x1a1] sm:$0xff] }
 0x215   : > { %7277 = vmatprep.subr.bf16.mxu0 %v8444_v21 }
 0x218   : > { %7278 = vmatpush3.bf16.msra.mxu0 %v8444_v21  ;;  %v2830_v21 = vld [vmem:[#allocation2 + $0x32] sm:$0xff] }
 0x219   : > { %7279 = vmatprep.subr.bf16.mxu0 %v8445_v30 }
 0x21b   : > { %7248 = vmatmul.mubr.bf16.gmra.mrb[8].mxu0 %v9234_v31  ;;  %v2525_v31 = vld [vmem:[#allocation2 + $0x39] sm:$0xff] }
 0x21c   : > { %7251 = vmatprep.mubr.bf16.mxu0 %v9236_v33  ;;  %7280 = vmatpush3.bf16.msra.mxu0 %v8445_v30  ;;  %v8529_v33 = vld [vmem:[#allocation2] sm:$0xff] }
 0x21d   : > { %7281 = vmatprep.subr.bf16.mxu0 %v8446_v9  ;;  %v2831_v30 = vld [vmem:[#allocation2 + $0x3a] sm:$0xff] }
 0x220   : > { %7282 = vmatpush3.bf16.msra.mxu0 %v8446_v9  ;;  %v2571_v9 = vpack.c.bf16 %v2555_v20, %v2554_v5 }
 0x221   : > { %7283 = vmatprep.subr.bf16.mxu0 %v8447_v15 }
 0x223   : > { %7252 = vmatmul.mubr.bf16.gmra.mrb[12].mxu0 %v9240_v39  ;;  %v9385_v39 = vpack.c.bf16 %v8529_v33, %v8529_v33 }
 0x224   : > { %7255 = vmatprep.mubr.bf16.mxu0 %v9242_v40  ;;  %7284 = vmatpush3.bf16.msra.mxu0 %v8447_v15  ;;  %v2556_v40 = vpack.c.bf16 %v2525_v31, %v2524_v25  ;;  %v2862_v15 = vpack.c.bf16 %v2831_v30, %v2830_v21  ;;  %v2834_v25 = vld [vmem:[#allocation2 + $0x62] sm:$0xff]  ;;  %v2835_v31 = vld [vmem:[#allocation2 + $0x6a] sm:$0xff] }
 0x225   : > { %7285 = vmatprep.subr.bf16.mxu0 %v8448_v17 }
 0x228   : > { %7286 = vmatpush3.bf16.msra.mxu0 %v8448_v17  ;;  %v2832_v17 = vld [vmem:[#allocation2 + $0x4a] sm:$0xff] }
 0x229   : > { %7319 = vmatprep.subr.bf16.mxu0 %v8449_v23 }
 0x22b   : > { %7256 = vmatmul.mubr.bf16.gmra.mrb[16].mxu0 %v9246_v49  ;;  %v8458_v49 = vld [vmem:[#allocation9 + $0x48] sm:$0xff]  }
 0x22c   : > { %7259 = vmatprep.mubr.bf16.mxu0 %v9248_v50  ;;  %v2526_v50 = vld [vmem:[#allocation2 + $0x49] sm:$0xff]  ;;  %7369 = vmatprep.subr.bf16.mxu1 %v8458_v49 }
 0x22d   : > { %7370 = vmatpush3.bf16.msra.mxu1 %v8458_v49  ;;  %v2837_v49 = vld [vmem:[#allocation2 + $0x82] sm:$0xff] }
 0x233   : > { %7260 = vmatmul.mubr.bf16.gmra.mrb[20].mxu0 %v9252_v2  ;;  %v2528_v2 = vld [vmem:[#allocation2 + $0x61] sm:$0xff] }
 0x234   : > { %7263 = vmatprep.mubr.bf16.mxu0 %v9254_v3  ;;  %v2557_v3 = vpack.c.bf16 %v2527_v42, %v2526_v50  ;;  %v2558_v8 = vpack.c.bf16 %v2529_v45, %v2528_v2  ;;  %v2838_v50 = vld [vmem:[#allocation2 + $0x92] sm:$0xff]  ;;  %v2865_v42 = vpack.c.bf16 %v2837_v49, %v2836_v32  ;;  %v2840_v45 = vld [vmem:[#allocation2 + $0xaa] sm:$0xff] }
 0x23b   : > { %7264 = vmatmul.mubr.bf16.gmra.mrb[24].mxu0 %v9266_v12  ;;  %v8459_v12 = vld [vmem:[#allocation9 + $0x50] sm:$0xff]  }
 0x23c   : > { %7267 = vmatprep.mubr.bf16.mxu0 %v9329_v28  ;;  %7371 = vmatprep.subr.bf16.mxu1 %v8459_v12  ;;  %v8455_v28 = vld [vmem:[#allocation7 + $0x230] sm:$0xff]  }
 0x23d   : > { %7372 = vmatpush3.bf16.msra.mxu1 %v8459_v12  ;;  %v2842_v12 = vld [vmem:[#allocation2 + $0xc2] sm:$0xff] }
 0x23e   : > { %7373 = vmatprep.subr.bf16.mxu1 %v8460_v43 }
 0x241   : > { %7374 = vmatpush3.bf16.msra.mxu1 %v8460_v43 }
 0x242   : > { %7375 = vmatprep.subr.bf16.mxu1 %v8461_v44 }
 0x243   : > { %7268 = vmatmul.mubr.bf16.gmra.mrb[28].mxu0 %v9385_v39 }
 0x244   : > { %7287 = vmatprep.mubr.bf16.mxu0 %v2556_v40  ;;  %v2864_v40 = vpack.c.bf16 %v2835_v31, %v2834_v25 }
 0x245   : > { %7376 = vmatpush3.bf16.msra.mxu1 %v8461_v44  ;;  %v8469_v44 = vld [vmem:[#allocation9 + $0x20] sm:$0xff]  }
 0x246   : > { %7377 = vmatprep.subr.bf16.mxu1 %v8462_v47 }
 0x249   : > { %7378 = vmatpush3.bf16.msra.mxu1 %v8462_v47 }
 0x24b   : > { %7288 = vmatmul.mubr.bf16.vlgmr.msra.gmra.mrb[0].mxu0 %v2557_v3  ;;  %v2841_v3 = vld [vmem:[#allocation2 + $0xb2] sm:$0xff] }
 0x24c   : > { %7320 = vmatpush3.bf16.msra.mxu0 %v8449_v23  ;;  %7291 = vmatprep.mubr.bf16.mxu0 %v2558_v8  ;;  %v2833_v23 = vld [vmem:[#allocation2 + $0x52] sm:$0xff]  ;;  %v2843_v8 = vld [vmem:[#allocation2 + $0xca] sm:$0xff] }
 0x24d   : > { %7321 = vmatprep.subr.bf16.mxu0 %v8450_v10  ;;  %v2863_v33 = vpack.c.bf16 %v2833_v23, %v2832_v17  ;;  %v2868_v22 = vpack.c.bf16 %v2843_v8, %v2842_v12 }
 0x250   : > { %7322 = vmatpush3.bf16.msra.mxu0 %v8450_v10  ;;  %v2867_v10 = vpack.c.bf16 %v2841_v3, %v2840_v45  ;;  %v8466_v3 = vld [vmem:[#allocation9 + $0x8] sm:$0xff]  }
 0x251   : > { %7323 = vmatprep.subr.bf16.mxu0 %v8451_v41 }
 0x253   : > { %7292 = vmatmul.mubr.bf16.gmra.mrb[4].mxu0 %v2559_v46  ;;  %v2869_v46 = vpack.c.bf16 %v2845_v34, %v2844_v24 }
 0x254   : > { %7295 = vmatprep.mubr.bf16.mxu0 %v2560_v53  ;;  %7324 = vmatpush3.bf16.msra.mxu0 %v8451_v41  ;;  %v2847_v41 = vld [vmem:[#allocation2 + $0xfa] sm:$0xff] }
 0x255   : > { %7325 = vmatprep.subr.bf16.mxu0 %v8452_v54  ;;  %v2870_v53 = vpack.c.bf16 %v2847_v41, %v2846_v35 }
 0x258   : > { %7326 = vmatpush3.bf16.msra.mxu0 %v8452_v54  ;;  %v2848_v54 = vld [vmem:[#allocation2 + $0x10a] sm:$0xff] }
 0x259   : > { %7327 = vmatprep.subr.bf16.mxu0 %v8453_v13  ;;  %v2871_v11 = vpack.c.bf16 %v2849_v56, %v2848_v54 }
 0x25b   : > { %7296 = vmatmul.mubr.bf16.gmra.mrb[8].mxu0 %v2561_v14  ;;  %v2852_v14 = vld [vmem:[#allocation2 + $0x13a] sm:$0xff] }
 0x25c   : > { %7299 = vmatprep.mubr.bf16.mxu0 %v2562_v7  ;;  %7328 = vmatpush3.bf16.msra.mxu0 %v8453_v13  ;;  %v2872_v13 = vpack.c.bf16 %v2851_v6, %v2850_v58  ;;  %v2853_v7 = vld [vmem:[#allocation2 + $0x142] sm:$0xff] }
 0x25d   : > { %7329 = vmatprep.subr.bf16.mxu0 %v8454_v16  ;;  %v2873_v19 = vpack.c.bf16 %v2853_v7, %v2852_v14 }
 0x260   : > { %7330 = vmatpush3.bf16.msra.mxu0 %v8454_v16  ;;  %v2854_v16 = vld [vmem:[#allocation2 + $0x152] sm:$0xff] }
 0x261   : > { %7331 = vmatprep.subr.bf16.mxu0 %v8455_v28  ;;  %v2874_v26 = vpack.c.bf16 %v2855_v18, %v2854_v16  ;;  %v8468_v18 = vld [vmem:[#allocation9 + $0x18] sm:$0xff]  }
 0x263   : > { %7300 = vmatmul.mubr.bf16.gmra.mrb[12].mxu0 %v2563_v29 }
 0x264   : > { %7303 = vmatprep.mubr.bf16.mxu0 %v2564_v36  ;;  %7332 = vmatpush3.bf16.msra.mxu0 %v8455_v28  ;;  %v2857_v28 = vld [vmem:[#allocation2 + $0x172] sm:$0xff]  ;;  %v2860_v36 = vld [vmem:[#allocation2 + $0x19a] sm:$0xff] }
 0x265   : > { %7333 = vmatprep.subr.bf16.mxu0 %v8456_v37  ;;  %v2875_v29 = vpack.c.bf16 %v2857_v28, %v2856_v27 }
 0x268   : > { %7334 = vmatpush3.bf16.msra.mxu0 %v8456_v37  ;;  %v2861_v37 = vld [vmem:[#allocation2 + $0x1a2] sm:$0xff] }
 0x269   : > { %v2877_v38 = vpack.c.bf16 %v2861_v37, %v2860_v36 }
 0x26b   : > { %7304 = vmatmul.mubr.bf16.gmra.mrb[16].mxu0 %v2565_v48  ;;  %v8463_v48 = vld [vmem:[#allocation9 + $0x70] sm:$0xff]  }
 0x26c   : > { %7307 = vmatprep.mubr.bf16.mxu0 %v2566_v52  ;;  %7379 = vmatprep.subr.bf16.mxu1 %v8463_v48  ;;  %v8464_v52 = vld [vmem:[#allocation9 + $0x78] sm:$0xff]  }
 0x26d   : > { %7380 = vmatpush3.bf16.msra.mxu1 %v8463_v48 }
 0x26e   : > { %7381 = vmatprep.subr.bf16.mxu1 %v8464_v52 }
 0x271   : > { %7382 = vmatpush3.bf16.msra.mxu1 %v8464_v52 }
 0x272   : > { %7415 = vmatprep.subr.bf16.mxu1 %v8465_v59 }
 0x273   : > { %7308 = vmatmul.mubr.bf16.gmra.mrb[20].mxu0 %v2567_v61 }
 0x274   : > { %7311 = vmatprep.mubr.bf16.mxu0 %v2568_v62  ;;  %v9398_v62 = vld [vmem:[%s9872_s4] ss:$0 sm:$0xff] }
 0x27b   : > { %7312 = vmatmul.mubr.bf16.gmra.mrb[24].mxu0 %v2569_v1 }
 0x27c   : > { %7315 = vmatprep.mubr.bf16.mxu0 %v9349_v51  ;;  %v2839_v51 = vld [vmem:[#allocation2 + $0x9a] sm:$0xff] }
 0x27d   : > { %v2866_v2 = vpack.c.bf16 %v2839_v51, %v2838_v50 }
 0x283   : > { %7316 = vmatmul.mubr.bf16.gmra.mrb[28].mxu0 %v2571_v9 }
 0x284   : > { %7335 = vmatprep.mubr.bf16.mxu0 %v2862_v15 }
 0x28b   : > { %7336 = vmatmul.mubr.bf16.vlgmr.msra.gmra.mrb[0].mxu0 %v2863_v33 }
 0x28c   : > { %7339 = vmatprep.mubr.bf16.mxu0 %v2864_v40 }
 0x293   : > { %7340 = vmatmul.mubr.bf16.gmra.mrb[4].mxu0 %v2865_v42 }
 0x294   : > { %7343 = vmatprep.mubr.bf16.mxu0 %v2866_v2 }
 0x29b   : > { %7344 = vmatmul.mubr.bf16.gmra.mrb[8].mxu0 %v2867_v10 }
 0x29c   : > { %7347 = vmatprep.mubr.bf16.mxu0 %v2868_v22 }
 0x2a3   : > { %7348 = vmatmul.mubr.bf16.gmra.mrb[12].mxu0 %v2869_v46 }
 0x2a4   : > { %7351 = vmatprep.mubr.bf16.mxu0 %v2870_v53  ;;  %v8467_v53 = vld [vmem:[#allocation9 + $0x10] sm:$0xff]  }
 0x2ab   : > { %7352 = vmatmul.mubr.bf16.gmra.mrb[16].mxu0 %v2871_v11 }
 0x2ac   : > { %7355 = vmatprep.mubr.bf16.mxu0 %v2872_v13 }
 0x2b3   : > { %7356 = vmatmul.mubr.bf16.gmra.mrb[20].mxu0 %v2873_v19 }
 0x2b4   : > { %7359 = vmatprep.mubr.bf16.mxu0 %v2874_v26 }
 0x2bb   : > { %7360 = vmatmul.mubr.bf16.gmra.mrb[24].mxu0 %v2875_v29 }
 0x2bc   : > { %7363 = vmatprep.mubr.bf16.mxu0 %v9367_v4  ;;  %v3398_v4 = vld [vmem:[#allocation3 + $0x9] sm:$0xff] }
 0x2bd   : > { %v3429_v57 = vpack.c.bf16 %v3398_v4, %v3397_v55 }
 0x2bf   : > { %7383 = vmatprep.mubr.bf16.mxu1 %v3429_v57 }
 0x2c3   : > { %7364 = vmatmul.mubr.bf16.gmra.mrb[28].mxu0 %v2877_v38 }
 0x35e   : > { %v7337_v61 = vpop.f32.mrb[0].mxu0 }
 0x35f   : > { %v3145_v63 = vmul.f32 %v7337_v61, %v9393_v60  ;;  %v2977_v0 = vpop.f32.mrb[1].mxu0 }
 0x360   : > { %v3143_v1 = vmul.f32 %v9393_v60, %v2977_v0  ;;  %v7338_v5 = vpop.f32.mrb[2].mxu0  ;;  %v8470_v0 = vld [vmem:[#allocation9 + $0x28] sm:$0xff]  }
 0x361   : > { %v3184_v20 = vadd.f32 %v9398_v62, %v3145_v63  ;;  %v3146_v21 = vmul.f32 %v7338_v5, %v9393_v60  ;;  %v2980_v30 = vpop.f32.mrb[3].mxu0 }
 0x362   : > { %v3182_v9 = vadd.f32 %v9398_v62, %v3143_v1  ;;  %v3144_v15 = vmul.f32 %v9393_v60, %v2980_v30 }
 0x363   : > { %v3216_v17 = vmax.f32 %v3184_v20, 0.0  ;;  %v3185_v23 = vadd.f32 %v9398_v62, %v3146_v21 }
 0x364   : > { %v3214_v25 = vmax.f32 %v3182_v9, 0.0  ;;  %v3183_v31 = vadd.f32 %v9398_v62, %v3144_v15 }
 0x365   : > { %3303 = vst [vmem:[#allocation3 + $0x31] sm:$0xff] %v3216_v17  ;;  %v3217_v33 = vmax.f32 %v3185_v23, 0.0 }
 0x366   : > { %3301 = vst [vmem:[#allocation3 + $0x19] sm:$0xff] %v3214_v25  ;;  %v3215_v40 = vmax.f32 %v3183_v31, 0.0  ;;  %v7341_v32 = vpop.f32.mrb[4].mxu0 }
 0x367   : > { %3304 = vst [vmem:[#allocation3 + $0x39] sm:$0xff] %v3217_v33  ;;  %v3149_v49 = vmul.f32 %v7341_v32, %v9393_v60  ;;  %v2993_v50 = vpop.f32.mrb[5].mxu0  ;;  %v3431_v51 = vpack.c.bf16 %v3217_v33, %v3216_v17 }
 0x368   : > { %3302 = vst [vmem:[#allocation3 + $0x21] sm:$0xff] %v3215_v40  ;;  %v3147_v42 = vmul.f32 %v9393_v60, %v2993_v50  ;;  %v7342_v2 = vpop.f32.mrb[6].mxu0  ;;  %v3430_v45 = vpack.c.bf16 %v3215_v40, %v3214_v25  ;;  %v8471_v25 = vld [vmem:[#allocation9 + $0x30] sm:$0xff]  }
 0x369   : > { %v3188_v12 = vadd.f32 %v9398_v62, %v3149_v49  ;;  %v3150_v8 = vmul.f32 %v7342_v2, %v9393_v60  ;;  %v2996_v10 = vpop.f32.mrb[7].mxu0 }
 0x36a   : > { %v3186_v22 = vadd.f32 %v9398_v62, %v3147_v42  ;;  %v3148_v24 = vmul.f32 %v9393_v60, %v2996_v10  ;;  %7384 = vmatmul.mubr.bf16.vlgmr.msra.gmra.mrb[0].mxu1 %v3430_v45  ;;  %v8472_v45 = vld [vmem:[#allocation9 + $0x38] sm:$0xff]  }
 0x36b   : > { %v3220_v34 = vmax.f32 %v3188_v12, 0.0  ;;  %v3189_v35 = vadd.f32 %v9398_v62, %v3150_v8  ;;  %7387 = vmatprep.mubr.bf16.mxu1 %v3431_v51  ;;  %7416 = vmatpush3.bf16.msra.mxu1 %v8465_v59 }
 0x36c   : > { %v3218_v41 = vmax.f32 %v3186_v22, 0.0  ;;  %v3187_v46 = vadd.f32 %v9398_v62, %v3148_v24  ;;  %7417 = vmatprep.subr.bf16.mxu1 %v8466_v3 }
 0x36d   : > { %3307 = vst [vmem:[#allocation3 + $0x61] sm:$0xff] %v3220_v34  ;;  %v3221_v54 = vmax.f32 %v3189_v35, 0.0 }
 0x36e   : > { %3305 = vst [vmem:[#allocation3 + $0x49] sm:$0xff] %v3218_v41  ;;  %v3219_v56 = vmax.f32 %v3187_v46, 0.0  ;;  %v7345_v58 = vpop.f32.mrb[8].mxu0  ;;  %v9440_v46 = vld [vmem:[#allocation9 + $0x80] sm:$0xff]  }
 0x36f   : > { %3308 = vst [vmem:[#allocation3 + $0x69] sm:$0xff] %v3221_v54  ;;  %v3153_v6 = vmul.f32 %v7345_v58, %v9393_v60  ;;  %v3009_v11 = vpop.f32.mrb[9].mxu0  ;;  %v3433_v13 = vpack.c.bf16 %v3221_v54, %v3220_v34  ;;  %7418 = vmatpush3.bf16.msra.mxu1 %v8466_v3 }
 0x370   : > { %3306 = vst [vmem:[#allocation3 + $0x51] sm:$0xff] %v3219_v56  ;;  %v3151_v14 = vmul.f32 %v9393_v60, %v3009_v11  ;;  %v7346_v7 = vpop.f32.mrb[10].mxu0  ;;  %v3432_v16 = vpack.c.bf16 %v3219_v56, %v3218_v41  ;;  %7419 = vmatprep.subr.bf16.mxu1 %v8467_v53 }
 0x371   : > { %v3192_v19 = vadd.f32 %v9398_v62, %v3153_v6  ;;  %v3154_v26 = vmul.f32 %v7346_v7, %v9393_v60  ;;  %v3012_v27 = vpop.f32.mrb[11].mxu0 }
 0x372   : > { %v3190_v28 = vadd.f32 %v9398_v62, %v3151_v14  ;;  %v3152_v29 = vmul.f32 %v9393_v60, %v3012_v27  ;;  %7388 = vmatmul.mubr.bf16.gmra.mrb[4].mxu1 %v3432_v16 }
 0x373   : > { %v3224_v36 = vmax.f32 %v3192_v19, 0.0  ;;  %v3193_v37 = vadd.f32 %v9398_v62, %v3154_v26  ;;  %7391 = vmatprep.mubr.bf16.mxu1 %v3433_v13  ;;  %7420 = vmatpush3.bf16.msra.mxu1 %v8467_v53 }
 0x374   : > { %v3222_v38 = vmax.f32 %v3190_v28, 0.0  ;;  %v3191_v43 = vadd.f32 %v9398_v62, %v3152_v29  ;;  %7421 = vmatprep.subr.bf16.mxu1 %v8468_v18 }
 0x375   : > { %3311 = vst [vmem:[#allocation3 + $0x91] sm:$0xff] %v3224_v36  ;;  %v3225_v47 = vmax.f32 %v3193_v37, 0.0 }
 0x376   : > { %3309 = vst [vmem:[#allocation3 + $0x79] sm:$0xff] %v3222_v38  ;;  %v3223_v48 = vmax.f32 %v3191_v43, 0.0  ;;  %v7349_v52 = vpop.f32.mrb[12].mxu0 }
 0x377   : > { %3312 = vst [vmem:[#allocation3 + $0x99] sm:$0xff] %v3225_v47  ;;  %v3157_v55 = vmul.f32 %v7349_v52, %v9393_v60  ;;  %v3025_v4 = vpop.f32.mrb[13].mxu0  ;;  %v3435_v57 = vpack.c.bf16 %v3225_v47, %v3224_v36  ;;  %7422 = vmatpush3.bf16.msra.mxu1 %v8468_v18 }
 0x378   : > { %3310 = vst [vmem:[#allocation3 + $0x81] sm:$0xff] %v3223_v48  ;;  %v3155_v59 = vmul.f32 %v9393_v60, %v3025_v4  ;;  %v7350_v61 = vpop.f32.mrb[14].mxu0  ;;  %v3434_v63 = vpack.c.bf16 %v3223_v48, %v3222_v38  ;;  %7423 = vmatprep.subr.bf16.mxu1 %v8469_v44 }
 0x379   : > { %v3196_v1 = vadd.f32 %v9398_v62, %v3157_v55  ;;  %v3158_v5 = vmul.f32 %v7350_v61, %v9393_v60  ;;  %v3028_v20 = vpop.f32.mrb[15].mxu0 }
 0x37a   : > { %v3194_v21 = vadd.f32 %v9398_v62, %v3155_v59  ;;  %v3156_v30 = vmul.f32 %v9393_v60, %v3028_v20  ;;  %7392 = vmatmul.mubr.bf16.gmra.mrb[8].mxu1 %v3434_v63 }
 0x37b   : > { %v3228_v9 = vmax.f32 %v3196_v1, 0.0  ;;  %v3197_v15 = vadd.f32 %v9398_v62, %v3158_v5  ;;  %7395 = vmatprep.mubr.bf16.mxu1 %v3435_v57  ;;  %7424 = vmatpush3.bf16.msra.mxu1 %v8469_v44 }
 0x37c   : > { %v3226_v17 = vmax.f32 %v3194_v21, 0.0  ;;  %v3195_v23 = vadd.f32 %v9398_v62, %v3156_v30  ;;  %7425 = vmatprep.subr.bf16.mxu1 %v8470_v0 }
 0x37d   : > { %3315 = vst [vmem:[#allocation3 + $0xc1] sm:$0xff] %v3228_v9  ;;  %v3229_v31 = vmax.f32 %v3197_v15, 0.0 }
 0x37e   : > { %3313 = vst [vmem:[#allocation3 + $0xa9] sm:$0xff] %v3226_v17  ;;  %v3227_v33 = vmax.f32 %v3195_v23, 0.0  ;;  %v7353_v40 = vpop.f32.mrb[16].mxu0 }
 0x37f   : > { %3316 = vst [vmem:[#allocation3 + $0xc9] sm:$0xff] %v3229_v31  ;;  %v3161_v32 = vmul.f32 %v7353_v40, %v9393_v60  ;;  %v3041_v49 = vpop.f32.mrb[17].mxu0  ;;  %v3437_v50 = vpack.c.bf16 %v3229_v31, %v3228_v9  ;;  %7426 = vmatpush3.bf16.msra.mxu1 %v8470_v0 }
 0x380   : > { %3314 = vst [vmem:[#allocation3 + $0xb1] sm:$0xff] %v3227_v33  ;;  %v3159_v51 = vmul.f32 %v9393_v60, %v3041_v49  ;;  %v7354_v42 = vpop.f32.mrb[18].mxu0  ;;  %v3436_v2 = vpack.c.bf16 %v3227_v33, %v3226_v17  ;;  %7427 = vmatprep.subr.bf16.mxu1 %v8471_v25 }
 0x381   : > { %v3200_v3 = vadd.f32 %v9398_v62, %v3161_v32  ;;  %v3162_v12 = vmul.f32 %v7354_v42, %v9393_v60  ;;  %v3044_v8 = vpop.f32.mrb[19].mxu0 }
 0x382   : > { %v3198_v10 = vadd.f32 %v9398_v62, %v3159_v51  ;;  %v3160_v22 = vmul.f32 %v9393_v60, %v3044_v8  ;;  %7396 = vmatmul.mubr.bf16.gmra.mrb[12].mxu1 %v3436_v2 }
 0x383   : > { %v3232_v24 = vmax.f32 %v3200_v3, 0.0  ;;  %v3201_v34 = vadd.f32 %v9398_v62, %v3162_v12  ;;  %7399 = vmatprep.mubr.bf16.mxu1 %v3437_v50  ;;  %7428 = vmatpush3.bf16.msra.mxu1 %v8471_v25 }
 0x384   : > { %v3230_v35 = vmax.f32 %v3198_v10, 0.0  ;;  %v3199_v41 = vadd.f32 %v9398_v62, %v3160_v22  ;;  %7429 = vmatprep.subr.bf16.mxu1 %v8472_v45 }
 0x385   : > { %3319 = vst [vmem:[#allocation3 + $0xf1] sm:$0xff] %v3232_v24  ;;  %v9442_v53 = vmax.f32 %v3201_v34, 0.0 }
 0x386   : > { %3317 = vst [vmem:[#allocation3 + $0xd9] sm:$0xff] %v3230_v35  ;;  %v3231_v54 = vmax.f32 %v3199_v41, 0.0  ;;  %v7357_v56 = vpop.f32.mrb[20].mxu0  ;;  %v3335_v41 = vld [vmem:[#allocation3 + $0x18] sm:$0xff] }
 0x387   : > { %3320 = vst [vmem:[#allocation3 + $0xf9] sm:$0xff] %v9442_v53  ;;  %v3165_v58 = vmul.f32 %v7357_v56, %v9393_v60  ;;  %v3057_v6 = vpop.f32.mrb[21].mxu0  ;;  %v3439_v11 = vpack.c.bf16 %v9442_v53, %v3232_v24  ;;  %7430 = vmatpush3.bf16.msra.mxu1 %v8472_v45  ;;  %v8474_v56 = vld [vmem:[#allocation9 + $0x88] sm:$0xff]  }
 0x388   : > { %3318 = vst [vmem:[#allocation3 + $0xe1] sm:$0xff] %v3231_v54  ;;  %v3163_v13 = vmul.f32 %v9393_v60, %v3057_v6  ;;  %v7358_v14 = vpop.f32.mrb[22].mxu0  ;;  %v9448_v7 = vpack.c.bf16 %v3231_v54, %v3230_v35  ;;  %7463 = vmatprep.subr.bf16.mxu1 %v9440_v46  ;;  %v3338_v35 = vld [vmem:[#allocation3 + $0x38] sm:$0xff]  ;;  %v8475_v6 = vld [vmem:[#allocation9 + $0x90] sm:$0xff]  }
 0x389   : > { %v3204_v16 = vadd.f32 %v9398_v62, %v3165_v58  ;;  %v3166_v18 = vmul.f32 %v7358_v14, %v9393_v60  ;;  %v3060_v19 = vpop.f32.mrb[23].mxu0 }
 0x38a   : > { %v3202_v26 = vadd.f32 %v9398_v62, %v3163_v13  ;;  %v3164_v27 = vmul.f32 %v9393_v60, %v3060_v19  ;;  %7400 = vmatmul.mubr.bf16.gmra.mrb[16].mxu1 %v9448_v7  ;;  %v3342_v13 = vld [vmem:[#allocation3 + $0x68] sm:$0xff] }
 0x38b   : > { %v3236_v28 = vmax.f32 %v3204_v16, 0.0  ;;  %v3205_v29 = vadd.f32 %v9398_v62, %v3166_v18  ;;  %7403 = vmatprep.mubr.bf16.mxu1 %v3439_v11  ;;  %v3340_v11 = vld [vmem:[#allocation3 + $0x50] sm:$0xff]  ;;  %v3341_v16 = vld [vmem:[#allocation3 + $0x60] sm:$0xff]  ;;  %v8476_v18 = vld [vmem:[#allocation9 + $0x98] sm:$0xff]  }
 0x38c   : > { %v3234_v36 = vmax.f32 %v3202_v26, 0.0  ;;  %v3203_v37 = vadd.f32 %v9398_v62, %v3164_v27  ;;  %v9501_v19 = vpack.c.bf16 %v3342_v13, %v3341_v16  ;;  %v3344_v26 = vld [vmem:[#allocation3 + $0x80] sm:$0xff]  ;;  %v3346_v27 = vld [vmem:[#allocation3 + $0x98] sm:$0xff] }
 0x38d   : > { %3323 = vst [vmem:[#allocation3 + $0x121] sm:$0xff] %v3236_v28  ;;  %v3237_v38 = vmax.f32 %v3205_v29, 0.0  ;;  %v8483_v13 = vld [vmem:[#allocation9 + $0xd0] sm:$0xff]   ;;  %v3887_v16 = vld [vmem:[#allocation3 + $0x52] sm:$0xff] }
 0x38e   : > { %3321 = vst [vmem:[#allocation3 + $0x109] sm:$0xff] %v3234_v36  ;;  %v3235_v43 = vmax.f32 %v3203_v37, 0.0  ;;  %v7361_v44 = vpop.f32.mrb[24].mxu0  ;;  %v8478_v37 = vld [vmem:[#allocation9 + $0xa8] sm:$0xff]  }
 0x38f   : > { %3324 = vst [vmem:[#allocation3 + $0x129] sm:$0xff] %v3237_v38  ;;  %v3169_v47 = vmul.f32 %v7361_v44, %v9393_v60  ;;  %v3073_v48 = vpop.f32.mrb[25].mxu0  ;;  %v9459_v52 = vpack.c.bf16 %v3237_v38, %v3236_v28  ;;  %v3343_v28 = vld [vmem:[#allocation3 + $0x78] sm:$0xff]  ;;  %v3348_v44 = vld [vmem:[#allocation3 + $0xb0] sm:$0xff] }
 0x390   : > { %3322 = vst [vmem:[#allocation3 + $0x111] sm:$0xff] %v3235_v43  ;;  %v3167_v55 = vmul.f32 %v9393_v60, %v3073_v48  ;;  %v7362_v4 = vpop.f32.mrb[26].mxu0  ;;  %v9462_v57 = vpack.c.bf16 %v3235_v43, %v3234_v36  ;;  %v9505_v29 = vpack.c.bf16 %v3344_v26, %v3343_v28  ;;  %v3345_v36 = vld [vmem:[#allocation3 + $0x90] sm:$0xff]  ;;  %v8479_v43 = vld [vmem:[#allocation9 + $0xb0] sm:$0xff]   ;;  %v3347_v48 = vld [vmem:[#allocation3 + $0xa8] sm:$0xff] }
 0x391   : > { %v3208_v59 = vadd.f32 %v9398_v62, %v3169_v47  ;;  %v3170_v61 = vmul.f32 %v7362_v4, %v9393_v60  ;;  %v3076_v63 = vpop.f32.mrb[27].mxu0  ;;  %v9507_v38 = vpack.c.bf16 %v3346_v27, %v3345_v36  ;;  %v3350_v47 = vld [vmem:[#allocation3 + $0xc8] sm:$0xff]  ;;  %v3349_v4 = vld [vmem:[#allocation3 + $0xc0] sm:$0xff]  ;;  %v8485_v36 = vld [vmem:[#allocation9 + $0xe0] sm:$0xff]  }
 0x392   : > { %v3206_v0 = vadd.f32 %v9398_v62, %v3167_v55  ;;  %v3168_v1 = vmul.f32 %v9393_v60, %v3076_v63  ;;  %7404 = vmatmul.mubr.bf16.gmra.mrb[20].mxu1 %v9462_v57  ;;  %v9511_v55 = vpack.c.bf16 %v3348_v44, %v3347_v48  ;;  %v8481_v63 = vld [vmem:[#allocation9 + $0xc0] sm:$0xff]   ;;  %v8484_v27 = vld [vmem:[#allocation9 + $0xd8] sm:$0xff]  }
 0x393   : > { %v3240_v5 = vmax.f32 %v3208_v59, 0.0  ;;  %v3209_v20 = vadd.f32 %v9398_v62, %v3170_v61  ;;  %7407 = vmatprep.mubr.bf16.mxu1 %v9459_v52  ;;  %v8480_v59 = vld [vmem:[#allocation9 + $0xb8] sm:$0xff]   ;;  %v9513_v61 = vpack.c.bf16 %v3350_v47, %v3349_v4  ;;  %v3892_v44 = vld [vmem:[#allocation3 + $0x92] sm:$0xff]  ;;  %v3893_v47 = vld [vmem:[#allocation3 + $0x9a] sm:$0xff] }
 0x394   : > { %v3238_v21 = vmax.f32 %v3206_v0, 0.0  ;;  %v3207_v30 = vadd.f32 %v9398_v62, %v3168_v1  ;;  %v3352_v0 = vld [vmem:[#allocation3 + $0xe0] sm:$0xff]  ;;  %v3354_v1 = vld [vmem:[#allocation3 + $0xf8] sm:$0xff] }
 0x395   : > { %3327 = vst [vmem:[#allocation3 + $0x151] sm:$0xff] %v3240_v5  ;;  %v3241_v9 = vmax.f32 %v3209_v20, 0.0  ;;  %v8486_v4 = vld [vmem:[#allocation9 + $0xe8] sm:$0xff]  }
 0x396   : > { %3325 = vst [vmem:[#allocation3 + $0x139] sm:$0xff] %v3238_v21  ;;  %v3239_v15 = vmax.f32 %v3207_v30, 0.0  ;;  %v7365_v17 = vpop.f32.mrb[28].mxu0 }
 0x397   : > { %3328 = vst [vmem:[#allocation3 + $0x159] sm:$0xff] %v3241_v9  ;;  %v3173_v23 = vmul.f32 %v7365_v17, %v9393_v60  ;;  %v3089_v25 = vpop.f32.mrb[29].mxu0  ;;  %v9473_v31 = vpack.c.bf16 %v3241_v9, %v3240_v5  ;;  %v3351_v5 = vld [vmem:[#allocation3 + $0xd8] sm:$0xff]  ;;  %v3356_v9 = vld [vmem:[#allocation3 + $0x110] sm:$0xff]  ;;  %v3355_v17 = vld [vmem:[#allocation3 + $0x108] sm:$0xff] }
 0x398   : > { %3326 = vst [vmem:[#allocation3 + $0x141] sm:$0xff] %v3239_v15  ;;  %v3171_v33 = vmul.f32 %v9393_v60, %v3089_v25  ;;  %v7366_v40 = vpop.f32.mrb[30].mxu0  ;;  %v9476_v32 = vpack.c.bf16 %v3239_v15, %v3238_v21  ;;  %v9517_v20 = vpack.c.bf16 %v3352_v0, %v3351_v5  ;;  %v3353_v21 = vld [vmem:[#allocation3 + $0xf0] sm:$0xff]  ;;  %v3358_v15 = vld [vmem:[#allocation3 + $0x128] sm:$0xff]  ;;  %v3357_v25 = vld [vmem:[#allocation3 + $0x120] sm:$0xff] }
 0x399   : > { %v3212_v49 = vadd.f32 %v9398_v62, %v3173_v23  ;;  %v3174_v50 = vmul.f32 %v7366_v40, %v9393_v60  ;;  %v3092_v51 = vpop.f32.mrb[31].mxu0  ;;  %v9519_v30 = vpack.c.bf16 %v3354_v1, %v3353_v21  ;;  %v9523_v23 = vpack.c.bf16 %v3356_v9, %v3355_v17  ;;  %v3894_v0 = vld [vmem:[#allocation3 + $0xaa] sm:$0xff]  ;;  %v3895_v1 = vld [vmem:[#allocation3 + $0xb2] sm:$0xff]  ;;  %v3896_v5 = vld [vmem:[#allocation3 + $0xc2] sm:$0xff] }
 0x39a   : > { %v3210_v42 = vadd.f32 %v9398_v62, %v3171_v33  ;;  %v3172_v2 = vmul.f32 %v9393_v60, %v3092_v51  ;;  %7408 = vmatmul.mubr.bf16.gmra.mrb[24].mxu1 %v9476_v32  ;;  %v3336_v60 = vld [vmem:[#allocation3 + $0x20] sm:$0xff]  ;;  %v9525_v33 = vpack.c.bf16 %v3358_v15, %v3357_v25  ;;  %v3897_v21 = vld [vmem:[#allocation3 + $0xca] sm:$0xff]  ;;  %v9556_v9 = vpack.c.bf16 %v3895_v1, %v3894_v0 }
 0x39b   : > { %v3244_v45 = vmax.f32 %v3212_v49, 0.0  ;;  %v3213_v3 = vadd.f32 %v9398_v62, %v3174_v50  ;;  %7411 = vmatprep.mubr.bf16.mxu1 %v9473_v31  ;;  %v9492_v54 = vpack.c.bf16 %v3336_v60, %v3335_v41  ;;  %v3882_v60 = vld [vmem:[#allocation3 + $0x1a] sm:$0xff]  ;;  %v3884_v41 = vld [vmem:[#allocation3 + $0x32] sm:$0xff]  ;;  %v8488_v15 = vld [vmem:[#allocation9 + $0xf8] sm:$0xff]   ;;  %v9558_v17 = vpack.c.bf16 %v3897_v21, %v3896_v5 }
 0x39c   : > { %v3242_v12 = vmax.f32 %v3210_v42, 0.0  ;;  %v3211_v8 = vadd.f32 %v9398_v62, %v3172_v2  ;;  %v3337_v62 = vld [vmem:[#allocation3 + $0x30] sm:$0xff]  ;;  %v4493_v5 = vld [vmem:[#allocation3 + $0x21] sm:$0xff] }
 0x39d   : > { %3331 = vst [vmem:[#allocation3 + $0x181] sm:$0xff] %v3244_v45  ;;  %v3245_v10 = vmax.f32 %v3213_v3, 0.0  ;;  %v9494_v58 = vpack.c.bf16 %v3338_v35, %v3337_v62  ;;  %v3359_v50 = vld [vmem:[#allocation3 + $0x138] sm:$0xff]  ;;  %v3361_v42 = vld [vmem:[#allocation3 + $0x150] sm:$0xff]  ;;  %v3883_v35 = vld [vmem:[#allocation3 + $0x22] sm:$0xff] }
 0x39e   : > { %3329 = vst [vmem:[#allocation3 + $0x169] sm:$0xff] %v3242_v12  ;;  %v3243_v22 = vmax.f32 %v3211_v8, 0.0  ;;  %v3362_v49 = vld [vmem:[#allocation3 + $0x158] sm:$0xff]  ;;  %v3881_v3 = vld [vmem:[#allocation3 + $0xa] sm:$0xff] }
 0x39f   : > { %3332 = vst [vmem:[#allocation3 + $0x189] sm:$0xff] %v3245_v10  ;;  %v9486_v24 = vpack.c.bf16 %v3245_v10, %v3244_v45  ;;  %v3360_v40 = vld [vmem:[#allocation3 + $0x140] sm:$0xff]  ;;  %v9531_v2 = vpack.c.bf16 %v3362_v49, %v3361_v42  ;;  %v8489_v25 = vld [vmem:[#allocation9 + $0x100] sm:$0xff]  }
 0x3a0   : > { %3330 = vst [vmem:[#allocation3 + $0x171] sm:$0xff] %v3243_v22  ;;  %v9488_v34 = vpack.c.bf16 %v3243_v22, %v3242_v12  ;;  %v9529_v51 = vpack.c.bf16 %v3360_v40, %v3359_v50  ;;  %v3880_v45 = vld [vmem:[#allocation3 + $0x2] sm:$0xff]  ;;  %v3885_v62 = vld [vmem:[#allocation3 + $0x3a] sm:$0xff]  ;;  %v3900_v50 = vld [vmem:[#allocation3 + $0xf2] sm:$0xff] }
 0x3a1   : > { %v3912_v10 = vpack.c.bf16 %v3881_v3, %v3880_v45  ;;  %v3898_v40 = vld [vmem:[#allocation3 + $0xda] sm:$0xff]  ;;  %v3899_v49 = vld [vmem:[#allocation3 + $0xe2] sm:$0xff]  ;;  %v8497_v0 = vld [vmem:[#allocation9 + $0x140] sm:$0xff]  }
 0x3a2   : > { %7412 = vmatmul.mubr.bf16.gmra.mrb[28].mxu1 %v9488_v34  ;;  %v3901_v42 = vld [vmem:[#allocation3 + $0xfa] sm:$0xff]  ;;  %v9562_v45 = vpack.c.bf16 %v3899_v49, %v3898_v40 }
 0x3a3   : > { %7431 = vmatprep.mubr.bf16.mxu1 %v9385_v39  ;;  %v3339_v39 = vld [vmem:[#allocation3 + $0x48] sm:$0xff]  ;;  %v9564_v3 = vpack.c.bf16 %v3901_v42, %v3900_v50  ;;  %v4495_v49 = vld [vmem:[#allocation3 + $0x39] sm:$0xff]  ;;  %v4497_v50 = vld [vmem:[#allocation3 + $0x51] sm:$0xff] }
 0x3a4   : > { %v9499_v14 = vpack.c.bf16 %v3340_v11, %v3339_v39  ;;  %v9540_v11 = vpack.c.bf16 %v3885_v62, %v3884_v41  ;;  %v3886_v39 = vld [vmem:[#allocation3 + $0x4a] sm:$0xff]  ;;  %v3906_v62 = vld [vmem:[#allocation3 + $0x13a] sm:$0xff] }
 0x3a5   : > { %v3363_v8 = vld [vmem:[#allocation3 + $0x168] sm:$0xff]  ;;  %v9544_v26 = vpack.c.bf16 %v3887_v16, %v3886_v39  ;;  %v3909_v39 = vld [vmem:[#allocation3 + $0x15a] sm:$0xff]  ;;  %v4494_v42 = vld [vmem:[#allocation3 + $0x31] sm:$0xff] }
 0x3a6   : > { %v4217_v1 = vld [vmem:[#allocation3 + $0x188] sm:$0xff]  ;;  %v4216_v21 = vld [vmem:[#allocation3 + $0x180] sm:$0xff] }
 0x3a7   : > { %v3364_v12 = vld [vmem:[#allocation3 + $0x170] sm:$0xff] }
 0x3a8   : > { %v9535_v22 = vpack.c.bf16 %v3364_v12, %v3363_v8  ;;  %v3902_v12 = vld [vmem:[#allocation3 + $0x10a] sm:$0xff]  ;;  %v3903_v8 = vld [vmem:[#allocation3 + $0x112] sm:$0xff] }
 0x3aa   : > { %7432 = vmatmul.mubr.bf16.vlgmr.msra.gmra.mrb[0].mxu1 %v9492_v54 }
 0x3ab   : > { %7435 = vmatprep.mubr.bf16.mxu1 %v9494_v58  ;;  %7464 = vmatpush3.bf16.msra.mxu1 %v9440_v46  ;;  %v8477_v46 = vld [vmem:[#allocation9 + $0xa0] sm:$0xff]  }
 0x3ac   : > { %7465 = vmatprep.subr.bf16.mxu1 %v8474_v56 }
 0x3af   : > { %7466 = vmatpush3.bf16.msra.mxu1 %v8474_v56  ;;  %v9538_v56 = vpack.c.bf16 %v3883_v35, %v3882_v60  ;;  %v3905_v60 = vld [vmem:[#allocation3 + $0x12a] sm:$0xff]  ;;  %v9568_v35 = vpack.c.bf16 %v3903_v8, %v3902_v12  ;;  %v9601_v12 = vpack.c.bf16 %v4495_v49, %v4494_v42 }
 0x3b0   : > { %7467 = vmatprep.subr.bf16.mxu1 %v8475_v6  ;;  %v4496_v8 = vld [vmem:[#allocation3 + $0x49] sm:$0xff] }
 0x3b1   : > { %v8505_v42 = vld [vmem:[#allocation9 + $0x180] sm:$0xff]  }
 0x3b2   : > { %7436 = vmatmul.mubr.bf16.gmra.mrb[4].mxu1 %v9499_v14 }
 0x3b3   : > { %7439 = vmatprep.mubr.bf16.mxu1 %v9501_v19  ;;  %7468 = vmatpush3.bf16.msra.mxu1 %v8475_v6  ;;  %v8482_v6 = vld [vmem:[#allocation9 + $0xc8] sm:$0xff]  }
 0x3b4   : > { %7469 = vmatprep.subr.bf16.mxu1 %v8476_v18 }
 0x3b7   : > { %7470 = vmatpush3.bf16.msra.mxu1 %v8476_v18  ;;  %v3888_v18 = vld [vmem:[#allocation3 + $0x62] sm:$0xff] }
 0x3b8   : > { %7471 = vmatprep.subr.bf16.mxu1 %v8477_v46 }
 0x3ba   : > { %7440 = vmatmul.mubr.bf16.gmra.mrb[8].mxu1 %v9505_v29 }
 0x3bb   : > { %7443 = vmatprep.mubr.bf16.mxu1 %v9507_v38  ;;  %7472 = vmatpush3.bf16.msra.mxu1 %v8477_v46  ;;  %v3889_v46 = vld [vmem:[#allocation3 + $0x6a] sm:$0xff] }
 0x3bc   : > { %7473 = vmatprep.subr.bf16.mxu1 %v8478_v37  ;;  %v9546_v28 = vpack.c.bf16 %v3889_v46, %v3888_v18  ;;  %v3910_v46 = vld [vmem:[#allocation3 + $0x16a] sm:$0xff] }
 0x3bf   : > { %7474 = vmatpush3.bf16.msra.mxu1 %v8478_v37  ;;  %v3890_v37 = vld [vmem:[#allocation3 + $0x7a] sm:$0xff] }
 0x3c0   : > { %7475 = vmatprep.subr.bf16.mxu1 %v8479_v43 }
 0x3c2   : > { %7444 = vmatmul.mubr.bf16.gmra.mrb[12].mxu1 %v9511_v55 }
 0x3c3   : > { %7447 = vmatprep.mubr.bf16.mxu1 %v9513_v61  ;;  %7476 = vmatpush3.bf16.msra.mxu1 %v8479_v43  ;;  %v3891_v43 = vld [vmem:[#allocation3 + $0x82] sm:$0xff] }
 0x3c4   : > { %7477 = vmatprep.subr.bf16.mxu1 %v8480_v59  ;;  %v9550_v48 = vpack.c.bf16 %v3891_v43, %v3890_v37  ;;  %v8490_v37 = vld [vmem:[#allocation9 + $0x108] sm:$0xff]   ;;  %v8491_v43 = vld [vmem:[#allocation9 + $0x110] sm:$0xff]  }
 0x3c7   : > { %7478 = vmatpush3.bf16.msra.mxu1 %v8480_v59  ;;  %v9552_v59 = vpack.c.bf16 %v3893_v47, %v3892_v44  ;;  %v8492_v44 = vld [vmem:[#allocation9 + $0x118] sm:$0xff]   ;;  %v8493_v47 = vld [vmem:[#allocation9 + $0x120] sm:$0xff]  }
 0x3c8   : > { %7511 = vmatprep.subr.bf16.mxu1 %v8481_v63 }
 0x3ca   : > { %7448 = vmatmul.mubr.bf16.gmra.mrb[16].mxu1 %v9517_v20 }
 0x3cb   : > { %7451 = vmatprep.mubr.bf16.mxu1 %v9519_v30 }
 0x3d2   : > { %7452 = vmatmul.mubr.bf16.gmra.mrb[20].mxu1 %v9523_v23 }
 0x3d3   : > { %7455 = vmatprep.mubr.bf16.mxu1 %v9525_v33 }
 0x3da   : > { %7456 = vmatmul.mubr.bf16.gmra.mrb[24].mxu1 %v9529_v51 }
 0x3db   : > { %7459 = vmatprep.mubr.bf16.mxu1 %v9531_v2 }
 0x3e2   : > { %7460 = vmatmul.mubr.bf16.gmra.mrb[28].mxu1 %v9535_v22 }
 0x3e3   : > { %7479 = vmatprep.mubr.bf16.mxu1 %v3912_v10  ;;  %v3904_v10 = vld [vmem:[#allocation3 + $0x122] sm:$0xff] }
 0x3e4   : > { %v9570_v41 = vpack.c.bf16 %v3905_v60, %v3904_v10  ;;  %v8498_v10 = vld [vmem:[#allocation9 + $0x148] sm:$0xff]   ;;  %v9603_v60 = vpack.c.bf16 %v4497_v50, %v4496_v8  ;;  %v8504_v50 = vld [vmem:[#allocation9 + $0x178] sm:$0xff]  }
 0x3e5   : > { %v9623_v8 = vld [vmem:[#allocation3 + $0xf1] sm:$0xff] }
 0x3ea   : > { %7480 = vmatmul.mubr.bf16.vlgmr.msra.gmra.mrb[0].mxu1 %v9538_v56 }
 0x3eb   : > { %7483 = vmatprep.mubr.bf16.mxu1 %v9540_v11  ;;  %7512 = vmatpush3.bf16.msra.mxu1 %v8481_v63  ;;  %v8487_v63 = vld [vmem:[#allocation9 + $0xf0] sm:$0xff]  }
 0x3ec   : > { %7513 = vmatprep.subr.bf16.mxu1 %v8482_v6 }
 0x3ef   : > { %7514 = vmatpush3.bf16.msra.mxu1 %v8482_v6  ;;  %v3907_v6 = vld [vmem:[#allocation3 + $0x142] sm:$0xff] }
 0x3f0   : > { %7515 = vmatprep.subr.bf16.mxu1 %v8483_v13  ;;  %v9574_v16 = vpack.c.bf16 %v3907_v6, %v3906_v62  ;;  %v8499_v62 = vld [vmem:[#allocation9 + $0x150] sm:$0xff]   ;;  %v4499_v6 = vld [vmem:[#allocation3 + $0x69] sm:$0xff] }
 0x3f2   : > { %7484 = vmatmul.mubr.bf16.gmra.mrb[4].mxu1 %v9544_v26 }
 0x3f3   : > { %7487 = vmatprep.mubr.bf16.mxu1 %v9546_v28  ;;  %7516 = vmatpush3.bf16.msra.mxu1 %v8483_v13  ;;  %v3908_v13 = vld [vmem:[#allocation3 + $0x152] sm:$0xff] }
 0x3f4   : > { %7517 = vmatprep.subr.bf16.mxu1 %v8484_v27  ;;  %v9576_v18 = vpack.c.bf16 %v3909_v39, %v3908_v13  ;;  %v4501_v13 = vld [vmem:[#allocation3 + $0x81] sm:$0xff] }
 0x3f5   : > { %v4498_v39 = vld [vmem:[#allocation3 + $0x61] sm:$0xff] }
 0x3f7   : > { %7518 = vmatpush3.bf16.msra.mxu1 %v8484_v27  ;;  %v3911_v27 = vld [vmem:[#allocation3 + $0x172] sm:$0xff] }
 0x3f8   : > { %7519 = vmatprep.subr.bf16.mxu1 %v8485_v36 }
 0x3fa   : > { %7488 = vmatmul.mubr.bf16.gmra.mrb[8].mxu1 %v9550_v48 }
 0x3fb   : > { %7491 = vmatprep.mubr.bf16.mxu1 %v9552_v59  ;;  %7520 = vmatpush3.bf16.msra.mxu1 %v8485_v36  ;;  %v9580_v36 = vpack.c.bf16 %v3911_v27, %v3910_v46  ;;  %v9607_v46 = vpack.c.bf16 %v4499_v6, %v4498_v39  ;;  %v4500_v27 = vld [vmem:[#allocation3 + $0x79] sm:$0xff]  ;;  %v5435_v39 = vld [vmem:[#allocation3 + $0x151] sm:$0xff] }
 0x3fc   : > { %7521 = vmatprep.subr.bf16.mxu1 %v8486_v4  ;;  %v5433_v6 = vld [vmem:[#allocation3 + $0x139] sm:$0xff] }
 0x3ff   : > { %7522 = vmatpush3.bf16.msra.mxu1 %v8486_v4  ;;  %v8495_v4 = vld [vmem:[#allocation9 + $0x130] sm:$0xff]  }
 0x400   : > { %7523 = vmatprep.subr.bf16.mxu1 %v8487_v63 }
 0x402   : > { %7492 = vmatmul.mubr.bf16.gmra.mrb[12].mxu1 %v9556_v9 }
 0x403   : > { %7495 = vmatprep.mubr.bf16.mxu1 %v9558_v17  ;;  %7524 = vmatpush3.bf16.msra.mxu1 %v8487_v63  ;;  %v8496_v63 = vld [vmem:[#allocation9 + $0x138] sm:$0xff]  }
 0x404   : > { %7525 = vmatprep.subr.bf16.mxu1 %v8488_v15 }
 0x407   : > { %7526 = vmatpush3.bf16.msra.mxu1 %v8488_v15  ;;  %v9598_v15 = vpack.c.bf16 %v4217_v1, %v4216_v21  ;;  %v8502_v1 = vld [vmem:[#allocation9 + $0x168] sm:$0xff]   ;;  %v8503_v21 = vld [vmem:[#allocation9 + $0x170] sm:$0xff]  }
 0x408   : > { %7559 = vmatprep.subr.bf16.mxu1 %v8489_v25 }
 0x40a   : > { %7496 = vmatmul.mubr.bf16.gmra.mrb[16].mxu1 %v9562_v45 }
 0x40b   : > { %7499 = vmatprep.mubr.bf16.mxu1 %v9564_v3 }
 0x412   : > { %7500 = vmatmul.mubr.bf16.gmra.mrb[20].mxu1 %v9568_v35 }
 0x413   : > { %7503 = vmatprep.mubr.bf16.mxu1 %v9570_v41 }
 0x41a   : > { %7504 = vmatmul.mubr.bf16.gmra.mrb[24].mxu1 %v9574_v16 }
 0x41b   : > { %7507 = vmatprep.mubr.bf16.mxu1 %v9576_v18 }
 0x422   : > { %7508 = vmatmul.mubr.bf16.gmra.mrb[28].mxu1 %v9580_v36 }
 0x423   : > { %7527 = vmatprep.mubr.bf16.mxu1 %v9492_v54  ;;  %v8494_v54 = vld [vmem:[#allocation9 + $0x128] sm:$0xff]  }
 0x42a   : > { %7528 = vmatmul.mubr.bf16.vlgmr.msra.gmra.mrb[0].mxu1 %v9494_v58 }
 0x42b   : > { %7531 = vmatprep.mubr.bf16.mxu1 %v9499_v14  ;;  %7560 = vmatpush3.bf16.msra.mxu1 %v8489_v25  ;;  %v4492_v25 = vld [vmem:[#allocation3 + $0x19] sm:$0xff] }
 0x42c   : > { %7561 = vmatprep.subr.bf16.mxu1 %v8490_v37  ;;  %v4524_v40 = vpack.c.bf16 %v4493_v5, %v4492_v25  ;;  %v4507_v25 = vld [vmem:[#allocation3 + $0xc9] sm:$0xff] }
 0x42f   : > { %7562 = vmatpush3.bf16.msra.mxu1 %v8490_v37  ;;  %v8500_v37 = vld [vmem:[#allocation9 + $0x158] sm:$0xff]  }
 0x430   : > { %7563 = vmatprep.subr.bf16.mxu1 %v8491_v43 }
 0x432   : > { %7532 = vmatmul.mubr.bf16.gmra.mrb[4].mxu1 %v9501_v19 }
 0x433   : > { %7535 = vmatprep.mubr.bf16.mxu1 %v9505_v29  ;;  %7564 = vmatpush3.bf16.msra.mxu1 %v8491_v43  ;;  %v9609_v43 = vpack.c.bf16 %v4501_v13, %v4500_v27  ;;  %v5438_v27 = vld [vmem:[#allocation3 + $0x171] sm:$0xff] }
 0x434   : > { %7565 = vmatprep.subr.bf16.mxu1 %v8492_v44 }
 0x437   : > { %7566 = vmatpush3.bf16.msra.mxu1 %v8492_v44  ;;  %v8501_v44 = vld [vmem:[#allocation9 + $0x160] sm:$0xff]  }
 0x438   : > { %7567 = vmatprep.subr.bf16.mxu1 %v8493_v47 }
 0x43a   : > { %7536 = vmatmul.mubr.bf16.gmra.mrb[8].mxu1 %v9507_v38 }
 0x43b   : > { %7539 = vmatprep.mubr.bf16.mxu1 %v9511_v55  ;;  %7568 = vmatpush3.bf16.msra.mxu1 %v8493_v47  ;;  %v4503_v47 = vld [vmem:[#allocation3 + $0x99] sm:$0xff] }
 0x43c   : > { %7569 = vmatprep.subr.bf16.mxu1 %v8494_v54 }
 0x43f   : > { %7570 = vmatpush3.bf16.msra.mxu1 %v8494_v54  ;;  %v4505_v54 = vld [vmem:[#allocation3 + $0xb1] sm:$0xff] }
 0x440   : > { %7571 = vmatprep.subr.bf16.mxu1 %v8495_v4 }
 0x442   : > { %7540 = vmatmul.mubr.bf16.gmra.mrb[12].mxu1 %v9513_v61 }
 0x443   : > { %7543 = vmatprep.mubr.bf16.mxu1 %v9517_v20  ;;  %7572 = vmatpush3.bf16.msra.mxu1 %v8495_v4  ;;  %v4502_v4 = vld [vmem:[#allocation3 + $0x91] sm:$0xff] }
 0x444   : > { %7573 = vmatprep.subr.bf16.mxu1 %v8496_v63 }
 0x447   : > { %7574 = vmatpush3.bf16.msra.mxu1 %v8496_v63  ;;  %v9613_v63 = vpack.c.bf16 %v4503_v47, %v4502_v4  ;;  %v5439_v47 = vld [vmem:[#allocation3 + $0x181] sm:$0xff]  ;;  %v5441_v4 = vld [vmem:[#allocation3 + $0x199] sm:$0xff] }
 0x448   : > { %7607 = vmatprep.subr.bf16.mxu1 %v8497_v0 }
 0x44a   : > { %7544 = vmatmul.mubr.bf16.gmra.mrb[16].mxu1 %v9519_v30 }
 0x44b   : > { %7547 = vmatprep.mubr.bf16.mxu1 %v9523_v23 }
 0x452   : > { %7548 = vmatmul.mubr.bf16.gmra.mrb[20].mxu1 %v9525_v33 }
 0x453   : > { %7551 = vmatprep.mubr.bf16.mxu1 %v9529_v51 }
 0x45a   : > { %7552 = vmatmul.mubr.bf16.gmra.mrb[24].mxu1 %v9531_v2 }
 0x45b   : > { %7555 = vmatprep.mubr.bf16.mxu1 %v9535_v22 }
 0x462   : > { %7556 = vmatmul.mubr.bf16.gmra.mrb[28].mxu1 %v9598_v15 }
 0x463   : > { %7575 = vmatprep.mubr.bf16.mxu1 %v4524_v40  ;;  %v4506_v40 = vld [vmem:[#allocation3 + $0xc1] sm:$0xff] }
 0x464   : > { %v9619_v49 = vpack.c.bf16 %v4507_v25, %v4506_v40  ;;  %v5719_v25 = vld [vmem:[#allocation3 + $0x4a] sm:$0xff]  ;;  %v5720_v40 = vld [vmem:[#allocation3 + $0x52] sm:$0xff] }
 0x46a   : > { %7576 = vmatmul.mubr.bf16.vlgmr.msra.gmra.mrb[0].mxu1 %v9601_v12 }
 0x46b   : > { %7579 = vmatprep.mubr.bf16.mxu1 %v9603_v60  ;;  %7608 = vmatpush3.bf16.msra.mxu1 %v8497_v0  ;;  %v4504_v0 = vld [vmem:[#allocation3 + $0xa9] sm:$0xff] }
 0x46c   : > { %7609 = vmatprep.subr.bf16.mxu1 %v8498_v10  ;;  %v9615_v5 = vpack.c.bf16 %v4505_v54, %v4504_v0 }
 0x46f   : > { %7610 = vmatpush3.bf16.msra.mxu1 %v8498_v10  ;;  %v4533_v10 = vpack.c.bf16 %v9442_v53, %v9623_v8  ;;  %v8507_v53 = vld [vmem:[#allocation9 + $0x190] sm:$0xff]  }
 0x470   : > { %7611 = vmatprep.subr.bf16.mxu1 %v8499_v62 }
 0x472   : > { %7580 = vmatmul.mubr.bf16.gmra.mrb[4].mxu1 %v9607_v46 }
 0x473   : > { %7583 = vmatprep.mubr.bf16.mxu1 %v9609_v43  ;;  %7612 = vmatpush3.bf16.msra.mxu1 %v8499_v62  ;;  %v5436_v62 = vld [vmem:[#allocation3 + $0x159] sm:$0xff] }
 0x474   : > { %7613 = vmatprep.subr.bf16.mxu1 %v8500_v37 }
 0x477   : > { %7614 = vmatpush3.bf16.msra.mxu1 %v8500_v37  ;;  %v5440_v37 = vld [vmem:[#allocation3 + $0x189] sm:$0xff] }
 0x478   : > { %7615 = vmatprep.subr.bf16.mxu1 %v8501_v44  ;;  %v5457_v54 = vpack.c.bf16 %v5440_v37, %v5439_v47 }
 0x47a   : > { %7584 = vmatmul.mubr.bf16.gmra.mrb[8].mxu1 %v9613_v63 }
 0x47b   : > { %7587 = vmatprep.mubr.bf16.mxu1 %v9615_v5  ;;  %7616 = vmatpush3.bf16.msra.mxu1 %v8501_v44 }
 0x47c   : > { %7617 = vmatprep.subr.bf16.mxu1 %v8502_v1 }
 0x47f   : > { %7618 = vmatpush3.bf16.msra.mxu1 %v8502_v1  ;;  %v5717_v1 = vld [vmem:[#allocation3 + $0x32] sm:$0xff] }
 0x480   : > { %7619 = vmatprep.subr.bf16.mxu1 %v8503_v21 }
 0x482   : > { %7588 = vmatmul.mubr.bf16.gmra.mrb[12].mxu1 %v9619_v49 }
 0x483   : > { %7591 = vmatprep.mubr.bf16.mxu1 %v9448_v7  ;;  %7620 = vmatpush3.bf16.msra.mxu1 %v8503_v21  ;;  %v8506_v7 = vld [vmem:[#allocation9 + $0x188] sm:$0xff]  }
 0x484   : > { %7621 = vmatprep.subr.bf16.mxu1 %v8504_v50 }
 0x487   : > { %7622 = vmatpush3.bf16.msra.mxu1 %v8504_v50  ;;  %v5722_v50 = vld [vmem:[#allocation3 + $0x6a] sm:$0xff] }
 0x488   : > { %7655 = vmatprep.subr.bf16.mxu1 %v8505_v42 }
 0x48a   : > { %7592 = vmatmul.mubr.bf16.gmra.mrb[16].mxu1 %v4533_v10  ;;  %v5723_v10 = vld [vmem:[#allocation3 + $0x7a] sm:$0xff] }
 0x48b   : > { %7595 = vmatprep.mubr.bf16.mxu1 %v9462_v57  ;;  %v8509_v57 = vld [vmem:[#allocation9 + $0x1a0] sm:$0xff]  }
 0x492   : > { %7596 = vmatmul.mubr.bf16.gmra.mrb[20].mxu1 %v9459_v52  ;;  %v8508_v52 = vld [vmem:[#allocation9 + $0x198] sm:$0xff]  }
 0x493   : > { %7599 = vmatprep.mubr.bf16.mxu1 %v9476_v32  ;;  %v8511_v32 = vld [vmem:[#allocation9 + $0x1b0] sm:$0xff]  }
 0x49a   : > { %7600 = vmatmul.mubr.bf16.gmra.mrb[24].mxu1 %v9473_v31  ;;  %v8510_v31 = vld [vmem:[#allocation9 + $0x1a8] sm:$0xff]  }
 0x49b   : > { %7603 = vmatprep.mubr.bf16.mxu1 %v9488_v34  ;;  %v8513_v34 = vld [vmem:[#allocation9 + $0x1c0] sm:$0xff]  }
 0x4a2   : > { %7604 = vmatmul.mubr.bf16.gmra.mrb[28].mxu1 %v9486_v24  ;;  %v8512_v24 = vld [vmem:[#allocation9 + $0x1b8] sm:$0xff]  }
 0x4a3   : > { %7623 = vmatprep.mubr.bf16.mxu1 %v9538_v56  ;;  %v4828_v56 = vld [vmem:[#allocation3 + $0x182] sm:$0xff] }
 0x4aa   : > { %7624 = vmatmul.mubr.bf16.vlgmr.msra.gmra.mrb[0].mxu1 %v9540_v11  ;;  %v4829_v11 = vld [vmem:[#allocation3 + $0x18a] sm:$0xff] }
 0x4ab   : > { %7627 = vmatprep.mubr.bf16.mxu1 %v9544_v26  ;;  %7656 = vmatpush3.bf16.msra.mxu1 %v8505_v42  ;;  %v9648_v26 = vpack.c.bf16 %v4829_v11, %v4828_v56  ;;  %v5750_v42 = vpack.c.bf16 %v5720_v40, %v5719_v25  ;;  %v5730_v56 = vld [vmem:[#allocation3 + $0xca] sm:$0xff] }
 0x4ac   : > { %7657 = vmatprep.subr.bf16.mxu1 %v8506_v7 }
 0x4af   : > { %7658 = vmatpush3.bf16.msra.mxu1 %v8506_v7  ;;  %v5724_v7 = vld [vmem:[#allocation3 + $0x82] sm:$0xff] }
 0x4b0   : > { %7659 = vmatprep.subr.bf16.mxu1 %v8507_v53 }
 0x4b2   : > { %7628 = vmatmul.mubr.bf16.gmra.mrb[4].mxu1 %v9546_v28  ;;  %v8514_v28 = vld [vmem:[#allocation9 + $0x1c8] sm:$0xff]  }
 0x4b3   : > { %7631 = vmatprep.mubr.bf16.mxu1 %v9550_v48  ;;  %7660 = vmatpush3.bf16.msra.mxu1 %v8507_v53  ;;  %v8515_v48 = vld [vmem:[#allocation9 + $0x1d0] sm:$0xff]   ;;  %v5725_v53 = vld [vmem:[#allocation3 + $0x92] sm:$0xff] }
 0x4b4   : > { %7661 = vmatprep.subr.bf16.mxu1 %v8508_v52 }
 0x4b7   : > { %7662 = vmatpush3.bf16.msra.mxu1 %v8508_v52  ;;  %v5726_v52 = vld [vmem:[#allocation3 + $0x9a] sm:$0xff] }
 0x4b8   : > { %7663 = vmatprep.subr.bf16.mxu1 %v8509_v57 }
 0x4ba   : > { %7632 = vmatmul.mubr.bf16.gmra.mrb[8].mxu1 %v9552_v59  ;;  %v8516_v59 = vld [vmem:[#allocation9 + $0x1d8] sm:$0xff]  }
 0x4bb   : > { %7635 = vmatprep.mubr.bf16.mxu1 %v9556_v9  ;;  %7664 = vmatpush3.bf16.msra.mxu1 %v8509_v57  ;;  %v8517_v9 = vld [vmem:[#allocation9 + $0x1e0] sm:$0xff]   ;;  %v5752_v57 = vpack.c.bf16 %v5724_v7, %v5723_v10  ;;  %v6107_v7 = vld [vmem:[%s8919_s21 + $0x30] sm:$0xff] }
 0x4bc   : > { %7665 = vmatprep.subr.bf16.mxu1 %v8510_v31 }
 0x4bf   : > { %7666 = vmatpush3.bf16.msra.mxu1 %v8510_v31  ;;  %v5753_v31 = vpack.c.bf16 %v5726_v52, %v5725_v53 }
 0x4c0   : > { %7667 = vmatprep.subr.bf16.mxu1 %v8511_v32 }
 0x4c2   : > { %7636 = vmatmul.mubr.bf16.gmra.mrb[12].mxu1 %v9558_v17  ;;  %v5425_v17 = vld [vmem:[#allocation3 + $0xd9] sm:$0xff] }
 0x4c3   : > { %7639 = vmatprep.mubr.bf16.mxu1 %v9562_v45  ;;  %7668 = vmatpush3.bf16.msra.mxu1 %v8511_v32  ;;  %v5727_v32 = vld [vmem:[#allocation3 + $0xaa] sm:$0xff] }
 0x4c4   : > { %7669 = vmatprep.subr.bf16.mxu1 %v8512_v24 }
 0x4c7   : > { %7670 = vmatpush3.bf16.msra.mxu1 %v8512_v24  ;;  %v5728_v24 = vld [vmem:[#allocation3 + $0xb2] sm:$0xff] }
 0x4c8   : > { %7703 = vmatprep.subr.bf16.mxu1 %v8513_v34  ;;  %v5754_v11 = vpack.c.bf16 %v5728_v24, %v5727_v32 }
 0x4ca   : > { %7640 = vmatmul.mubr.bf16.gmra.mrb[16].mxu1 %v9564_v3  ;;  %v8528_v3 = vld [vmem:[#allocation9 + $0x238] sm:$0xff]  }
 0x4cb   : > { %7643 = vmatprep.mubr.bf16.mxu1 %v9568_v35 }
 0x4d2   : > { %7644 = vmatmul.mubr.bf16.gmra.mrb[20].mxu1 %v9570_v41  ;;  %v5430_v41 = vld [vmem:[#allocation3 + $0x111] sm:$0xff] }
 0x4d3   : > { %7647 = vmatprep.mubr.bf16.mxu1 %v9574_v16  ;;  %v5432_v16 = vld [vmem:[#allocation3 + $0x129] sm:$0xff] }
 0x4da   : > { %7648 = vmatmul.mubr.bf16.gmra.mrb[24].mxu1 %v9576_v18  ;;  %v5429_v18 = vld [vmem:[#allocation3 + $0x109] sm:$0xff] }
 0x4db   : > { %7651 = vmatprep.mubr.bf16.mxu1 %v9580_v36  ;;  %v5452_v36 = vpack.c.bf16 %v5430_v41, %v5429_v18  ;;  %v5747_v41 = vld [vmem:[#allocation3 + $0x19a] sm:$0xff] }
 0x4e2   : > { %7652 = vmatmul.mubr.bf16.gmra.mrb[28].mxu1 %v9648_v26 }
 0x4e3   : > { %7671 = vmatprep.mubr.bf16.mxu1 %v9494_v58  ;;  %v8518_v58 = vld [vmem:[#allocation9 + $0x1e8] sm:$0xff]  }
 0x4ea   : > { %7672 = vmatmul.mubr.bf16.vlgmr.msra.gmra.mrb[0].mxu1 %v9499_v14  ;;  %v8519_v14 = vld [vmem:[#allocation9 + $0x1f0] sm:$0xff]  }
 0x4eb   : > { %7675 = vmatprep.mubr.bf16.mxu1 %v9501_v19  ;;  %7704 = vmatpush3.bf16.msra.mxu1 %v8513_v34  ;;  %v8520_v19 = vld [vmem:[#allocation9 + $0x1f8] sm:$0xff]  }
 0x4ec   : > { %7705 = vmatprep.subr.bf16.mxu1 %v8514_v28  ;;  %v5729_v34 = vld [vmem:[#allocation3 + $0xc2] sm:$0xff] }
 0x4ef   : > { %7706 = vmatpush3.bf16.msra.mxu1 %v8514_v28  ;;  %v5755_v28 = vpack.c.bf16 %v5730_v56, %v5729_v34  ;;  %v6108_v56 = vld [vmem:[%s8919_s21 + $0x38] sm:$0xff] }
 0x4f0   : > { %7707 = vmatprep.subr.bf16.mxu1 %v8515_v48 }
 0x4f2   : > { %7676 = vmatmul.mubr.bf16.gmra.mrb[4].mxu1 %v9505_v29  ;;  %v8521_v29 = vld [vmem:[#allocation9 + $0x200] sm:$0xff]  }
 0x4f3   : > { %7679 = vmatprep.mubr.bf16.mxu1 %v9507_v38  ;;  %7708 = vmatpush3.bf16.msra.mxu1 %v8515_v48  ;;  %v8530_v38 = vld [vmem:[#allocation2] sm:$0xff]  ;;  %v5731_v48 = vld [vmem:[#allocation3 + $0xda] sm:$0xff] }
 0x4f4   : > { %7709 = vmatprep.subr.bf16.mxu1 %v8516_v59 }
 0x4f7   : > { %7710 = vmatpush3.bf16.msra.mxu1 %v8516_v59  ;;  %v5732_v59 = vld [vmem:[#allocation3 + $0xe2] sm:$0xff] }
 0x4f8   : > { %7711 = vmatprep.subr.bf16.mxu1 %v8517_v9 }
 0x4fa   : > { %7680 = vmatmul.mubr.bf16.gmra.mrb[8].mxu1 %v9511_v55  ;;  %v5152_v55 = vpack.c.bf16 %v8530_v38, %v8530_v38  ;;  %v5736_v38 = vld [vmem:[#allocation3 + $0x112] sm:$0xff] }
 0x4fb   : > { %7683 = vmatprep.mubr.bf16.mxu1 %v9513_v61  ;;  %7712 = vmatpush3.bf16.msra.mxu1 %v8517_v9  ;;  %v8522_v61 = vld [vmem:[#allocation9 + $0x208] sm:$0xff]  }
 0x4fc   : > { %7713 = vmatprep.subr.bf16.mxu1 %v8518_v58  ;;  %v5733_v9 = vld [vmem:[#allocation3 + $0xf2] sm:$0xff] }
 0x4ff   : > { %7714 = vmatpush3.bf16.msra.mxu1 %v8518_v58  ;;  %v5734_v58 = vld [vmem:[#allocation3 + $0xfa] sm:$0xff] }
 0x500   : > { %7715 = vmatprep.subr.bf16.mxu1 %v8519_v14 }
 0x502   : > { %7684 = vmatmul.mubr.bf16.gmra.mrb[12].mxu1 %v9517_v20  ;;  %v8523_v20 = vld [vmem:[#allocation9 + $0x210] sm:$0xff]  }
 0x503   : > { %7687 = vmatprep.mubr.bf16.mxu1 %v9519_v30  ;;  %7716 = vmatpush3.bf16.msra.mxu1 %v8519_v14  ;;  %v8524_v30 = vld [vmem:[#allocation9 + $0x218] sm:$0xff]   ;;  %v5756_v14 = vpack.c.bf16 %v5732_v59, %v5731_v48  ;;  %v6106_v59 = vld [vmem:[%s8919_s21 + $0x28] sm:$0xff] }
 0x504   : > { %7717 = vmatprep.subr.bf16.mxu1 %v8520_v19 }
 0x507   : > { %7718 = vmatpush3.bf16.msra.mxu1 %v8520_v19  ;;  %v5757_v19 = vpack.c.bf16 %v5734_v58, %v5733_v9 }
 0x508   : > { %7751 = vmatprep.subr.bf16.mxu1 %v8521_v29 }
 0x50a   : > { %7688 = vmatmul.mubr.bf16.gmra.mrb[16].mxu1 %v9523_v23  ;;  %v8525_v23 = vld [vmem:[#allocation9 + $0x220] sm:$0xff]  }
 0x50b   : > { %7691 = vmatprep.mubr.bf16.mxu1 %v9525_v33  ;;  %v8526_v33 = vld [vmem:[#allocation9 + $0x228] sm:$0xff]  }
 0x512   : > { %7692 = vmatmul.mubr.bf16.gmra.mrb[20].mxu1 %v9529_v51  ;;  %v8527_v51 = vld [vmem:[#allocation9 + $0x230] sm:$0xff]  }
 0x513   : > { %7695 = vmatprep.mubr.bf16.mxu1 %v9531_v2  ;;  %v5426_v2 = vld [vmem:[#allocation3 + $0xe1] sm:$0xff] }
 0x514   : > { %v5450_v45 = vpack.c.bf16 %v5426_v2, %v5425_v17  ;;  %v5742_v2 = vld [vmem:[#allocation3 + $0x15a] sm:$0xff] }
 0x51a   : > { %7696 = vmatmul.mubr.bf16.gmra.mrb[24].mxu1 %v9535_v22  ;;  %v5428_v22 = vld [vmem:[#allocation3 + $0xf9] sm:$0xff] }
 0x51b   : > { %7699 = vmatprep.mubr.bf16.mxu1 %v9598_v15  ;;  %v5451_v35 = vpack.c.bf16 %v5428_v22, %v9623_v8  ;;  %v5431_v15 = vld [vmem:[#allocation3 + $0x121] sm:$0xff] }
 0x522   : > { %7700 = vmatmul.mubr.bf16.gmra.mrb[28].mxu1 %v5152_v55  ;;  %v5737_v55 = vld [vmem:[#allocation3 + $0x122] sm:$0xff] }
 0x523   : > { %7719 = vmatprep.mubr.bf16.mxu1 %v9601_v12  ;;  %v5453_v12 = vpack.c.bf16 %v5432_v16, %v5431_v15  ;;  %v5748_v16 = vld [vmem:[#allocation3 + $0x1a2] sm:$0xff] }
 0x524   : > { %v5764_v18 = vpack.c.bf16 %v5748_v16, %v5747_v41  ;;  %v6112_v41 = vld [vmem:[%s8919_s21 + $0x58] sm:$0xff] }
 0x52a   : > { %7720 = vmatmul.mubr.bf16.vlgmr.msra.gmra.mrb[0].mxu1 %v9603_v60  ;;  %v5434_v60 = vld [vmem:[#allocation3 + $0x141] sm:$0xff] }
 0x52b   : > { %7723 = vmatprep.mubr.bf16.mxu1 %v9607_v46  ;;  %7752 = vmatpush3.bf16.msra.mxu1 %v8521_v29  ;;  %v5454_v13 = vpack.c.bf16 %v5434_v60, %v5433_v6  ;;  %v5455_v46 = vpack.c.bf16 %v5436_v62, %v5435_v39  ;;  %v5735_v29 = vld [vmem:[#allocation3 + $0x10a] sm:$0xff]  ;;  %v6103_v62 = vld [vmem:[%s8919_s21 + $0x10] sm:$0xff] }
 0x52c   : > { %7753 = vmatprep.subr.bf16.mxu1 %v8522_v61 }
 0x52f   : > { %7754 = vmatpush3.bf16.msra.mxu1 %v8522_v61  ;;  %v5738_v61 = vld [vmem:[#allocation3 + $0x12a] sm:$0xff] }
 0x530   : > { %7755 = vmatprep.subr.bf16.mxu1 %v8523_v20 }
 0x532   : > { %7724 = vmatmul.mubr.bf16.gmra.mrb[4].mxu1 %v9609_v43  ;;  %v5437_v43 = vld [vmem:[#allocation3 + $0x169] sm:$0xff] }
 0x533   : > { %7727 = vmatprep.mubr.bf16.mxu1 %v9613_v63  ;;  %7756 = vmatpush3.bf16.msra.mxu1 %v8523_v20  ;;  %v5456_v44 = vpack.c.bf16 %v5438_v27, %v5437_v43  ;;  %v5442_v63 = vld [vmem:[#allocation3 + $0x1a1] sm:$0xff]  ;;  %v5758_v20 = vpack.c.bf16 %v5736_v38, %v5735_v29 }
 0x534   : > { %7757 = vmatprep.subr.bf16.mxu1 %v8524_v30  ;;  %v5458_v0 = vpack.c.bf16 %v5442_v63, %v5441_v4  ;;  %v6102_v63 = vld [vmem:[%s8919_s21 + $0x8] sm:$0xff] }
 0x537   : > { %7758 = vmatpush3.bf16.msra.mxu1 %v8524_v30  ;;  %v5759_v30 = vpack.c.bf16 %v5738_v61, %v5737_v55 }
 0x538   : > { %7759 = vmatprep.subr.bf16.mxu1 %v8525_v23 }
 0x53a   : > { %7728 = vmatmul.mubr.bf16.gmra.mrb[8].mxu1 %v9615_v5  ;;  %v5718_v5 = vld [vmem:[#allocation3 + $0x3a] sm:$0xff] }
 0x53b   : > { %7731 = vmatprep.mubr.bf16.mxu1 %v9619_v49  ;;  %7760 = vmatpush3.bf16.msra.mxu1 %v8525_v23  ;;  %v5749_v21 = vpack.c.bf16 %v5718_v5, %v5717_v1  ;;  %v5721_v49 = vld [vmem:[#allocation3 + $0x62] sm:$0xff]  ;;  %v5739_v23 = vld [vmem:[#allocation3 + $0x13a] sm:$0xff] }
 0x53c   : > { %7761 = vmatprep.subr.bf16.mxu1 %v8526_v33  ;;  %v5751_v8 = vpack.c.bf16 %v5722_v50, %v5721_v49 }
 0x53f   : > { %7762 = vmatpush3.bf16.msra.mxu1 %v8526_v33  ;;  %v5740_v33 = vld [vmem:[#allocation3 + $0x142] sm:$0xff] }
 0x540   : > { %7763 = vmatprep.subr.bf16.mxu1 %v8527_v51  ;;  %v5760_v22 = vpack.c.bf16 %v5740_v33, %v5739_v23  ;;  %v6111_v33 = vld [vmem:[%s8919_s21 + $0x50] sm:$0xff] }
 0x542   : > { %7732 = vmatmul.mubr.bf16.gmra.mrb[12].mxu1 %v5450_v45  ;;  %v5743_v45 = vld [vmem:[#allocation3 + $0x16a] sm:$0xff] }
 0x543   : > { %7735 = vmatprep.mubr.bf16.mxu1 %v5451_v35  ;;  %7764 = vmatpush3.bf16.msra.mxu1 %v8527_v51  ;;  %v5741_v51 = vld [vmem:[#allocation3 + $0x152] sm:$0xff] }
 0x544   : > { %7765 = vmatprep.subr.bf16.mxu1 %v8528_v3  ;;  %v5761_v17 = vpack.c.bf16 %v5742_v2, %v5741_v51 }
 0x547   : > { %7766 = vmatpush3.bf16.msra.mxu1 %v8528_v3  ;;  %v5744_v3 = vld [vmem:[#allocation3 + $0x172] sm:$0xff] }
 0x548   : > { %v5762_v35 = vpack.c.bf16 %v5744_v3, %v5743_v45 }
 0x54a   : > { %7736 = vmatmul.mubr.bf16.gmra.mrb[16].mxu1 %v5452_v36  ;;  %v9678_v36 = vld [vmem:[%s9873_s5] ss:$0 sm:$0xff] }
 0x54b   : > { %7739 = vmatprep.mubr.bf16.mxu1 %v5453_v12  ;;  %v9683_v12 = vld [vmem:[%s9874_s6] ss:$0 sm:$0xff] }
 0x552   : > { %7740 = vmatmul.mubr.bf16.gmra.mrb[20].mxu1 %v5454_v13 }
 0x553   : > { %7743 = vmatprep.mubr.bf16.mxu1 %v5455_v46  ;;  %v6101_v46 = vld [vmem:[%s8919_s21] sm:$0xff] }
 0x55a   : > { %7744 = vmatmul.mubr.bf16.gmra.mrb[24].mxu1 %v5456_v44  ;;  %v6104_v44 = vld [vmem:[%s8919_s21 + $0x18] sm:$0xff] }
 0x55b   : > { %7747 = vmatprep.mubr.bf16.mxu1 %v5457_v54 }
 0x562   : > { %7748 = vmatmul.mubr.bf16.gmra.mrb[28].mxu1 %v5458_v0 }
 0x563   : > { %7767 = vmatprep.mubr.bf16.mxu1 %v5749_v21 }
 0x56a   : > { %7768 = vmatmul.mubr.bf16.vlgmr.msra.gmra.mrb[0].mxu1 %v5750_v42 }
 0x56b   : > { %7771 = vmatprep.mubr.bf16.mxu1 %v5751_v8 }
 0x572   : > { %7772 = vmatmul.mubr.bf16.gmra.mrb[4].mxu1 %v5752_v57 }
 0x573   : > { %7775 = vmatprep.mubr.bf16.mxu1 %v5753_v31  ;;  %v6105_v31 = vld [vmem:[%s8919_s21 + $0x20] sm:$0xff] }
 0x57a   : > { %7776 = vmatmul.mubr.bf16.gmra.mrb[8].mxu1 %v5754_v11 }
 0x57b   : > { %7779 = vmatprep.mubr.bf16.mxu1 %v5755_v28 }
 0x582   : > { %7780 = vmatmul.mubr.bf16.gmra.mrb[12].mxu1 %v5756_v14 }
 0x583   : > { %7783 = vmatprep.mubr.bf16.mxu1 %v5757_v19 }
 0x58a   : > { %7784 = vmatmul.mubr.bf16.gmra.mrb[16].mxu1 %v5758_v20 }
 0x58b   : > { %7787 = vmatprep.mubr.bf16.mxu1 %v5759_v30 }
 0x592   : > { %7788 = vmatmul.mubr.bf16.gmra.mrb[20].mxu1 %v5760_v22 }
 0x593   : > { %7791 = vmatprep.mubr.bf16.mxu1 %v5761_v17  ;;  %v6109_v17 = vld [vmem:[%s8919_s21 + $0x40] sm:$0xff] }
 0x59a   : > { %7792 = vmatmul.mubr.bf16.gmra.mrb[24].mxu1 %v5762_v35 }
 0x59b   : > { %7795 = vmatprep.mubr.bf16.mxu1 %v9648_v26 }
 0x5a2   : > { %7796 = vmatmul.mubr.bf16.gmra.mrb[28].mxu1 %v5764_v18 }
 0x63d   : > { %v7769_v15 = vpop.f32.mrb[0].mxu1 }
 0x63e   : > { %v6032_v60 = vmul.f32 %v7769_v15, %v9678_v36  ;;  %v5864_v26 = vpop.f32.mrb[1].mxu1 }
 0x63f   : > { %v6030_v6 = vmul.f32 %v9678_v36, %v5864_v26  ;;  %v7770_v13 = vpop.f32.mrb[2].mxu1 }
 0x640   : > { %v6071_v39 = vadd.f32 %v9683_v12, %v6032_v60  ;;  %v6033_v27 = vmul.f32 %v7770_v13, %v9678_v36  ;;  %v5867_v37 = vpop.f32.mrb[3].mxu1  ;;  %v6110_v60 = vld [vmem:[%s8919_s21 + $0x48] sm:$0xff] }
 0x641   : > { %v6069_v43 = vadd.f32 %v9683_v12, %v6030_v6  ;;  %v6031_v47 = vmul.f32 %v9678_v36, %v5867_v37 }
 0x642   : > { %v6135_v54 = vadd.f32 %v6103_v62, %v6071_v39  ;;  %v6072_v4 = vadd.f32 %v9683_v12, %v6033_v27 }
 0x643   : > { %v6133_v0 = vadd.f32 %v6101_v46, %v6069_v43  ;;  %v6070_v1 = vadd.f32 %v9683_v12, %v6031_v47 }
 0x644   : > { %v6167_v5 = vmax.f32 %v6135_v54, 0.0  ;;  %v6136_v21 = vadd.f32 %v6104_v44, %v6072_v4  ;;  %v6115_v54 = vld [vmem:[%s8919_s21 + $0x70] sm:$0xff] }
 0x645   : > { %v6165_v25 = vmax.f32 %v6133_v0, 0.0  ;;  %v6134_v40 = vadd.f32 %v6102_v63, %v6070_v1  ;;  %v7773_v49 = vpop.f32.mrb[4].mxu1  ;;  %v6113_v1 = vld [vmem:[%s8919_s21 + $0x60] sm:$0xff] }
 0x646   : > { %6199 = vst [vmem:[%s9699_s12 + $0x10] sm:$0xff] %v6167_v5  ;;  %v6168_v50 = vmax.f32 %v6136_v21, 0.0  ;;  %v6036_v42 = vmul.f32 %v7773_v49, %v9678_v36  ;;  %v5880_v8 = vpop.f32.mrb[5].mxu1 }
 0x647   : > { %6197 = vst [vmem:[%s9699_s12] sm:$0xff] %v6165_v25  ;;  %v6166_v10 = vmax.f32 %v6134_v40, 0.0  ;;  %v6034_v53 = vmul.f32 %v9678_v36, %v5880_v8  ;;  %v7774_v52 = vpop.f32.mrb[6].mxu1  ;;  %v6116_v40 = vld [vmem:[%s8919_s21 + $0x78] sm:$0xff]  ;;  %v6114_v8 = vld [vmem:[%s8919_s21 + $0x68] sm:$0xff] }
 0x648   : > { %6200 = vst [vmem:[%s9699_s12 + $0x18] sm:$0xff] %v6168_v50  ;;  %v6075_v57 = vadd.f32 %v9683_v12, %v6036_v42  ;;  %v6037_v32 = vmul.f32 %v7774_v52, %v9678_v36  ;;  %v5883_v24 = vpop.f32.mrb[7].mxu1 }
 0x649   : > { %6198 = vst [vmem:[%s9699_s12 + $0x8] sm:$0xff] %v6166_v10  ;;  %v6073_v34 = vadd.f32 %v9683_v12, %v6034_v53  ;;  %v6035_v11 = vmul.f32 %v9678_v36, %v5883_v24 }
 0x64a   : > { %v6139_v28 = vadd.f32 %v6107_v7, %v6075_v57  ;;  %v6076_v48 = vadd.f32 %v9683_v12, %v6037_v32 }
 0x64b   : > { %v6137_v9 = vadd.f32 %v6105_v31, %v6073_v34  ;;  %v6074_v58 = vadd.f32 %v9683_v12, %v6035_v11 }
 0x64c   : > { %v6171_v14 = vmax.f32 %v6139_v28, 0.0  ;;  %v6140_v19 = vadd.f32 %v6108_v56, %v6076_v48  ;;  %v6119_v28 = vld [vmem:[%s8919_s21 + $0x90] sm:$0xff] }
 0x64d   : > { %v6169_v29 = vmax.f32 %v6137_v9, 0.0  ;;  %v6138_v38 = vadd.f32 %v6106_v59, %v6074_v58  ;;  %v7777_v55 = vpop.f32.mrb[8].mxu1  ;;  %v6117_v58 = vld [vmem:[%s8919_s21 + $0x80] sm:$0xff] }
 0x64e   : > { %6203 = vst [vmem:[%s9699_s12 + $0x30] sm:$0xff] %v6171_v14  ;;  %v6172_v61 = vmax.f32 %v6140_v19, 0.0  ;;  %v6040_v20 = vmul.f32 %v7777_v55, %v9678_v36  ;;  %v5896_v30 = vpop.f32.mrb[9].mxu1 }
 0x64f   : > { %6201 = vst [vmem:[%s9699_s12 + $0x20] sm:$0xff] %v6169_v29  ;;  %v6170_v23 = vmax.f32 %v6138_v38, 0.0  ;;  %v6038_v51 = vmul.f32 %v9678_v36, %v5896_v30  ;;  %v7778_v2 = vpop.f32.mrb[10].mxu1  ;;  %v6120_v38 = vld [vmem:[%s8919_s21 + $0x98] sm:$0xff]  ;;  %v6118_v30 = vld [vmem:[%s8919_s21 + $0x88] sm:$0xff] }
 0x650   : > { %6204 = vst [vmem:[%s9699_s12 + $0x38] sm:$0xff] %v6172_v61  ;;  %v6079_v22 = vadd.f32 %v9683_v12, %v6040_v20  ;;  %v6041_v45 = vmul.f32 %v7778_v2, %v9678_v36  ;;  %v5899_v3 = vpop.f32.mrb[11].mxu1 }
 0x651   : > { %6202 = vst [vmem:[%s9699_s12 + $0x28] sm:$0xff] %v6170_v23  ;;  %v6077_v35 = vadd.f32 %v9683_v12, %v6038_v51  ;;  %v6039_v16 = vmul.f32 %v9678_v36, %v5899_v3 }
 0x652   : > { %v6143_v18 = vadd.f32 %v6111_v33, %v6079_v22  ;;  %v6080_v15 = vadd.f32 %v9683_v12, %v6041_v45 }
 0x653   : > { %v6141_v26 = vadd.f32 %v6109_v17, %v6077_v35  ;;  %v6078_v62 = vadd.f32 %v9683_v12, %v6039_v16 }
 0x654   : > { %v6175_v6 = vmax.f32 %v6143_v18, 0.0  ;;  %v6144_v13 = vadd.f32 %v6112_v41, %v6080_v15  ;;  %v6123_v18 = vld [vmem:[%s8919_s21 + $0xb0] sm:$0xff] }
 0x655   : > { %v6173_v39 = vmax.f32 %v6141_v26, 0.0  ;;  %v6142_v46 = vadd.f32 %v6110_v60, %v6078_v62  ;;  %v7781_v27 = vpop.f32.mrb[12].mxu1  ;;  %v6121_v62 = vld [vmem:[%s8919_s21 + $0xa0] sm:$0xff] }
 0x656   : > { %6207 = vst [vmem:[%s9699_s12 + $0x50] sm:$0xff] %v6175_v6  ;;  %v6176_v37 = vmax.f32 %v6144_v13, 0.0  ;;  %v6044_v43 = vmul.f32 %v7781_v27, %v9678_v36  ;;  %v5912_v44 = vpop.f32.mrb[13].mxu1 }
 0x657   : > { %6205 = vst [vmem:[%s9699_s12 + $0x40] sm:$0xff] %v6173_v39  ;;  %v6174_v47 = vmax.f32 %v6142_v46, 0.0  ;;  %v6042_v4 = vmul.f32 %v9678_v36, %v5912_v44  ;;  %v7782_v63 = vpop.f32.mrb[14].mxu1  ;;  %v6124_v46 = vld [vmem:[%s8919_s21 + $0xb8] sm:$0xff]  ;;  %v6122_v44 = vld [vmem:[%s8919_s21 + $0xa8] sm:$0xff] }
 0x658   : > { %6208 = vst [vmem:[%s9699_s12 + $0x58] sm:$0xff] %v6176_v37  ;;  %v6083_v0 = vadd.f32 %v9683_v12, %v6044_v43  ;;  %v6045_v5 = vmul.f32 %v7782_v63, %v9678_v36  ;;  %v5915_v21 = vpop.f32.mrb[15].mxu1 }
 0x659   : > { %6206 = vst [vmem:[%s9699_s12 + $0x48] sm:$0xff] %v6174_v47  ;;  %v6081_v25 = vadd.f32 %v9683_v12, %v6042_v4  ;;  %v6043_v49 = vmul.f32 %v9678_v36, %v5915_v21 }
 0x65a   : > { %v6147_v50 = vadd.f32 %v6115_v54, %v6083_v0  ;;  %v6084_v42 = vadd.f32 %v9683_v12, %v6045_v5 }
 0x65b   : > { %v6145_v10 = vadd.f32 %v6113_v1, %v6081_v25  ;;  %v6082_v7 = vadd.f32 %v9683_v12, %v6043_v49 }
 0x65c   : > { %v6179_v53 = vmax.f32 %v6147_v50, 0.0  ;;  %v6148_v52 = vadd.f32 %v6116_v40, %v6084_v42  ;;  %v6127_v50 = vld [vmem:[%s8919_s21 + $0xd0] sm:$0xff] }
 0x65d   : > { %v6177_v57 = vmax.f32 %v6145_v10, 0.0  ;;  %v6146_v31 = vadd.f32 %v6114_v8, %v6082_v7  ;;  %v7785_v32 = vpop.f32.mrb[16].mxu1  ;;  %v6125_v7 = vld [vmem:[%s8919_s21 + $0xc0] sm:$0xff] }
 0x65e   : > { %6211 = vst [vmem:[%s9699_s12 + $0x70] sm:$0xff] %v6179_v53  ;;  %v6180_v24 = vmax.f32 %v6148_v52, 0.0  ;;  %v6048_v34 = vmul.f32 %v7785_v32, %v9678_v36  ;;  %v5928_v56 = vpop.f32.mrb[17].mxu1 }
 0x65f   : > { %6209 = vst [vmem:[%s9699_s12 + $0x60] sm:$0xff] %v6177_v57  ;;  %v6178_v11 = vmax.f32 %v6146_v31, 0.0  ;;  %v6046_v48 = vmul.f32 %v9678_v36, %v5928_v56  ;;  %v7786_v59 = vpop.f32.mrb[18].mxu1  ;;  %v6128_v31 = vld [vmem:[%s8919_s21 + $0xd8] sm:$0xff]  ;;  %v6126_v56 = vld [vmem:[%s8919_s21 + $0xc8] sm:$0xff] }
 0x660   : > { %6212 = vst [vmem:[%s9699_s12 + $0x78] sm:$0xff] %v6180_v24  ;;  %v6087_v9 = vadd.f32 %v9683_v12, %v6048_v34  ;;  %v6049_v14 = vmul.f32 %v7786_v59, %v9678_v36  ;;  %v5931_v19 = vpop.f32.mrb[19].mxu1 }
 0x661   : > { %6210 = vst [vmem:[%s9699_s12 + $0x68] sm:$0xff] %v6178_v11  ;;  %v6085_v29 = vadd.f32 %v9683_v12, %v6046_v48  ;;  %v6047_v55 = vmul.f32 %v9678_v36, %v5931_v19 }
 0x662   : > { %v6151_v61 = vadd.f32 %v6119_v28, %v6087_v9  ;;  %v6088_v20 = vadd.f32 %v9683_v12, %v6049_v14 }
 0x663   : > { %v6149_v23 = vadd.f32 %v6117_v58, %v6085_v29  ;;  %v6086_v33 = vadd.f32 %v9683_v12, %v6047_v55 }
 0x664   : > { %v6183_v51 = vmax.f32 %v6151_v61, 0.0  ;;  %v6152_v2 = vadd.f32 %v6120_v38, %v6088_v20  ;;  %v6131_v61 = vld [vmem:[%s8919_s21 + $0xf0] sm:$0xff] }
 0x665   : > { %v6181_v22 = vmax.f32 %v6149_v23, 0.0  ;;  %v6150_v17 = vadd.f32 %v6118_v30, %v6086_v33  ;;  %v7789_v45 = vpop.f32.mrb[20].mxu1  ;;  %v6129_v33 = vld [vmem:[%s8919_s21 + $0xe0] sm:$0xff] }
 0x666   : > { %6215 = vst [vmem:[%s9699_s12 + $0x90] sm:$0xff] %v6183_v51  ;;  %v6184_v3 = vmax.f32 %v6152_v2, 0.0  ;;  %v6052_v35 = vmul.f32 %v7789_v45, %v9678_v36  ;;  %v5944_v41 = vpop.f32.mrb[21].mxu1 }
 0x667   : > { %6213 = vst [vmem:[%s9699_s12 + $0x80] sm:$0xff] %v6181_v22  ;;  %v6182_v16 = vmax.f32 %v6150_v17, 0.0  ;;  %v6050_v15 = vmul.f32 %v9678_v36, %v5944_v41  ;;  %v7790_v60 = vpop.f32.mrb[22].mxu1  ;;  %v6132_v17 = vld [vmem:[%s8919_s21 + $0xf8] sm:$0xff]  ;;  %v6130_v41 = vld [vmem:[%s8919_s21 + $0xe8] sm:$0xff]  ;;  %s8617_s21 = scalar_lea.vmem %s9821_s29, 4096 }
 0x668   : > { %6216 = vst [vmem:[%s9699_s12 + $0x98] sm:$0xff] %v6184_v3  ;;  %v6091_v26 = vadd.f32 %v9683_v12, %v6052_v35  ;;  %v6053_v6 = vmul.f32 %v7790_v60, %v9678_v36  ;;  %v5947_v13 = vpop.f32.mrb[23].mxu1  ;;  %p8618_p11 = scmp.ne.s32.totalorder %s9821_s29, %s8617_s21  ;;  %p8625_p9 = scmp.lt.s32.totalorder %s8623_s22, %s8617_s21 }
 0x669   : > { %6214 = vst [vmem:[%s9699_s12 + $0x88] sm:$0xff] %v6182_v16  ;;  %v6089_v39 = vadd.f32 %v9683_v12, %v6050_v15  ;;  %v6051_v27 = vmul.f32 %v9678_v36, %v5947_v13 }
 0x66a   : > { %v6155_v37 = vadd.f32 %v6123_v18, %v6091_v26  ;;  %v6092_v43 = vadd.f32 %v9683_v12, %v6053_v6  ;;  %p8619_p1 = pnand %p8618_p11, %p9889_p0  ;;  %p8626_p12 = por %p8625_p9, %p8624_p7 }
 0x66b   : > { %v6153_v47 = vadd.f32 %v6121_v62, %v6089_v39  ;;  %v6090_v54 = vadd.f32 %v9683_v12, %v6051_v27 }
 0x66c   : > { %v6187_v4 = vmax.f32 %v6155_v37, 0.0  ;;  %v6156_v63 = vadd.f32 %v6124_v46, %v6092_v43  ;;  %p8620_p3 = pneg %p8619_p1 }
 0x66d   : > { %v6185_v0 = vmax.f32 %v6153_v47, 0.0  ;;  %v6154_v1 = vadd.f32 %v6122_v44, %v6090_v54  ;;  %v7793_v5 = vpop.f32.mrb[24].mxu1 }
 0x66e   : > { %6219 = vst [vmem:[%s9699_s12 + $0xb0] sm:$0xff] %v6187_v4  ;;  %v6188_v21 = vmax.f32 %v6156_v63, 0.0  ;;  %v6056_v25 = vmul.f32 %v7793_v5, %v9678_v36  ;;  %v5960_v40 = vpop.f32.mrb[25].mxu1  ;;  %p8627_p2 = pnand %p8626_p12, %p8620_p3 }
 0x66f   : > { %6217 = vst [vmem:[%s9699_s12 + $0xa0] sm:$0xff] %v6185_v0  ;;  %v6186_v49 = vmax.f32 %v6154_v1, 0.0  ;;  %v6054_v42 = vmul.f32 %v9678_v36, %v5960_v40  ;;  %v7794_v8 = vpop.f32.mrb[26].mxu1 }
 0x670   : > { %6220 = vst [vmem:[%s9699_s12 + $0xb8] sm:$0xff] %v6188_v21  ;;  %v6095_v10 = vadd.f32 %v9683_v12, %v6056_v25  ;;  %v6057_v53 = vmul.f32 %v7794_v8, %v9678_v36  ;;  %v5963_v52 = vpop.f32.mrb[27].mxu1 }
 0x671   : > { %6218 = vst [vmem:[%s9699_s12 + $0xa8] sm:$0xff] %v6186_v49  ;;  %v6093_v57 = vadd.f32 %v9683_v12, %v6054_v42  ;;  %v6055_v32 = vmul.f32 %v9678_v36, %v5963_v52 }
 0x672   : > { %v6159_v24 = vadd.f32 %v6127_v50, %v6095_v10  ;;  %v6096_v34 = vadd.f32 %v9683_v12, %v6057_v53 }
 0x673   : > { %v6157_v11 = vadd.f32 %v6125_v7, %v6093_v57  ;;  %v6094_v28 = vadd.f32 %v9683_v12, %v6055_v32 }
 0x674   : > { %v6191_v48 = vmax.f32 %v6159_v24, 0.0  ;;  %v6160_v59 = vadd.f32 %v6128_v31, %v6096_v34 }
 0x675   : > { %v6189_v9 = vmax.f32 %v6157_v11, 0.0  ;;  %v6158_v58 = vadd.f32 %v6126_v56, %v6094_v28  ;;  %v7797_v14 = vpop.f32.mrb[28].mxu1 }
 0x676   : > { %6223 = vst [vmem:[%s9699_s12 + $0xd0] sm:$0xff] %v6191_v48  ;;  %v6192_v19 = vmax.f32 %v6160_v59, 0.0  ;;  %v6060_v29 = vmul.f32 %v7797_v14, %v9678_v36  ;;  %v5976_v38 = vpop.f32.mrb[29].mxu1 }
 0x677   : > { %6221 = vst [vmem:[%s9699_s12 + $0xc0] sm:$0xff] %v6189_v9  ;;  %v6190_v55 = vmax.f32 %v6158_v58, 0.0  ;;  %v6058_v20 = vmul.f32 %v9678_v36, %v5976_v38  ;;  %v7798_v30 = vpop.f32.mrb[30].mxu1 }
 0x678   : > { %6224 = vst [vmem:[%s9699_s12 + $0xd8] sm:$0xff] %v6192_v19  ;;  %v6099_v23 = vadd.f32 %v9683_v12, %v6060_v29  ;;  %v6061_v51 = vmul.f32 %v7798_v30, %v9678_v36  ;;  %v5979_v2 = vpop.f32.mrb[31].mxu1 }
 0x679   : > { %6222 = vst [vmem:[%s9699_s12 + $0xc8] sm:$0xff] %v6190_v55  ;;  %v6097_v22 = vadd.f32 %v9683_v12, %v6058_v20  ;;  %v6059_v45 = vmul.f32 %v9678_v36, %v5979_v2 }
 0x67a   : > { %v6163_v3 = vadd.f32 %v6131_v61, %v6099_v23  ;;  %v6100_v35 = vadd.f32 %v9683_v12, %v6061_v51 }
 0x67b   : > { %v6161_v16 = vadd.f32 %v6129_v33, %v6097_v22  ;;  %v6098_v18 = vadd.f32 %v9683_v12, %v6059_v45 }
 0x67c   : > { %v6195_v15 = vmax.f32 %v6163_v3, 0.0  ;;  %v6164_v60 = vadd.f32 %v6132_v17, %v6100_v35 }
 0x67d   : > { %v6193_v26 = vmax.f32 %v6161_v16, 0.0  ;;  %v6162_v62 = vadd.f32 %v6130_v41, %v6098_v18 }
 0x67e   : > { %6227 = vst [vmem:[%s9699_s12 + $0xf0] sm:$0xff] %v6195_v15  ;;  %v6196_v36 = vmax.f32 %v6164_v60, 0.0 }
 0x67f   : > { %6225 = vst [vmem:[%s9699_s12 + $0xe0] sm:$0xff] %v6193_v26  ;;  %v6194_v12 = vmax.f32 %v6162_v62, 0.0 }
 0x680   : > { %6228 = vst [vmem:[%s9699_s12 + $0xf8] sm:$0xff] %v6196_v36 }
 0x681   : > { %6226 = vst [vmem:[%s9699_s12 + $0xe8] sm:$0xff] %v6194_v12 }
 0x682   : > { %8630 = shalt.err (!%p8627_p2)
}
 0x683   : > { %s8631_s10 = scalar_lea.hbm %s9819_s9, 4096  ;;  %s8635_s12 = scalar_lea.hbm %s9875_s7, 8192 }
 0x684   : > { %p8632_p13 = scmp.ne.s32.totalorder %s9819_s9, %s8631_s10  ;;  %p8636_p4 = scmp.lt.u32.totalorder %s9819_s9, %s9875_s7 }
 0x685   : > { %p8637_p5 = scmp.lt.u32.totalorder %s8635_s12, %s8631_s10  ;;  %p8639_p11 = scmp.lt.u32.totalorder %s8631_s10, %s9819_s9 }
 0x686   : > { %p8633_p6 = pnand %p8632_p13, %p9889_p0 }
 0x687   : > { %p8638_p8 = por %p8637_p5, %p8636_p4 }
 0x688   : > { %p8634_p10 = pneg %p8633_p6 }
 0x689   : > { %p8640_p1 = por %p8639_p11, %p8638_p8 }
 0x68b   : > { %p8641_p3 = pnand %p8640_p1, %p8634_p10 }
 0x68d   : > { %8644 = shalt.err (!%p8641_p3)
}
 0x68e   : > { %s8699_s30 = smov 128   ;;  %s8700_s21 = smov 8  }
 0x68f   : > { %8321 = dma.vmem_to_hbm [thread:$0]  (%p9889_p0), %s9821_s29, 4096, %s9819_s9, %s6230_s28, %s8699_s30, %s8699_s30, %s8700_s21  }
 0x690 PF: > { %s6258_s20 = sand.u32 1, %s8675_s24   ;;  %p9890_p7 = scmp.ne.s32.totalorder %s9880_s8, 0 }
 0x691   : > { %p9891_p9 = scmp.ge.s32.totalorder %s8687_s27, 2  ;;  %s6259_s11 = scalar_lea.sflag [#allocation6], %s6258_s20 }
 0x693   : > { %p8335_p12 = pnand %p9891_p9, %p9890_p7 }
 0x695   : > { %8670 = dma.done.wait (!%p8335_p12), %s6259_s11, 4096  }
 0x696   : > { %8672 = vsyncadd (!%p8335_p12), %s6259_s11, 4294963200  ;;  %p21_p2 = scmp.ge.s32.totalorder %s8851_s13, 4   ;;  %s9892_s24 = smov %s8679_s25 }
 0x697   : > { %s9893_s25 = smov %s8683_s26  ;;  %s9894_s26 = smov %s8867_s17 }
 0x698   : > { %s9895_s27 = smov %s8851_s13  ;;  %23 = sbr.rel (!%p21_p2) target bundleno = 6 (0x6), region = 121 }
 0x69f   :  { %6264 = vsyncpa [#allocation5], 1 }
 0x6a0   :  { %6266 = vsyncpa [#allocation5 + $0x1], 1 }
 0x6a1   :  { %6267 = vsyncpa [#allocation8], 1 }
 0x6a2   :  { %6268 = vsyncpa [#allocation6], 1 }
 0x6a3   :  { %6270 = vsyncpa [#allocation6 + $0x1], 1 }

</bundles_post_ra>
